<compile_context>
chip_gen: v7x
topology: tpu7x:2x2x1
jax: 0.10.0
libtpu: 0.0.40
codegen_flags: <defaults>
</compile_context>

<pallas_src>
import functools

import numpy as np
import jax
import jax.numpy as jnp
from jax.experimental import pallas as pl
from jax.experimental.pallas import tpu as pltpu

# ----------------------------------------------------------------------------
# Model hyper-parameters (consistent with the module's constructor).
# ----------------------------------------------------------------------------
BATCH = 2
DATES = 16         # sequence length
NINPUTS = 4        # input channels
NOUTPUTS = 3       # decoder output channels
HIDDENS = 8        # encoder conv hidden channels
NLAYERS = 2        # GRU layers
FUSIONS = 8        # fusion size
EMB = (4, 8)       # embeddingSize = (E0, E1)

GPAD = 8           # padded per-gate row stride for the GRU (tile aligned)

VMEM_SPEC = pl.BlockSpec(memory_space=pltpu.MemorySpace.VMEM)


def get_kernel_sizes(dates: int):
    thrsh = (dates - 3) // 2
    result = [1]
    while result[-1] < thrsh:
        result.append(result[-1] * 5)
    del result[-1]
    return result


# ----------------------------------------------------------------------------
# Packing helpers (all run once, on the host, at parameter-pack time)
# ----------------------------------------------------------------------------
def _pack_arrays(named_arrays):
    """Pack 2-D arrays into one (rows, W) f32 slab.  Each piece starts on an
    8-row boundary, column 0.  Returns (buffer, {name: (row_off, rows, cols)})."""
    max_cols = max(int(np.asarray(a).shape[1]) for _, a in named_arrays)
    width = max(128, ((max_cols + 127) // 128) * 128)
    offsets, pieces, row = {}, [], 0
    for name, arr in named_arrays:
        a = np.asarray(arr, np.float32)
        assert a.ndim == 2 and a.shape[1] <= width, (name, a.shape)
        offsets[name] = (row, a.shape[0], a.shape[1])
        pieces.append((row, a))
        row += ((a.shape[0] + 7) // 8) * 8
    buf = np.zeros((max(8, ((row + 7) // 8) * 8), width), np.float32)
    for r0, a in pieces:
        buf[r0:r0 + a.shape[0], :a.shape[1]] = a
    return jnp.asarray(buf), offsets


def _block_diag(w, B):
    co, ci = w.shape
    out = np.zeros((B * co, B * ci), np.float32)
    for b in range(B):
        out[b * co:(b + 1) * co, b * ci:(b + 1) * ci] = w
    return out


def _bcast_rows(vec, reps, cols):
    # per-output-channel bias -> (reps*n, cols) pre-broadcast over lanes.
    v = np.tile(np.asarray(vec, np.float32).reshape(-1, 1), (reps, 1))
    return np.tile(v, (1, cols))


def _bcast_cols(vec, rows):
    # per-output-feature bias -> (rows, n) pre-broadcast over sublanes.
    return np.tile(np.asarray(vec, np.float32).reshape(1, -1), (rows, 1))


def _pack_conv_taps(w, B):
    # w: (Cout, Cin, k) -> (B*Cout, k*B*Cin): block-diag over batch, taps along
    # the contraction axis (matches the im2col row ordering j, b, cin).
    co, ci, k = w.shape
    out = np.zeros((B * co, k * B * ci), np.float32)
    for j in range(k):
        out[:, j * B * ci:(j + 1) * B * ci] = _block_diag(np.asarray(w[:, :, j]), B)
    return out


def _fold_avgpool(w2):
    # conv(k) followed by AvgPool1d(5, stride=1) == conv with k+4 taps.
    w2 = np.asarray(w2, np.float32)
    co, ci, k = w2.shape
    eff = np.zeros((co, ci, k + 4), np.float32)
    for i in range(5):
        eff[:, :, i:i + k] += w2
    return eff * 0.2


def _pack_gru_gate_rows(w, H):
    # (3H, X) torch gate order r|z|n -> (3*GPAD, X), gate g at rows [8g:8g+H).
    w = np.asarray(w, np.float32)
    out = np.zeros((3 * GPAD, w.shape[1]), np.float32)
    for g in range(3):
        out[g * GPAD:g * GPAD + H, :] = w[g * H:(g + 1) * H, :]
    return out


def _pad_cols(w, cols):
    out = np.zeros((w.shape[0], cols), np.float32)
    out[:, :w.shape[1]] = w
    return out


# ----------------------------------------------------------------------------
# Parameter construction (torch layout) and one-time packing
# ----------------------------------------------------------------------------
def make_params(key, dates, ninputs, noutputs, hiddens, nlayers, fusions, emb,
                kernel_sizes):
    E0, E1 = emb
    keys = iter(jax.random.split(key, 64))

    def u(shape, fan_in):
        s = 1.0 / np.sqrt(fan_in)
        return jax.random.uniform(next(keys), shape, jnp.float32, -s, s)

    cnv_sizes = [dates - 2 * k - 2 for k in kernel_sizes]
    sum_l = sum(cnv_sizes)

    branches = []
    for k in kernel_sizes:
        branches.append(dict(
            w1=u((hiddens, ninputs, k), ninputs * k),
            b1=u((hiddens,), ninputs * k),
            w2=u((E0, hiddens, k), hiddens * k),
            b2=u((E0,), hiddens * k)))

    gru_layers = []
    for l in range(nlayers):
        in_size = ninputs if l == 0 else E0
        gru_layers.append(dict(
            w_ih=u((3 * E0, in_size), E0),
            w_hh=u((3 * E0, E0), E0),
            b_ih=u((3 * E0,), E0),
            b_hh=u((3 * E0,), E0)))

    return dict(
        cnn_branches=branches,
        gru_layers=gru_layers,
        cnn_fusion_w=u((fusions, sum_l), sum_l),
        cnn_fusion_b=u((fusions,), sum_l),
        rnn_fusion_w=u((fusions, nlayers), nlayers),
        rnn_fusion_b=u((fusions,), nlayers),
        final_w=u((E1, 2 * fusions), 2 * fusions),
        final_b=u((E1,), 2 * fusions),
        bn_gamma=jnp.ones((E0,), jnp.float32),
        bn_beta=jnp.zeros((E0,), jnp.float32),
        # decoder.larger0
        l0a_w=u((2 * E1, E1), E1), l0a_b=u((2 * E1,), E1),
        l0c_w=u((2 * E0, E0, 1), E0), l0c_b=u((2 * E0,), E0),
        l0b_w=u((4 * E1, 2 * E1), 2 * E1), l0b_b=u((4 * E1,), 2 * E1),
        # decoder.cnv
        cnv_a_w=u((64, 2 * E0, 1), 2 * E0), cnv_a_b=u((64,), 2 * E0),
        cnv_b_w=u((noutputs, 64, 1), 64), cnv_b_b=u((noutputs,), 64),
        # decoder.larger1
        l1_w=u((dates, 4 * E1), 4 * E1), l1_b=u((dates,), 4 * E1),
    )


def pack_params(p, *, B, dates, E0, E1, nlayers, kernel_sizes):
    named = []
    # CNN branches: conv1 (taps along contraction) and conv2 with AvgPool folded.
    for i, k in enumerate(kernel_sizes):
        br = p['cnn_branches'][i]
        L1 = dates - k + 1
        Lout = dates - 2 * k - 2
        named.append((f'b{i}_w1', _pack_conv_taps(np.asarray(br['w1']), B)))
        named.append((f'b{i}_b1', _bcast_rows(br['b1'], B, L1)))
        named.append((f'b{i}_w2', _pack_conv_taps(_fold_avgpool(br['w2']), B)))
        named.append((f'b{i}_b2', _bcast_rows(br['b2'], B, Lout)))
    # GRU: fused, gate-row-padded weights.  Whh / upper-layer Wih get zero
    # columns so the hidden state can be carried padded as (GPAD, B).
    TB = dates * B
    H = E0
    for l in range(nlayers):
        g = p['gru_layers'][l]
        wih = _pack_gru_gate_rows(np.asarray(g['w_ih']), H)
        if l > 0:
            wih = _pad_cols(wih, GPAD)
        whh = _pad_cols(_pack_gru_gate_rows(np.asarray(g['w_hh']), H), GPAD)
        bih = _pack_gru_gate_rows(np.asarray(g['b_ih']).reshape(-1, 1), H)
        bhh = _pack_gru_gate_rows(np.asarray(g['b_hh']).reshape(-1, 1), H)
        named.append((f'gru{l}_wih', wih))
        named.append((f'gru{l}_whh', whh))
        named.append((f'gru{l}_bih', np.tile(bih, (1, TB))))
        named.append((f'gru{l}_bhh', np.tile(bhh, (1, B))))
    # Fusions + BatchNorm.
    named.append(('wcf', np.asarray(p['cnn_fusion_w']).T))
    named.append(('bcf', _bcast_cols(p['cnn_fusion_b'], B * E0)))
    named.append(('wrf', np.asarray(p['rnn_fusion_w']).T))
    named.append(('brf', _bcast_cols(p['rnn_fusion_b'], B * E0)))
    named.append(('wfin', np.asarray(p['final_w']).T))
    named.append(('bfin', _bcast_cols(p['final_b'], B * E0)))
    named.append(('bn_g', np.asarray(p['bn_gamma']).reshape(-1, 1)))
    named.append(('bn_b', np.asarray(p['bn_beta']).reshape(-1, 1)))
    # Decoder.
    nout = np.asarray(p['cnv_b_b']).shape[0]
    named.append(('l0a_w', np.asarray(p['l0a_w']).T))
    named.append(('l0a_b', _bcast_cols(p['l0a_b'], B * E0)))
    named.append(('l0c_w', _block_diag(np.asarray(p['l0c_w'])[:, :, 0], B)))
    named.append(('l0c_b', _bcast_rows(p['l0c_b'], B, 2 * E1)))
    named.append(('l0b_w', np.asarray(p['l0b_w']).T))
    named.append(('l0b_b', _bcast_cols(p['l0b_b'], B * 2 * E0)))
    named.append(('ca_w', _block_diag(np.asarray(p['cnv_a_w'])[:, :, 0], B)))
    named.append(('ca_b', _bcast_rows(p['cnv_a_b'], B, 4 * E1)))
    named.append(('cb_w', _block_diag(np.asarray(p['cnv_b_w'])[:, :, 0], B)))
    named.append(('cb_b', _bcast_rows(p['cnv_b_b'], B, 4 * E1)))
    named.append(('l1_w', np.asarray(p['l1_w']).T))
    named.append(('l1_b', _bcast_cols(p['l1_b'], B * nout)))
    return _pack_arrays(named)


def make_act_offsets(B, ninputs, dates, kernel_sizes):
    offs, row = {}, 0
    for i, k in enumerate(kernel_sizes):
        L1 = dates - k + 1
        r = k * B * ninputs
        offs[f'x_im2col{i}'] = (row, r, L1)
        row += ((r + 7) // 8) * 8
    offs['x_rt'] = (row, ninputs, dates * B)
    row += ((ninputs + 7) // 8) * 8
    width = max([dates * B] + [dates - k + 1 for k in kernel_sizes])
    return offs, ((row + 7) // 8) * 8, width


# ----------------------------------------------------------------------------
# Fused whole-model Pallas kernel (no grid: single invocation, one TensorCore)
# ----------------------------------------------------------------------------
def _pcrn_fused_kernel(act_ref, w_ref, out_ref, *, kernel_sizes, B, dates,
                       E0, E1, nlayers, w_offs, a_offs):
    f32 = jnp.float32
    H = E0
    G = GPAD

    def W(name):
        off, r, c = w_offs[name]
        return w_ref[off:off + r, 0:c]

    def A(name):
        off, r, c = a_offs[name]
        return act_ref[off:off + r, 0:c]

    def mm(a, b):
        return jnp.dot(a, b, preferred_element_type=f32)

    # ---------------- CNN branches: 2 matmuls each -------------------------
    feats = []
    for i, k in enumerate(kernel_sizes):
        ke = k + 4                                    # conv2 + AvgPool folded
        Lout = dates - 2 * k - 2
        x_stack = A(f'x_im2col{i}')                   # (k*B*Cin, L1)
        y1 = jnp.maximum(mm(W(f'b{i}_w1'), x_stack) + W(f'b{i}_b1'), 0.0)
        y_stack = jnp.concatenate([y1[:, j:j + Lout] for j in range(ke)], axis=0)
        feats.append(mm(W(f'b{i}_w2'), y_stack) + W(f'b{i}_b2'))   # (B*E0, Lout)
    cnn_cat = jnp.concatenate(feats, axis=1) if len(feats) > 1 else feats[0]
    cnn_fused = mm(cnn_cat, W('wcf')) + W('bcf')                   # (B*E0, F)

    # ---------------- GRU: layer-by-layer over time -------------------------
    T = dates

    def run_layer(l, x_all):
        gx_all = mm(W(f'gru{l}_wih'), x_all) + W(f'gru{l}_bih')    # (3G, T*B)
        whh = W(f'gru{l}_whh')                                     # (3G, G)
        bhh = W(f'gru{l}_bhh')                                     # (3G, B)
        h = jnp.zeros((G, B), f32)
        hs_t = []
        for t in range(T):                                         # unrolled
            gx = gx_all[:, t * B:(t + 1) * B]                      # (3G, B)
            gh = mm(whh, h) + bhh                                  # (3G, B)
            r = jax.nn.sigmoid(gx[0:G, :] + gh[0:G, :])
            z = jax.nn.sigmoid(gx[G:2 * G, :] + gh[G:2 * G, :])
            n = jnp.tanh(gx[2 * G:3 * G, :] + r * gh[2 * G:3 * G, :])
            h = (1.0 - z) * n + z * h
            hs_t.append(h)
        return h, hs_t

    h_final = []
    x_all = A('x_rt')                                              # (Cin, T*B)
    for l in range(nlayers):
        h_last, hs_t = run_layer(l, x_all)
        h_final.append(h_last)
        if l + 1 < nlayers:
            x_all = jnp.concatenate(hs_t, axis=1)                  # (G, T*B)

    # rnn feature (B*H, nlayers): rows = b*H + h, columns = layer index.
    blocks = []
    for b in range(B):
        cols = [hf[0:H, b:b + 1] for hf in h_final]
        blocks.append(jnp.concatenate(cols, axis=1) if nlayers > 1 else cols[0])
    rnn_feat = jnp.concatenate(blocks, axis=0) if B > 1 else blocks[0]
    rnn_fused = mm(rnn_feat, W('wrf')) + W('brf')                  # (B*E0, F)

    # ---------------- final fusion + BatchNorm1d (training batch stats) -----
    fin_in = jnp.concatenate([cnn_fused, rnn_fused], axis=1)       # (B*E0, 2F)
    emb = mm(fin_in, W('wfin')) + W('bfin')                        # (B*E0, E1)

    row_sum = jnp.sum(emb, axis=1, keepdims=True)                  # (B*E0, 1)
    row_sq = jnp.sum(emb * emb, axis=1, keepdims=True)
    s1 = row_sum[0:E0, :]
    s2 = row_sq[0:E0, :]
    for b in range(1, B):
        s1 = s1 + row_sum[b * E0:(b + 1) * E0, :]
        s2 = s2 + row_sq[b * E0:(b + 1) * E0, :]
    inv_n = 1.0 / float(B * E1)
    mean = s1 * inv_n
    var = s2 * inv_n - mean * mean                                 # biased var
    scale = jax.lax.rsqrt(var + 1e-5) * W('bn_g')                  # (E0, 1)
    shift = W('bn_b') - mean * scale
    scale_f = jnp.concatenate([scale] * B, axis=0) if B > 1 else scale
    shift_f = jnp.concatenate([shift] * B, axis=0) if B > 1 else shift
    emb_n = emb * scale_f + shift_f                                # (B*E0, E1)

    # ---------------- decoder (1x1 convs = block-diag matmuls) --------------
    h = jnp.maximum(mm(emb_n, W('l0a_w')) + W('l0a_b'), 0.0)       # (B*E0, 2E1)
    h = mm(W('l0c_w'), h) + W('l0c_b')                             # (B*2E0, 2E1)
    h = mm(h, W('l0b_w')) + W('l0b_b')                             # (B*2E0, 4E1)
    h = jnp.maximum(mm(W('ca_w'), h) + W('ca_b'), 0.0)             # (B*64, 4E1)
    h = mm(W('cb_w'), h) + W('cb_b')                               # (B*nout, 4E1)
    out_ref[...] = mm(h, W('l1_w')) + W('l1_b')                    # (B*nout, dates)


# ----------------------------------------------------------------------------
# Forward-pass builder: one pallas_call, two VMEM input DMAs
# ----------------------------------------------------------------------------
def make_forward(params, kernel_sizes, *, B, dates, ninputs, noutputs, nlayers,
                 emb):
    E0, E1 = emb
    w_buf, w_offs = pack_params(params, B=B, dates=dates, E0=E0, E1=E1,
                                nlayers=nlayers, kernel_sizes=kernel_sizes)
    a_offs, act_rows, act_width = make_act_offsets(B, ninputs, dates, kernel_sizes)

    kern = functools.partial(
        _pcrn_fused_kernel, kernel_sizes=tuple(kernel_sizes), B=B, dates=dates,
        E0=E0, E1=E1, nlayers=nlayers, w_offs=w_offs, a_offs=a_offs)

    call = pl.pallas_call(
        kern,
        out_shape=jax.ShapeDtypeStruct((B * noutputs, dates), jnp.float32),
        in_specs=[VMEM_SPEC, VMEM_SPEC],
        out_specs=VMEM_SPEC,
    )

    @jax.jit
    def forward(x):
        # x: (B, Cin, L) in the PyTorch NCW convention.
        x = x.astype(jnp.float32)
        x_cl = x.reshape(B * ninputs, dates)
        act = jnp.zeros((act_rows, act_width), jnp.float32)
        for i, k in enumerate(kernel_sizes):
            L1 = dates - k + 1
            im = jnp.concatenate([x_cl[:, j:j + L1] for j in range(k)], axis=0)
            r0, r, c = a_offs[f'x_im2col{i}']
            act = act.at[r0:r0 + r, 0:c].set(im)
        x_rt = jnp.transpose(x, (1, 2, 0)).reshape(ninputs, dates * B)
        r0, r, c = a_offs['x_rt']
        act = act.at[r0:r0 + r, 0:c].set(x_rt)
        out = call(act, w_buf)
        return out.reshape(B, noutputs, dates)

    return forward


# ----------------------------------------------------------------------------
# Pure-JAX reference (straight transcription of the torch module, train mode BN)
# ----------------------------------------------------------------------------
def reference_forward(p, x, kernel_sizes, emb, nlayers):
    E0, E1 = emb
    B, Cin, L = x.shape

    def conv1d(xx, w, b):
        k = w.shape[2]
        Lo = xx.shape[2] - k + 1
        y = sum(jnp.einsum('oi,bil->bol', w[:, :, j], xx[:, :, j:j + Lo])
                for j in range(k))
        return y + b[None, :, None]

    def avgpool5(xx):
        Lo = xx.shape[2] - 4
        return sum(xx[:, :, i:i + Lo] for i in range(5)) / 5.0

    feats = []
    for br, k in zip(p['cnn_branches'], kernel_sizes):
        y = jnp.maximum(conv1d(x, br['w1'], br['b1']), 0.0)
        feats.append(avgpool5(conv1d(y, br['w2'], br['b2'])))
    cnn_cat = jnp.concatenate(feats, axis=2)
    cnn_fused = jnp.einsum('bel,fl->bef', cnn_cat, p['cnn_fusion_w']) \
        + p['cnn_fusion_b'][None, None, :]

    x_seq = jnp.transpose(x, (0, 2, 1))
    hs = [jnp.zeros((B, E0), jnp.float32) for _ in range(nlayers)]
    for t in range(x_seq.shape[1]):
        inp = x_seq[:, t, :]
        for l in range(nlayers):
            g = p['gru_layers'][l]
            gi = inp @ g['w_ih'].T + g['b_ih'][None, :]
            gh = hs[l] @ g['w_hh'].T + g['b_hh'][None, :]
            r = jax.nn.sigmoid(gi[:, 0:E0] + gh[:, 0:E0])
            z = jax.nn.sigmoid(gi[:, E0:2 * E0] + gh[:, E0:2 * E0])
            n = jnp.tanh(gi[:, 2 * E0:] + r * gh[:, 2 * E0:])
            hs[l] = (1.0 - z) * n + z * hs[l]
            inp = hs[l]
    h_n = jnp.stack(hs, axis=0)                                   # (L, B, H)
    rnn_feat = jnp.transpose(h_n, (1, 2, 0))                      # (B, H, L)
    rnn_fused = jnp.einsum('bhl,fl->bhf', rnn_feat, p['rnn_fusion_w']) \
        + p['rnn_fusion_b'][None, None, :]

    fin = jnp.concatenate([cnn_fused, rnn_fused], axis=2)
    embd = jnp.einsum('bef,gf->beg', fin, p['final_w']) + p['final_b'][None, None, :]
    mean = jnp.mean(embd, axis=(0, 2), keepdims=True)
    var = jnp.mean((embd - mean) ** 2, axis=(0, 2), keepdims=True)
    embd = (embd - mean) * jax.lax.rsqrt(var + 1e-5)
    embd = embd * p['bn_gamma'][None, :, None] + p['bn_beta'][None, :, None]

    h = jnp.maximum(jnp.einsum('bes,ts->bet', embd, p['l0a_w'])
                    + p['l0a_b'][None, None, :], 0.0)
    h = jnp.einsum('oc,bcs->bos', p['l0c_w'][:, :, 0], h) + p['l0c_b'][None, :, None]
    h = jnp.einsum('bcs,ts->bct', h, p['l0b_w']) + p['l0b_b'][None, None, :]
    h = jnp.maximum(jnp.einsum('oc,bcs->bos', p['cnv_a_w'][:, :, 0], h)
                    + p['cnv_a_b'][None, :, None], 0.0)
    h = jnp.einsum('oc,bcs->bos', p['cnv_b_w'][:, :, 0], h) + p['cnv_b_b'][None, :, None]
    return jnp.einsum('bcs,ts->bct', h, p['l1_w']) + p['l1_b'][None, None, :]


# ----------------------------------------------------------------------------
if __name__ == "__main__":
    kernel_sizes = get_kernel_sizes(DATES)               # -> [1, 5] for DATES=16

    key = jax.random.PRNGKey(0)
    k_params, k_x = jax.random.split(key)
    params = make_params(k_params, DATES, NINPUTS, NOUTPUTS, HIDDENS, NLAYERS,
                         FUSIONS, EMB, kernel_sizes)
    x = jax.random.normal(k_x, (BATCH, NINPUTS, DATES), jnp.float32)

    forward = make_forward(params, kernel_sizes, B=BATCH, dates=DATES,
                           ninputs=NINPUTS, noutputs=NOUTPUTS, nlayers=NLAYERS,
                           emb=EMB)
    out = jax.block_until_ready(forward(x))
    assert out.shape == (BATCH, NOUTPUTS, DATES), out.shape
    assert bool(jnp.all(jnp.isfinite(out)))

    # Correctness check against a pure-JAX transcription of the torch module.
    # (BatchNorm uses training-mode batch statistics, as a fresh torch module.)
    with jax.default_matmul_precision('highest'):
        ref = jax.jit(lambda xx: reference_forward(params, xx, kernel_sizes,
                                                   EMB, NLAYERS))(x)
    ref = jax.block_until_ready(ref)
    max_err = float(jnp.max(jnp.abs(out - ref)))
    assert max_err < 2e-2, f"kernel/reference mismatch: max abs err = {max_err}"

    print("KERNEL_OK")
</pallas_src>

<mosaic_0001>
module attributes {stable_mosaic.version = 11 : i64} {
  func.func @_pcrn_fused_kernel(%arg0: memref<56x32xf32, #tpu.memory_space<vmem>>, %arg1: memref<760x256xf32, #tpu.memory_space<vmem>>, %arg2: memref<6x16xf32, #tpu.memory_space<vmem>>) attributes {dimension_semantics = [], scalar_prefetch = 0 : i64, scratch_operands = 0 : i64, tpu.core_type = #tpu.core_type<tc>} {
    %c0 = arith.constant 0 : index
    %c0_0 = arith.constant 0 : index
    %0 = vector.load %arg0[%c0, %c0_0] : memref<56x32xf32, #tpu.memory_space<vmem>>, vector<8x16xf32>
    %c0_1 = arith.constant 0 : index
    %c0_2 = arith.constant 0 : index
    %1 = vector.load %arg1[%c0_1, %c0_2] : memref<760x256xf32, #tpu.memory_space<vmem>>, vector<16x8xf32>
    %cst = arith.constant dense<0.000000e+00> : vector<16x16xf32>
    %2 = tpu.matmul %1, %0, %cst {dimension_numbers = #tpu.dot_dimension_numbers<[1], [0], [0], [1], [0, 0, 1, 1], [], []>} : vector<16x8xf32>, vector<8x16xf32>, vector<16x16xf32> -> vector<16x16xf32>
    %c16 = arith.constant 16 : index
    %c0_3 = arith.constant 0 : index
    %3 = vector.load %arg1[%c16, %c0_3] : memref<760x256xf32, #tpu.memory_space<vmem>>, vector<16x16xf32>
    %4 = arith.addf %2, %3 : vector<16x16xf32>
    %cst_4 = arith.constant 0.000000e+00 : f32
    %5 = vector.broadcast %cst_4 : f32 to vector<16x16xf32>
    %6 = arith.maximumf %4, %5 : vector<16x16xf32>
    %7 = vector.extract_strided_slice %6 {offsets = [0, 0], sizes = [16, 12], strides = [1, 1]} : vector<16x16xf32> to vector<16x12xf32>
    %8 = vector.extract_strided_slice %6 {offsets = [0, 1], sizes = [16, 12], strides = [1, 1]} : vector<16x16xf32> to vector<16x12xf32>
    %9 = vector.extract_strided_slice %6 {offsets = [0, 2], sizes = [16, 12], strides = [1, 1]} : vector<16x16xf32> to vector<16x12xf32>
    %10 = vector.extract_strided_slice %6 {offsets = [0, 3], sizes = [16, 12], strides = [1, 1]} : vector<16x16xf32> to vector<16x12xf32>
    %11 = vector.extract_strided_slice %6 {offsets = [0, 4], sizes = [16, 12], strides = [1, 1]} : vector<16x16xf32> to vector<16x12xf32>
    %12 = tpu.concatenate %7, %8, %9, %10, %11 in 0 : vector<16x12xf32>, vector<16x12xf32>, vector<16x12xf32>, vector<16x12xf32>, vector<16x12xf32> -> vector<80x12xf32>
    %c32 = arith.constant 32 : index
    %c0_5 = arith.constant 0 : index
    %13 = vector.load %arg1[%c32, %c0_5] : memref<760x256xf32, #tpu.memory_space<vmem>>, vector<8x80xf32>
    %cst_6 = arith.constant dense<0.000000e+00> : vector<8x12xf32>
    %14 = tpu.matmul %13, %12, %cst_6 {dimension_numbers = #tpu.dot_dimension_numbers<[1], [0], [0], [1], [0, 0, 1, 1], [], []>} : vector<8x80xf32>, vector<80x12xf32>, vector<8x12xf32> -> vector<8x12xf32>
    %c40 = arith.constant 40 : index
    %c0_7 = arith.constant 0 : index
    %15 = vector.load %arg1[%c40, %c0_7] : memref<760x256xf32, #tpu.memory_space<vmem>>, vector<8x12xf32>
    %16 = arith.addf %14, %15 : vector<8x12xf32>
    %c8 = arith.constant 8 : index
    %c0_8 = arith.constant 0 : index
    %17 = vector.load %arg0[%c8, %c0_8] : memref<56x32xf32, #tpu.memory_space<vmem>>, vector<40x12xf32>
    %c48 = arith.constant 48 : index
    %c0_9 = arith.constant 0 : index
    %18 = vector.load %arg1[%c48, %c0_9] : memref<760x256xf32, #tpu.memory_space<vmem>>, vector<16x40xf32>
    %cst_10 = arith.constant dense<0.000000e+00> : vector<16x12xf32>
    %19 = tpu.matmul %18, %17, %cst_10 {dimension_numbers = #tpu.dot_dimension_numbers<[1], [0], [0], [1], [0, 0, 1, 1], [], []>} : vector<16x40xf32>, vector<40x12xf32>, vector<16x12xf32> -> vector<16x12xf32>
    %c64 = arith.constant 64 : index
    %c0_11 = arith.constant 0 : index
    %20 = vector.load %arg1[%c64, %c0_11] : memref<760x256xf32, #tpu.memory_space<vmem>>, vector<16x12xf32>
    %21 = arith.addf %19, %20 : vector<16x12xf32>
    %cst_12 = arith.constant 0.000000e+00 : f32
    %22 = vector.broadcast %cst_12 : f32 to vector<16x12xf32>
    %23 = arith.maximumf %21, %22 : vector<16x12xf32>
    %24 = vector.extract_strided_slice %23 {offsets = [0, 0], sizes = [16, 4], strides = [1, 1]} : vector<16x12xf32> to vector<16x4xf32>
    %25 = vector.extract_strided_slice %23 {offsets = [0, 1], sizes = [16, 4], strides = [1, 1]} : vector<16x12xf32> to vector<16x4xf32>
    %26 = vector.extract_strided_slice %23 {offsets = [0, 2], sizes = [16, 4], strides = [1, 1]} : vector<16x12xf32> to vector<16x4xf32>
    %27 = vector.extract_strided_slice %23 {offsets = [0, 3], sizes = [16, 4], strides = [1, 1]} : vector<16x12xf32> to vector<16x4xf32>
    %28 = vector.extract_strided_slice %23 {offsets = [0, 4], sizes = [16, 4], strides = [1, 1]} : vector<16x12xf32> to vector<16x4xf32>
    %29 = vector.extract_strided_slice %23 {offsets = [0, 5], sizes = [16, 4], strides = [1, 1]} : vector<16x12xf32> to vector<16x4xf32>
    %30 = vector.extract_strided_slice %23 {offsets = [0, 6], sizes = [16, 4], strides = [1, 1]} : vector<16x12xf32> to vector<16x4xf32>
    %31 = vector.extract_strided_slice %23 {offsets = [0, 7], sizes = [16, 4], strides = [1, 1]} : vector<16x12xf32> to vector<16x4xf32>
    %32 = vector.extract_strided_slice %23 {offsets = [0, 8], sizes = [16, 4], strides = [1, 1]} : vector<16x12xf32> to vector<16x4xf32>
    %33 = tpu.concatenate %24, %25, %26, %27, %28, %29, %30, %31, %32 in 0 : vector<16x4xf32>, vector<16x4xf32>, vector<16x4xf32>, vector<16x4xf32>, vector<16x4xf32>, vector<16x4xf32>, vector<16x4xf32>, vector<16x4xf32>, vector<16x4xf32> -> vector<144x4xf32>
    %c80 = arith.constant 80 : index
    %c0_13 = arith.constant 0 : index
    %34 = vector.load %arg1[%c80, %c0_13] : memref<760x256xf32, #tpu.memory_space<vmem>>, vector<8x144xf32>
    %cst_14 = arith.constant dense<0.000000e+00> : vector<8x4xf32>
    %35 = tpu.matmul %34, %33, %cst_14 {dimension_numbers = #tpu.dot_dimension_numbers<[1], [0], [0], [1], [0, 0, 1, 1], [], []>} : vector<8x144xf32>, vector<144x4xf32>, vector<8x4xf32> -> vector<8x4xf32>
    %c88 = arith.constant 88 : index
    %c0_15 = arith.constant 0 : index
    %36 = vector.load %arg1[%c88, %c0_15] : memref<760x256xf32, #tpu.memory_space<vmem>>, vector<8x4xf32>
    %37 = arith.addf %35, %36 : vector<8x4xf32>
    %38 = tpu.concatenate %16, %37 in 1 : vector<8x12xf32>, vector<8x4xf32> -> vector<8x16xf32>
    %c288 = arith.constant 288 : index
    %c0_16 = arith.constant 0 : index
    %39 = vector.load %arg1[%c288, %c0_16] : memref<760x256xf32, #tpu.memory_space<vmem>>, vector<16x8xf32>
    %cst_17 = arith.constant dense<0.000000e+00> : vector<8x8xf32>
    %40 = tpu.matmul %38, %39, %cst_17 {dimension_numbers = #tpu.dot_dimension_numbers<[1], [0], [0], [1], [0, 0, 1, 1], [], []>} : vector<8x16xf32>, vector<16x8xf32>, vector<8x8xf32> -> vector<8x8xf32>
    %c304 = arith.constant 304 : index
    %c0_18 = arith.constant 0 : index
    %41 = vector.load %arg1[%c304, %c0_18] : memref<760x256xf32, #tpu.memory_space<vmem>>, vector<8x8xf32>
    %42 = arith.addf %40, %41 : vector<8x8xf32>
    %c48_19 = arith.constant 48 : index
    %c0_20 = arith.constant 0 : index
    %43 = vector.load %arg0[%c48_19, %c0_20] : memref<56x32xf32, #tpu.memory_space<vmem>>, vector<4x32xf32>
    %c96 = arith.constant 96 : index
    %c0_21 = arith.constant 0 : index
    %44 = vector.load %arg1[%c96, %c0_21] : memref<760x256xf32, #tpu.memory_space<vmem>>, vector<24x4xf32>
    %cst_22 = arith.constant dense<0.000000e+00> : vector<24x32xf32>
    %45 = tpu.matmul %44, %43, %cst_22 {dimension_numbers = #tpu.dot_dimension_numbers<[1], [0], [0], [1], [0, 0, 1, 1], [], []>} : vector<24x4xf32>, vector<4x32xf32>, vector<24x32xf32> -> vector<24x32xf32>
    %c144 = arith.constant 144 : index
    %c0_23 = arith.constant 0 : index
    %46 = vector.load %arg1[%c144, %c0_23] : memref<760x256xf32, #tpu.memory_space<vmem>>, vector<24x32xf32>
    %47 = arith.addf %45, %46 : vector<24x32xf32>
    %c120 = arith.constant 120 : index
    %c0_24 = arith.constant 0 : index
    %48 = vector.load %arg1[%c120, %c0_24] : memref<760x256xf32, #tpu.memory_space<vmem>>, vector<24x8xf32>
    %c168 = arith.constant 168 : index
    %c0_25 = arith.constant 0 : index
    %49 = vector.load %arg1[%c168, %c0_25] : memref<760x256xf32, #tpu.memory_space<vmem>>, vector<24x2xf32>
    %cst_26 = arith.constant 0.000000e+00 : f32
    %50 = vector.broadcast %cst_26 : f32 to vector<8x2xf32>
    %51 = vector.extract_strided_slice %47 {offsets = [0, 0], sizes = [24, 2], strides = [1, 1]} : vector<24x32xf32> to vector<24x2xf32>
    %cst_27 = arith.constant dense<0.000000e+00> : vector<24x2xf32>
    %52 = tpu.matmul %48, %50, %cst_27 {dimension_numbers = #tpu.dot_dimension_numbers<[1], [0], [0], [1], [0, 0, 1, 1], [], []>} : vector<24x8xf32>, vector<8x2xf32>, vector<24x2xf32> -> vector<24x2xf32>
    %53 = arith.addf %52, %49 : vector<24x2xf32>
    %54 = vector.extract_strided_slice %51 {offsets = [0, 0], sizes = [8, 2], strides = [1, 1]} : vector<24x2xf32> to vector<8x2xf32>
    %55 = vector.extract_strided_slice %53 {offsets = [0, 0], sizes = [8, 2], strides = [1, 1]} : vector<24x2xf32> to vector<8x2xf32>
    %56 = arith.addf %54, %55 : vector<8x2xf32>
    %57 = arith.negf %56 : vector<8x2xf32>
    %58 = math.exp %57 : vector<8x2xf32>
    %cst_28 = arith.constant 1.000000e+00 : f32
    %59 = vector.broadcast %cst_28 : f32 to vector<8x2xf32>
    %60 = arith.addf %59, %58 : vector<8x2xf32>
    %61 = arith.divf %59, %60 : vector<8x2xf32>
    %62 = vector.extract_strided_slice %51 {offsets = [8, 0], sizes = [8, 2], strides = [1, 1]} : vector<24x2xf32> to vector<8x2xf32>
    %63 = vector.extract_strided_slice %53 {offsets = [8, 0], sizes = [8, 2], strides = [1, 1]} : vector<24x2xf32> to vector<8x2xf32>
    %64 = arith.addf %62, %63 : vector<8x2xf32>
    %65 = arith.negf %64 : vector<8x2xf32>
    %66 = math.exp %65 : vector<8x2xf32>
    %cst_29 = arith.constant 1.000000e+00 : f32
    %67 = vector.broadcast %cst_29 : f32 to vector<8x2xf32>
    %68 = arith.addf %67, %66 : vector<8x2xf32>
    %69 = arith.divf %67, %68 : vector<8x2xf32>
    %70 = vector.extract_strided_slice %51 {offsets = [16, 0], sizes = [8, 2], strides = [1, 1]} : vector<24x2xf32> to vector<8x2xf32>
    %71 = vector.extract_strided_slice %53 {offsets = [16, 0], sizes = [8, 2], strides = [1, 1]} : vector<24x2xf32> to vector<8x2xf32>
    %72 = arith.mulf %61, %71 : vector<8x2xf32>
    %73 = arith.addf %70, %72 : vector<8x2xf32>
    %74 = math.tanh %73 : vector<8x2xf32>
    %cst_30 = arith.constant 1.000000e+00 : f32
    %75 = vector.broadcast %cst_30 : f32 to vector<8x2xf32>
    %76 = arith.subf %75, %69 : vector<8x2xf32>
    %77 = arith.mulf %76, %74 : vector<8x2xf32>
    %78 = arith.mulf %69, %50 : vector<8x2xf32>
    %79 = arith.addf %77, %78 : vector<8x2xf32>
    %80 = vector.extract_strided_slice %47 {offsets = [0, 2], sizes = [24, 2], strides = [1, 1]} : vector<24x32xf32> to vector<24x2xf32>
    %cst_31 = arith.constant dense<0.000000e+00> : vector<24x2xf32>
    %81 = tpu.matmul %48, %79, %cst_31 {dimension_numbers = #tpu.dot_dimension_numbers<[1], [0], [0], [1], [0, 0, 1, 1], [], []>} : vector<24x8xf32>, vector<8x2xf32>, vector<24x2xf32> -> vector<24x2xf32>
    %82 = arith.addf %81, %49 : vector<24x2xf32>
    %83 = vector.extract_strided_slice %80 {offsets = [0, 0], sizes = [8, 2], strides = [1, 1]} : vector<24x2xf32> to vector<8x2xf32>
    %84 = vector.extract_strided_slice %82 {offsets = [0, 0], sizes = [8, 2], strides = [1, 1]} : vector<24x2xf32> to vector<8x2xf32>
    %85 = arith.addf %83, %84 : vector<8x2xf32>
    %86 = arith.negf %85 : vector<8x2xf32>
    %87 = math.exp %86 : vector<8x2xf32>
    %cst_32 = arith.constant 1.000000e+00 : f32
    %88 = vector.broadcast %cst_32 : f32 to vector<8x2xf32>
    %89 = arith.addf %88, %87 : vector<8x2xf32>
    %90 = arith.divf %88, %89 : vector<8x2xf32>
    %91 = vector.extract_strided_slice %80 {offsets = [8, 0], sizes = [8, 2], strides = [1, 1]} : vector<24x2xf32> to vector<8x2xf32>
    %92 = vector.extract_strided_slice %82 {offsets = [8, 0], sizes = [8, 2], strides = [1, 1]} : vector<24x2xf32> to vector<8x2xf32>
    %93 = arith.addf %91, %92 : vector<8x2xf32>
    %94 = arith.negf %93 : vector<8x2xf32>
    %95 = math.exp %94 : vector<8x2xf32>
    %cst_33 = arith.constant 1.000000e+00 : f32
    %96 = vector.broadcast %cst_33 : f32 to vector<8x2xf32>
    %97 = arith.addf %96, %95 : vector<8x2xf32>
    %98 = arith.divf %96, %97 : vector<8x2xf32>
    %99 = vector.extract_strided_slice %80 {offsets = [16, 0], sizes = [8, 2], strides = [1, 1]} : vector<24x2xf32> to vector<8x2xf32>
    %100 = vector.extract_strided_slice %82 {offsets = [16, 0], sizes = [8, 2], strides = [1, 1]} : vector<24x2xf32> to vector<8x2xf32>
    %101 = arith.mulf %90, %100 : vector<8x2xf32>
    %102 = arith.addf %99, %101 : vector<8x2xf32>
    %103 = math.tanh %102 : vector<8x2xf32>
    %cst_34 = arith.constant 1.000000e+00 : f32
    %104 = vector.broadcast %cst_34 : f32 to vector<8x2xf32>
    %105 = arith.subf %104, %98 : vector<8x2xf32>
    %106 = arith.mulf %105, %103 : vector<8x2xf32>
    %107 = arith.mulf %98, %79 : vector<8x2xf32>
    %108 = arith.addf %106, %107 : vector<8x2xf32>
    %109 = vector.extract_strided_slice %47 {offsets = [0, 4], sizes = [24, 2], strides = [1, 1]} : vector<24x32xf32> to vector<24x2xf32>
    %cst_35 = arith.constant dense<0.000000e+00> : vector<24x2xf32>
    %110 = tpu.matmul %48, %108, %cst_35 {dimension_numbers = #tpu.dot_dimension_numbers<[1], [0], [0], [1], [0, 0, 1, 1], [], []>} : vector<24x8xf32>, vector<8x2xf32>, vector<24x2xf32> -> vector<24x2xf32>
    %111 = arith.addf %110, %49 : vector<24x2xf32>
    %112 = vector.extract_strided_slice %109 {offsets = [0, 0], sizes = [8, 2], strides = [1, 1]} : vector<24x2xf32> to vector<8x2xf32>
    %113 = vector.extract_strided_slice %111 {offsets = [0, 0], sizes = [8, 2], strides = [1, 1]} : vector<24x2xf32> to vector<8x2xf32>
    %114 = arith.addf %112, %113 : vector<8x2xf32>
    %115 = arith.negf %114 : vector<8x2xf32>
    %116 = math.exp %115 : vector<8x2xf32>
    %cst_36 = arith.constant 1.000000e+00 : f32
    %117 = vector.broadcast %cst_36 : f32 to vector<8x2xf32>
    %118 = arith.addf %117, %116 : vector<8x2xf32>
    %119 = arith.divf %117, %118 : vector<8x2xf32>
    %120 = vector.extract_strided_slice %109 {offsets = [8, 0], sizes = [8, 2], strides = [1, 1]} : vector<24x2xf32> to vector<8x2xf32>
    %121 = vector.extract_strided_slice %111 {offsets = [8, 0], sizes = [8, 2], strides = [1, 1]} : vector<24x2xf32> to vector<8x2xf32>
    %122 = arith.addf %120, %121 : vector<8x2xf32>
    %123 = arith.negf %122 : vector<8x2xf32>
    %124 = math.exp %123 : vector<8x2xf32>
    %cst_37 = arith.constant 1.000000e+00 : f32
    %125 = vector.broadcast %cst_37 : f32 to vector<8x2xf32>
    %126 = arith.addf %125, %124 : vector<8x2xf32>
    %127 = arith.divf %125, %126 : vector<8x2xf32>
    %128 = vector.extract_strided_slice %109 {offsets = [16, 0], sizes = [8, 2], strides = [1, 1]} : vector<24x2xf32> to vector<8x2xf32>
    %129 = vector.extract_strided_slice %111 {offsets = [16, 0], sizes = [8, 2], strides = [1, 1]} : vector<24x2xf32> to vector<8x2xf32>
    %130 = arith.mulf %119, %129 : vector<8x2xf32>
    %131 = arith.addf %128, %130 : vector<8x2xf32>
    %132 = math.tanh %131 : vector<8x2xf32>
    %cst_38 = arith.constant 1.000000e+00 : f32
    %133 = vector.broadcast %cst_38 : f32 to vector<8x2xf32>
    %134 = arith.subf %133, %127 : vector<8x2xf32>
    %135 = arith.mulf %134, %132 : vector<8x2xf32>
    %136 = arith.mulf %127, %108 : vector<8x2xf32>
    %137 = arith.addf %135, %136 : vector<8x2xf32>
    %138 = vector.extract_strided_slice %47 {offsets = [0, 6], sizes = [24, 2], strides = [1, 1]} : vector<24x32xf32> to vector<24x2xf32>
    %cst_39 = arith.constant dense<0.000000e+00> : vector<24x2xf32>
    %139 = tpu.matmul %48, %137, %cst_39 {dimension_numbers = #tpu.dot_dimension_numbers<[1], [0], [0], [1], [0, 0, 1, 1], [], []>} : vector<24x8xf32>, vector<8x2xf32>, vector<24x2xf32> -> vector<24x2xf32>
    %140 = arith.addf %139, %49 : vector<24x2xf32>
    %141 = vector.extract_strided_slice %138 {offsets = [0, 0], sizes = [8, 2], strides = [1, 1]} : vector<24x2xf32> to vector<8x2xf32>
    %142 = vector.extract_strided_slice %140 {offsets = [0, 0], sizes = [8, 2], strides = [1, 1]} : vector<24x2xf32> to vector<8x2xf32>
    %143 = arith.addf %141, %142 : vector<8x2xf32>
    %144 = arith.negf %143 : vector<8x2xf32>
    %145 = math.exp %144 : vector<8x2xf32>
    %cst_40 = arith.constant 1.000000e+00 : f32
    %146 = vector.broadcast %cst_40 : f32 to vector<8x2xf32>
    %147 = arith.addf %146, %145 : vector<8x2xf32>
    %148 = arith.divf %146, %147 : vector<8x2xf32>
    %149 = vector.extract_strided_slice %138 {offsets = [8, 0], sizes = [8, 2], strides = [1, 1]} : vector<24x2xf32> to vector<8x2xf32>
    %150 = vector.extract_strided_slice %140 {offsets = [8, 0], sizes = [8, 2], strides = [1, 1]} : vector<24x2xf32> to vector<8x2xf32>
    %151 = arith.addf %149, %150 : vector<8x2xf32>
    %152 = arith.negf %151 : vector<8x2xf32>
    %153 = math.exp %152 : vector<8x2xf32>
    %cst_41 = arith.constant 1.000000e+00 : f32
    %154 = vector.broadcast %cst_41 : f32 to vector<8x2xf32>
    %155 = arith.addf %154, %153 : vector<8x2xf32>
    %156 = arith.divf %154, %155 : vector<8x2xf32>
    %157 = vector.extract_strided_slice %138 {offsets = [16, 0], sizes = [8, 2], strides = [1, 1]} : vector<24x2xf32> to vector<8x2xf32>
    %158 = vector.extract_strided_slice %140 {offsets = [16, 0], sizes = [8, 2], strides = [1, 1]} : vector<24x2xf32> to vector<8x2xf32>
    %159 = arith.mulf %148, %158 : vector<8x2xf32>
    %160 = arith.addf %157, %159 : vector<8x2xf32>
    %161 = math.tanh %160 : vector<8x2xf32>
    %cst_42 = arith.constant 1.000000e+00 : f32
    %162 = vector.broadcast %cst_42 : f32 to vector<8x2xf32>
    %163 = arith.subf %162, %156 : vector<8x2xf32>
    %164 = arith.mulf %163, %161 : vector<8x2xf32>
    %165 = arith.mulf %156, %137 : vector<8x2xf32>
    %166 = arith.addf %164, %165 : vector<8x2xf32>
    %167 = vector.extract_strided_slice %47 {offsets = [0, 8], sizes = [24, 2], strides = [1, 1]} : vector<24x32xf32> to vector<24x2xf32>
    %cst_43 = arith.constant dense<0.000000e+00> : vector<24x2xf32>
    %168 = tpu.matmul %48, %166, %cst_43 {dimension_numbers = #tpu.dot_dimension_numbers<[1], [0], [0], [1], [0, 0, 1, 1], [], []>} : vector<24x8xf32>, vector<8x2xf32>, vector<24x2xf32> -> vector<24x2xf32>
    %169 = arith.addf %168, %49 : vector<24x2xf32>
    %170 = vector.extract_strided_slice %167 {offsets = [0, 0], sizes = [8, 2], strides = [1, 1]} : vector<24x2xf32> to vector<8x2xf32>
    %171 = vector.extract_strided_slice %169 {offsets = [0, 0], sizes = [8, 2], strides = [1, 1]} : vector<24x2xf32> to vector<8x2xf32>
    %172 = arith.addf %170, %171 : vector<8x2xf32>
    %173 = arith.negf %172 : vector<8x2xf32>
    %174 = math.exp %173 : vector<8x2xf32>
    %cst_44 = arith.constant 1.000000e+00 : f32
    %175 = vector.broadcast %cst_44 : f32 to vector<8x2xf32>
    %176 = arith.addf %175, %174 : vector<8x2xf32>
    %177 = arith.divf %175, %176 : vector<8x2xf32>
    %178 = vector.extract_strided_slice %167 {offsets = [8, 0], sizes = [8, 2], strides = [1, 1]} : vector<24x2xf32> to vector<8x2xf32>
    %179 = vector.extract_strided_slice %169 {offsets = [8, 0], sizes = [8, 2], strides = [1, 1]} : vector<24x2xf32> to vector<8x2xf32>
    %180 = arith.addf %178, %179 : vector<8x2xf32>
    %181 = arith.negf %180 : vector<8x2xf32>
    %182 = math.exp %181 : vector<8x2xf32>
    %cst_45 = arith.constant 1.000000e+00 : f32
    %183 = vector.broadcast %cst_45 : f32 to vector<8x2xf32>
    %184 = arith.addf %183, %182 : vector<8x2xf32>
    %185 = arith.divf %183, %184 : vector<8x2xf32>
    %186 = vector.extract_strided_slice %167 {offsets = [16, 0], sizes = [8, 2], strides = [1, 1]} : vector<24x2xf32> to vector<8x2xf32>
    %187 = vector.extract_strided_slice %169 {offsets = [16, 0], sizes = [8, 2], strides = [1, 1]} : vector<24x2xf32> to vector<8x2xf32>
    %188 = arith.mulf %177, %187 : vector<8x2xf32>
    %189 = arith.addf %186, %188 : vector<8x2xf32>
    %190 = math.tanh %189 : vector<8x2xf32>
    %cst_46 = arith.constant 1.000000e+00 : f32
    %191 = vector.broadcast %cst_46 : f32 to vector<8x2xf32>
    %192 = arith.subf %191, %185 : vector<8x2xf32>
    %193 = arith.mulf %192, %190 : vector<8x2xf32>
    %194 = arith.mulf %185, %166 : vector<8x2xf32>
    %195 = arith.addf %193, %194 : vector<8x2xf32>
    %196 = vector.extract_strided_slice %47 {offsets = [0, 10], sizes = [24, 2], strides = [1, 1]} : vector<24x32xf32> to vector<24x2xf32>
    %cst_47 = arith.constant dense<0.000000e+00> : vector<24x2xf32>
    %197 = tpu.matmul %48, %195, %cst_47 {dimension_numbers = #tpu.dot_dimension_numbers<[1], [0], [0], [1], [0, 0, 1, 1], [], []>} : vector<24x8xf32>, vector<8x2xf32>, vector<24x2xf32> -> vector<24x2xf32>
    %198 = arith.addf %197, %49 : vector<24x2xf32>
    %199 = vector.extract_strided_slice %196 {offsets = [0, 0], sizes = [8, 2], strides = [1, 1]} : vector<24x2xf32> to vector<8x2xf32>
    %200 = vector.extract_strided_slice %198 {offsets = [0, 0], sizes = [8, 2], strides = [1, 1]} : vector<24x2xf32> to vector<8x2xf32>
    %201 = arith.addf %199, %200 : vector<8x2xf32>
    %202 = arith.negf %201 : vector<8x2xf32>
    %203 = math.exp %202 : vector<8x2xf32>
    %cst_48 = arith.constant 1.000000e+00 : f32
    %204 = vector.broadcast %cst_48 : f32 to vector<8x2xf32>
    %205 = arith.addf %204, %203 : vector<8x2xf32>
    %206 = arith.divf %204, %205 : vector<8x2xf32>
    %207 = vector.extract_strided_slice %196 {offsets = [8, 0], sizes = [8, 2], strides = [1, 1]} : vector<24x2xf32> to vector<8x2xf32>
    %208 = vector.extract_strided_slice %198 {offsets = [8, 0], sizes = [8, 2], strides = [1, 1]} : vector<24x2xf32> to vector<8x2xf32>
    %209 = arith.addf %207, %208 : vector<8x2xf32>
    %210 = arith.negf %209 : vector<8x2xf32>
    %211 = math.exp %210 : vector<8x2xf32>
    %cst_49 = arith.constant 1.000000e+00 : f32
    %212 = vector.broadcast %cst_49 : f32 to vector<8x2xf32>
    %213 = arith.addf %212, %211 : vector<8x2xf32>
    %214 = arith.divf %212, %213 : vector<8x2xf32>
    %215 = vector.extract_strided_slice %196 {offsets = [16, 0], sizes = [8, 2], strides = [1, 1]} : vector<24x2xf32> to vector<8x2xf32>
    %216 = vector.extract_strided_slice %198 {offsets = [16, 0], sizes = [8, 2], strides = [1, 1]} : vector<24x2xf32> to vector<8x2xf32>
    %217 = arith.mulf %206, %216 : vector<8x2xf32>
    %218 = arith.addf %215, %217 : vector<8x2xf32>
    %219 = math.tanh %218 : vector<8x2xf32>
    %cst_50 = arith.constant 1.000000e+00 : f32
    %220 = vector.broadcast %cst_50 : f32 to vector<8x2xf32>
    %221 = arith.subf %220, %214 : vector<8x2xf32>
    %222 = arith.mulf %221, %219 : vector<8x2xf32>
    %223 = arith.mulf %214, %195 : vector<8x2xf32>
    %224 = arith.addf %222, %223 : vector<8x2xf32>
    %225 = vector.extract_strided_slice %47 {offsets = [0, 12], sizes = [24, 2], strides = [1, 1]} : vector<24x32xf32> to vector<24x2xf32>
    %cst_51 = arith.constant dense<0.000000e+00> : vector<24x2xf32>
    %226 = tpu.matmul %48, %224, %cst_51 {dimension_numbers = #tpu.dot_dimension_numbers<[1], [0], [0], [1], [0, 0, 1, 1], [], []>} : vector<24x8xf32>, vector<8x2xf32>, vector<24x2xf32> -> vector<24x2xf32>
    %227 = arith.addf %226, %49 : vector<24x2xf32>
    %228 = vector.extract_strided_slice %225 {offsets = [0, 0], sizes = [8, 2], strides = [1, 1]} : vector<24x2xf32> to vector<8x2xf32>
    %229 = vector.extract_strided_slice %227 {offsets = [0, 0], sizes = [8, 2], strides = [1, 1]} : vector<24x2xf32> to vector<8x2xf32>
    %230 = arith.addf %228, %229 : vector<8x2xf32>
    %231 = arith.negf %230 : vector<8x2xf32>
    %232 = math.exp %231 : vector<8x2xf32>
    %cst_52 = arith.constant 1.000000e+00 : f32
    %233 = vector.broadcast %cst_52 : f32 to vector<8x2xf32>
    %234 = arith.addf %233, %232 : vector<8x2xf32>
    %235 = arith.divf %233, %234 : vector<8x2xf32>
    %236 = vector.extract_strided_slice %225 {offsets = [8, 0], sizes = [8, 2], strides = [1, 1]} : vector<24x2xf32> to vector<8x2xf32>
    %237 = vector.extract_strided_slice %227 {offsets = [8, 0], sizes = [8, 2], strides = [1, 1]} : vector<24x2xf32> to vector<8x2xf32>
    %238 = arith.addf %236, %237 : vector<8x2xf32>
    %239 = arith.negf %238 : vector<8x2xf32>
    %240 = math.exp %239 : vector<8x2xf32>
    %cst_53 = arith.constant 1.000000e+00 : f32
    %241 = vector.broadcast %cst_53 : f32 to vector<8x2xf32>
    %242 = arith.addf %241, %240 : vector<8x2xf32>
    %243 = arith.divf %241, %242 : vector<8x2xf32>
    %244 = vector.extract_strided_slice %225 {offsets = [16, 0], sizes = [8, 2], strides = [1, 1]} : vector<24x2xf32> to vector<8x2xf32>
    %245 = vector.extract_strided_slice %227 {offsets = [16, 0], sizes = [8, 2], strides = [1, 1]} : vector<24x2xf32> to vector<8x2xf32>
    %246 = arith.mulf %235, %245 : vector<8x2xf32>
    %247 = arith.addf %244, %246 : vector<8x2xf32>
    %248 = math.tanh %247 : vector<8x2xf32>
    %cst_54 = arith.constant 1.000000e+00 : f32
    %249 = vector.broadcast %cst_54 : f32 to vector<8x2xf32>
    %250 = arith.subf %249, %243 : vector<8x2xf32>
    %251 = arith.mulf %250, %248 : vector<8x2xf32>
    %252 = arith.mulf %243, %224 : vector<8x2xf32>
    %253 = arith.addf %251, %252 : vector<8x2xf32>
    %254 = vector.extract_strided_slice %47 {offsets = [0, 14], sizes = [24, 2], strides = [1, 1]} : vector<24x32xf32> to vector<24x2xf32>
    %cst_55 = arith.constant dense<0.000000e+00> : vector<24x2xf32>
    %255 = tpu.matmul %48, %253, %cst_55 {dimension_numbers = #tpu.dot_dimension_numbers<[1], [0], [0], [1], [0, 0, 1, 1], [], []>} : vector<24x8xf32>, vector<8x2xf32>, vector<24x2xf32> -> vector<24x2xf32>
    %256 = arith.addf %255, %49 : vector<24x2xf32>
    %257 = vector.extract_strided_slice %254 {offsets = [0, 0], sizes = [8, 2], strides = [1, 1]} : vector<24x2xf32> to vector<8x2xf32>
    %258 = vector.extract_strided_slice %256 {offsets = [0, 0], sizes = [8, 2], strides = [1, 1]} : vector<24x2xf32> to vector<8x2xf32>
    %259 = arith.addf %257, %258 : vector<8x2xf32>
    %260 = arith.negf %259 : vector<8x2xf32>
    %261 = math.exp %260 : vector<8x2xf32>
    %cst_56 = arith.constant 1.000000e+00 : f32
    %262 = vector.broadcast %cst_56 : f32 to vector<8x2xf32>
    %263 = arith.addf %262, %261 : vector<8x2xf32>
    %264 = arith.divf %262, %263 : vector<8x2xf32>
    %265 = vector.extract_strided_slice %254 {offsets = [8, 0], sizes = [8, 2], strides = [1, 1]} : vector<24x2xf32> to vector<8x2xf32>
    %266 = vector.extract_strided_slice %256 {offsets = [8, 0], sizes = [8, 2], strides = [1, 1]} : vector<24x2xf32> to vector<8x2xf32>
    %267 = arith.addf %265, %266 : vector<8x2xf32>
    %268 = arith.negf %267 : vector<8x2xf32>
    %269 = math.exp %268 : vector<8x2xf32>
    %cst_57 = arith.constant 1.000000e+00 : f32
    %270 = vector.broadcast %cst_57 : f32 to vector<8x2xf32>
    %271 = arith.addf %270, %269 : vector<8x2xf32>
    %272 = arith.divf %270, %271 : vector<8x2xf32>
    %273 = vector.extract_strided_slice %254 {offsets = [16, 0], sizes = [8, 2], strides = [1, 1]} : vector<24x2xf32> to vector<8x2xf32>
    %274 = vector.extract_strided_slice %256 {offsets = [16, 0], sizes = [8, 2], strides = [1, 1]} : vector<24x2xf32> to vector<8x2xf32>
    %275 = arith.mulf %264, %274 : vector<8x2xf32>
    %276 = arith.addf %273, %275 : vector<8x2xf32>
    %277 = math.tanh %276 : vector<8x2xf32>
    %cst_58 = arith.constant 1.000000e+00 : f32
    %278 = vector.broadcast %cst_58 : f32 to vector<8x2xf32>
    %279 = arith.subf %278, %272 : vector<8x2xf32>
    %280 = arith.mulf %279, %277 : vector<8x2xf32>
    %281 = arith.mulf %272, %253 : vector<8x2xf32>
    %282 = arith.addf %280, %281 : vector<8x2xf32>
    %283 = vector.extract_strided_slice %47 {offsets = [0, 16], sizes = [24, 2], strides = [1, 1]} : vector<24x32xf32> to vector<24x2xf32>
    %cst_59 = arith.constant dense<0.000000e+00> : vector<24x2xf32>
    %284 = tpu.matmul %48, %282, %cst_59 {dimension_numbers = #tpu.dot_dimension_numbers<[1], [0], [0], [1], [0, 0, 1, 1], [], []>} : vector<24x8xf32>, vector<8x2xf32>, vector<24x2xf32> -> vector<24x2xf32>
    %285 = arith.addf %284, %49 : vector<24x2xf32>
    %286 = vector.extract_strided_slice %283 {offsets = [0, 0], sizes = [8, 2], strides = [1, 1]} : vector<24x2xf32> to vector<8x2xf32>
    %287 = vector.extract_strided_slice %285 {offsets = [0, 0], sizes = [8, 2], strides = [1, 1]} : vector<24x2xf32> to vector<8x2xf32>
    %288 = arith.addf %286, %287 : vector<8x2xf32>
    %289 = arith.negf %288 : vector<8x2xf32>
    %290 = math.exp %289 : vector<8x2xf32>
    %cst_60 = arith.constant 1.000000e+00 : f32
    %291 = vector.broadcast %cst_60 : f32 to vector<8x2xf32>
    %292 = arith.addf %291, %290 : vector<8x2xf32>
    %293 = arith.divf %291, %292 : vector<8x2xf32>
    %294 = vector.extract_strided_slice %283 {offsets = [8, 0], sizes = [8, 2], strides = [1, 1]} : vector<24x2xf32> to vector<8x2xf32>
    %295 = vector.extract_strided_slice %285 {offsets = [8, 0], sizes = [8, 2], strides = [1, 1]} : vector<24x2xf32> to vector<8x2xf32>
    %296 = arith.addf %294, %295 : vector<8x2xf32>
    %297 = arith.negf %296 : vector<8x2xf32>
    %298 = math.exp %297 : vector<8x2xf32>
    %cst_61 = arith.constant 1.000000e+00 : f32
    %299 = vector.broadcast %cst_61 : f32 to vector<8x2xf32>
    %300 = arith.addf %299, %298 : vector<8x2xf32>
    %301 = arith.divf %299, %300 : vector<8x2xf32>
    %302 = vector.extract_strided_slice %283 {offsets = [16, 0], sizes = [8, 2], strides = [1, 1]} : vector<24x2xf32> to vector<8x2xf32>
    %303 = vector.extract_strided_slice %285 {offsets = [16, 0], sizes = [8, 2], strides = [1, 1]} : vector<24x2xf32> to vector<8x2xf32>
    %304 = arith.mulf %293, %303 : vector<8x2xf32>
    %305 = arith.addf %302, %304 : vector<8x2xf32>
    %306 = math.tanh %305 : vector<8x2xf32>
    %cst_62 = arith.constant 1.000000e+00 : f32
    %307 = vector.broadcast %cst_62 : f32 to vector<8x2xf32>
    %308 = arith.subf %307, %301 : vector<8x2xf32>
    %309 = arith.mulf %308, %306 : vector<8x2xf32>
    %310 = arith.mulf %301, %282 : vector<8x2xf32>
    %311 = arith.addf %309, %310 : vector<8x2xf32>
    %312 = vector.extract_strided_slice %47 {offsets = [0, 18], sizes = [24, 2], strides = [1, 1]} : vector<24x32xf32> to vector<24x2xf32>
    %cst_63 = arith.constant dense<0.000000e+00> : vector<24x2xf32>
    %313 = tpu.matmul %48, %311, %cst_63 {dimension_numbers = #tpu.dot_dimension_numbers<[1], [0], [0], [1], [0, 0, 1, 1], [], []>} : vector<24x8xf32>, vector<8x2xf32>, vector<24x2xf32> -> vector<24x2xf32>
    %314 = arith.addf %313, %49 : vector<24x2xf32>
    %315 = vector.extract_strided_slice %312 {offsets = [0, 0], sizes = [8, 2], strides = [1, 1]} : vector<24x2xf32> to vector<8x2xf32>
    %316 = vector.extract_strided_slice %314 {offsets = [0, 0], sizes = [8, 2], strides = [1, 1]} : vector<24x2xf32> to vector<8x2xf32>
    %317 = arith.addf %315, %316 : vector<8x2xf32>
    %318 = arith.negf %317 : vector<8x2xf32>
    %319 = math.exp %318 : vector<8x2xf32>
    %cst_64 = arith.constant 1.000000e+00 : f32
    %320 = vector.broadcast %cst_64 : f32 to vector<8x2xf32>
    %321 = arith.addf %320, %319 : vector<8x2xf32>
    %322 = arith.divf %320, %321 : vector<8x2xf32>
    %323 = vector.extract_strided_slice %312 {offsets = [8, 0], sizes = [8, 2], strides = [1, 1]} : vector<24x2xf32> to vector<8x2xf32>
    %324 = vector.extract_strided_slice %314 {offsets = [8, 0], sizes = [8, 2], strides = [1, 1]} : vector<24x2xf32> to vector<8x2xf32>
    %325 = arith.addf %323, %324 : vector<8x2xf32>
    %326 = arith.negf %325 : vector<8x2xf32>
    %327 = math.exp %326 : vector<8x2xf32>
    %cst_65 = arith.constant 1.000000e+00 : f32
    %328 = vector.broadcast %cst_65 : f32 to vector<8x2xf32>
    %329 = arith.addf %328, %327 : vector<8x2xf32>
    %330 = arith.divf %328, %329 : vector<8x2xf32>
    %331 = vector.extract_strided_slice %312 {offsets = [16, 0], sizes = [8, 2], strides = [1, 1]} : vector<24x2xf32> to vector<8x2xf32>
    %332 = vector.extract_strided_slice %314 {offsets = [16, 0], sizes = [8, 2], strides = [1, 1]} : vector<24x2xf32> to vector<8x2xf32>
    %333 = arith.mulf %322, %332 : vector<8x2xf32>
    %334 = arith.addf %331, %333 : vector<8x2xf32>
    %335 = math.tanh %334 : vector<8x2xf32>
    %cst_66 = arith.constant 1.000000e+00 : f32
    %336 = vector.broadcast %cst_66 : f32 to vector<8x2xf32>
    %337 = arith.subf %336, %330 : vector<8x2xf32>
    %338 = arith.mulf %337, %335 : vector<8x2xf32>
    %339 = arith.mulf %330, %311 : vector<8x2xf32>
    %340 = arith.addf %338, %339 : vector<8x2xf32>
    %341 = vector.extract_strided_slice %47 {offsets = [0, 20], sizes = [24, 2], strides = [1, 1]} : vector<24x32xf32> to vector<24x2xf32>
    %cst_67 = arith.constant dense<0.000000e+00> : vector<24x2xf32>
    %342 = tpu.matmul %48, %340, %cst_67 {dimension_numbers = #tpu.dot_dimension_numbers<[1], [0], [0], [1], [0, 0, 1, 1], [], []>} : vector<24x8xf32>, vector<8x2xf32>, vector<24x2xf32> -> vector<24x2xf32>
    %343 = arith.addf %342, %49 : vector<24x2xf32>
    %344 = vector.extract_strided_slice %341 {offsets = [0, 0], sizes = [8, 2], strides = [1, 1]} : vector<24x2xf32> to vector<8x2xf32>
    %345 = vector.extract_strided_slice %343 {offsets = [0, 0], sizes = [8, 2], strides = [1, 1]} : vector<24x2xf32> to vector<8x2xf32>
    %346 = arith.addf %344, %345 : vector<8x2xf32>
    %347 = arith.negf %346 : vector<8x2xf32>
    %348 = math.exp %347 : vector<8x2xf32>
    %cst_68 = arith.constant 1.000000e+00 : f32
    %349 = vector.broadcast %cst_68 : f32 to vector<8x2xf32>
    %350 = arith.addf %349, %348 : vector<8x2xf32>
    %351 = arith.divf %349, %350 : vector<8x2xf32>
    %352 = vector.extract_strided_slice %341 {offsets = [8, 0], sizes = [8, 2], strides = [1, 1]} : vector<24x2xf32> to vector<8x2xf32>
    %353 = vector.extract_strided_slice %343 {offsets = [8, 0], sizes = [8, 2], strides = [1, 1]} : vector<24x2xf32> to vector<8x2xf32>
    %354 = arith.addf %352, %353 : vector<8x2xf32>
    %355 = arith.negf %354 : vector<8x2xf32>
    %356 = math.exp %355 : vector<8x2xf32>
    %cst_69 = arith.constant 1.000000e+00 : f32
    %357 = vector.broadcast %cst_69 : f32 to vector<8x2xf32>
    %358 = arith.addf %357, %356 : vector<8x2xf32>
    %359 = arith.divf %357, %358 : vector<8x2xf32>
    %360 = vector.extract_strided_slice %341 {offsets = [16, 0], sizes = [8, 2], strides = [1, 1]} : vector<24x2xf32> to vector<8x2xf32>
    %361 = vector.extract_strided_slice %343 {offsets = [16, 0], sizes = [8, 2], strides = [1, 1]} : vector<24x2xf32> to vector<8x2xf32>
    %362 = arith.mulf %351, %361 : vector<8x2xf32>
    %363 = arith.addf %360, %362 : vector<8x2xf32>
    %364 = math.tanh %363 : vector<8x2xf32>
    %cst_70 = arith.constant 1.000000e+00 : f32
    %365 = vector.broadcast %cst_70 : f32 to vector<8x2xf32>
    %366 = arith.subf %365, %359 : vector<8x2xf32>
    %367 = arith.mulf %366, %364 : vector<8x2xf32>
    %368 = arith.mulf %359, %340 : vector<8x2xf32>
    %369 = arith.addf %367, %368 : vector<8x2xf32>
    %370 = vector.extract_strided_slice %47 {offsets = [0, 22], sizes = [24, 2], strides = [1, 1]} : vector<24x32xf32> to vector<24x2xf32>
    %cst_71 = arith.constant dense<0.000000e+00> : vector<24x2xf32>
    %371 = tpu.matmul %48, %369, %cst_71 {dimension_numbers = #tpu.dot_dimension_numbers<[1], [0], [0], [1], [0, 0, 1, 1], [], []>} : vector<24x8xf32>, vector<8x2xf32>, vector<24x2xf32> -> vector<24x2xf32>
    %372 = arith.addf %371, %49 : vector<24x2xf32>
    %373 = vector.extract_strided_slice %370 {offsets = [0, 0], sizes = [8, 2], strides = [1, 1]} : vector<24x2xf32> to vector<8x2xf32>
    %374 = vector.extract_strided_slice %372 {offsets = [0, 0], sizes = [8, 2], strides = [1, 1]} : vector<24x2xf32> to vector<8x2xf32>
    %375 = arith.addf %373, %374 : vector<8x2xf32>
    %376 = arith.negf %375 : vector<8x2xf32>
    %377 = math.exp %376 : vector<8x2xf32>
    %cst_72 = arith.constant 1.000000e+00 : f32
    %378 = vector.broadcast %cst_72 : f32 to vector<8x2xf32>
    %379 = arith.addf %378, %377 : vector<8x2xf32>
    %380 = arith.divf %378, %379 : vector<8x2xf32>
    %381 = vector.extract_strided_slice %370 {offsets = [8, 0], sizes = [8, 2], strides = [1, 1]} : vector<24x2xf32> to vector<8x2xf32>
    %382 = vector.extract_strided_slice %372 {offsets = [8, 0], sizes = [8, 2], strides = [1, 1]} : vector<24x2xf32> to vector<8x2xf32>
    %383 = arith.addf %381, %382 : vector<8x2xf32>
    %384 = arith.negf %383 : vector<8x2xf32>
    %385 = math.exp %384 : vector<8x2xf32>
    %cst_73 = arith.constant 1.000000e+00 : f32
    %386 = vector.broadcast %cst_73 : f32 to vector<8x2xf32>
    %387 = arith.addf %386, %385 : vector<8x2xf32>
    %388 = arith.divf %386, %387 : vector<8x2xf32>
    %389 = vector.extract_strided_slice %370 {offsets = [16, 0], sizes = [8, 2], strides = [1, 1]} : vector<24x2xf32> to vector<8x2xf32>
    %390 = vector.extract_strided_slice %372 {offsets = [16, 0], sizes = [8, 2], strides = [1, 1]} : vector<24x2xf32> to vector<8x2xf32>
    %391 = arith.mulf %380, %390 : vector<8x2xf32>
    %392 = arith.addf %389, %391 : vector<8x2xf32>
    %393 = math.tanh %392 : vector<8x2xf32>
    %cst_74 = arith.constant 1.000000e+00 : f32
    %394 = vector.broadcast %cst_74 : f32 to vector<8x2xf32>
    %395 = arith.subf %394, %388 : vector<8x2xf32>
    %396 = arith.mulf %395, %393 : vector<8x2xf32>
    %397 = arith.mulf %388, %369 : vector<8x2xf32>
    %398 = arith.addf %396, %397 : vector<8x2xf32>
    %399 = vector.extract_strided_slice %47 {offsets = [0, 24], sizes = [24, 2], strides = [1, 1]} : vector<24x32xf32> to vector<24x2xf32>
    %cst_75 = arith.constant dense<0.000000e+00> : vector<24x2xf32>
    %400 = tpu.matmul %48, %398, %cst_75 {dimension_numbers = #tpu.dot_dimension_numbers<[1], [0], [0], [1], [0, 0, 1, 1], [], []>} : vector<24x8xf32>, vector<8x2xf32>, vector<24x2xf32> -> vector<24x2xf32>
    %401 = arith.addf %400, %49 : vector<24x2xf32>
    %402 = vector.extract_strided_slice %399 {offsets = [0, 0], sizes = [8, 2], strides = [1, 1]} : vector<24x2xf32> to vector<8x2xf32>
    %403 = vector.extract_strided_slice %401 {offsets = [0, 0], sizes = [8, 2], strides = [1, 1]} : vector<24x2xf32> to vector<8x2xf32>
    %404 = arith.addf %402, %403 : vector<8x2xf32>
    %405 = arith.negf %404 : vector<8x2xf32>
    %406 = math.exp %405 : vector<8x2xf32>
    %cst_76 = arith.constant 1.000000e+00 : f32
    %407 = vector.broadcast %cst_76 : f32 to vector<8x2xf32>
    %408 = arith.addf %407, %406 : vector<8x2xf32>
    %409 = arith.divf %407, %408 : vector<8x2xf32>
    %410 = vector.extract_strided_slice %399 {offsets = [8, 0], sizes = [8, 2], strides = [1, 1]} : vector<24x2xf32> to vector<8x2xf32>
    %411 = vector.extract_strided_slice %401 {offsets = [8, 0], sizes = [8, 2], strides = [1, 1]} : vector<24x2xf32> to vector<8x2xf32>
    %412 = arith.addf %410, %411 : vector<8x2xf32>
    %413 = arith.negf %412 : vector<8x2xf32>
    %414 = math.exp %413 : vector<8x2xf32>
    %cst_77 = arith.constant 1.000000e+00 : f32
    %415 = vector.broadcast %cst_77 : f32 to vector<8x2xf32>
    %416 = arith.addf %415, %414 : vector<8x2xf32>
    %417 = arith.divf %415, %416 : vector<8x2xf32>
    %418 = vector.extract_strided_slice %399 {offsets = [16, 0], sizes = [8, 2], strides = [1, 1]} : vector<24x2xf32> to vector<8x2xf32>
    %419 = vector.extract_strided_slice %401 {offsets = [16, 0], sizes = [8, 2], strides = [1, 1]} : vector<24x2xf32> to vector<8x2xf32>
    %420 = arith.mulf %409, %419 : vector<8x2xf32>
    %421 = arith.addf %418, %420 : vector<8x2xf32>
    %422 = math.tanh %421 : vector<8x2xf32>
    %cst_78 = arith.constant 1.000000e+00 : f32
    %423 = vector.broadcast %cst_78 : f32 to vector<8x2xf32>
    %424 = arith.subf %423, %417 : vector<8x2xf32>
    %425 = arith.mulf %424, %422 : vector<8x2xf32>
    %426 = arith.mulf %417, %398 : vector<8x2xf32>
    %427 = arith.addf %425, %426 : vector<8x2xf32>
    %428 = vector.extract_strided_slice %47 {offsets = [0, 26], sizes = [24, 2], strides = [1, 1]} : vector<24x32xf32> to vector<24x2xf32>
    %cst_79 = arith.constant dense<0.000000e+00> : vector<24x2xf32>
    %429 = tpu.matmul %48, %427, %cst_79 {dimension_numbers = #tpu.dot_dimension_numbers<[1], [0], [0], [1], [0, 0, 1, 1], [], []>} : vector<24x8xf32>, vector<8x2xf32>, vector<24x2xf32> -> vector<24x2xf32>
    %430 = arith.addf %429, %49 : vector<24x2xf32>
    %431 = vector.extract_strided_slice %428 {offsets = [0, 0], sizes = [8, 2], strides = [1, 1]} : vector<24x2xf32> to vector<8x2xf32>
    %432 = vector.extract_strided_slice %430 {offsets = [0, 0], sizes = [8, 2], strides = [1, 1]} : vector<24x2xf32> to vector<8x2xf32>
    %433 = arith.addf %431, %432 : vector<8x2xf32>
    %434 = arith.negf %433 : vector<8x2xf32>
    %435 = math.exp %434 : vector<8x2xf32>
    %cst_80 = arith.constant 1.000000e+00 : f32
    %436 = vector.broadcast %cst_80 : f32 to vector<8x2xf32>
    %437 = arith.addf %436, %435 : vector<8x2xf32>
    %438 = arith.divf %436, %437 : vector<8x2xf32>
    %439 = vector.extract_strided_slice %428 {offsets = [8, 0], sizes = [8, 2], strides = [1, 1]} : vector<24x2xf32> to vector<8x2xf32>
    %440 = vector.extract_strided_slice %430 {offsets = [8, 0], sizes = [8, 2], strides = [1, 1]} : vector<24x2xf32> to vector<8x2xf32>
    %441 = arith.addf %439, %440 : vector<8x2xf32>
    %442 = arith.negf %441 : vector<8x2xf32>
    %443 = math.exp %442 : vector<8x2xf32>
    %cst_81 = arith.constant 1.000000e+00 : f32
    %444 = vector.broadcast %cst_81 : f32 to vector<8x2xf32>
    %445 = arith.addf %444, %443 : vector<8x2xf32>
    %446 = arith.divf %444, %445 : vector<8x2xf32>
    %447 = vector.extract_strided_slice %428 {offsets = [16, 0], sizes = [8, 2], strides = [1, 1]} : vector<24x2xf32> to vector<8x2xf32>
    %448 = vector.extract_strided_slice %430 {offsets = [16, 0], sizes = [8, 2], strides = [1, 1]} : vector<24x2xf32> to vector<8x2xf32>
    %449 = arith.mulf %438, %448 : vector<8x2xf32>
    %450 = arith.addf %447, %449 : vector<8x2xf32>
    %451 = math.tanh %450 : vector<8x2xf32>
    %cst_82 = arith.constant 1.000000e+00 : f32
    %452 = vector.broadcast %cst_82 : f32 to vector<8x2xf32>
    %453 = arith.subf %452, %446 : vector<8x2xf32>
    %454 = arith.mulf %453, %451 : vector<8x2xf32>
    %455 = arith.mulf %446, %427 : vector<8x2xf32>
    %456 = arith.addf %454, %455 : vector<8x2xf32>
    %457 = vector.extract_strided_slice %47 {offsets = [0, 28], sizes = [24, 2], strides = [1, 1]} : vector<24x32xf32> to vector<24x2xf32>
    %cst_83 = arith.constant dense<0.000000e+00> : vector<24x2xf32>
    %458 = tpu.matmul %48, %456, %cst_83 {dimension_numbers = #tpu.dot_dimension_numbers<[1], [0], [0], [1], [0, 0, 1, 1], [], []>} : vector<24x8xf32>, vector<8x2xf32>, vector<24x2xf32> -> vector<24x2xf32>
    %459 = arith.addf %458, %49 : vector<24x2xf32>
    %460 = vector.extract_strided_slice %457 {offsets = [0, 0], sizes = [8, 2], strides = [1, 1]} : vector<24x2xf32> to vector<8x2xf32>
    %461 = vector.extract_strided_slice %459 {offsets = [0, 0], sizes = [8, 2], strides = [1, 1]} : vector<24x2xf32> to vector<8x2xf32>
    %462 = arith.addf %460, %461 : vector<8x2xf32>
    %463 = arith.negf %462 : vector<8x2xf32>
    %464 = math.exp %463 : vector<8x2xf32>
    %cst_84 = arith.constant 1.000000e+00 : f32
    %465 = vector.broadcast %cst_84 : f32 to vector<8x2xf32>
    %466 = arith.addf %465, %464 : vector<8x2xf32>
    %467 = arith.divf %465, %466 : vector<8x2xf32>
    %468 = vector.extract_strided_slice %457 {offsets = [8, 0], sizes = [8, 2], strides = [1, 1]} : vector<24x2xf32> to vector<8x2xf32>
    %469 = vector.extract_strided_slice %459 {offsets = [8, 0], sizes = [8, 2], strides = [1, 1]} : vector<24x2xf32> to vector<8x2xf32>
    %470 = arith.addf %468, %469 : vector<8x2xf32>
    %471 = arith.negf %470 : vector<8x2xf32>
    %472 = math.exp %471 : vector<8x2xf32>
    %cst_85 = arith.constant 1.000000e+00 : f32
    %473 = vector.broadcast %cst_85 : f32 to vector<8x2xf32>
    %474 = arith.addf %473, %472 : vector<8x2xf32>
    %475 = arith.divf %473, %474 : vector<8x2xf32>
    %476 = vector.extract_strided_slice %457 {offsets = [16, 0], sizes = [8, 2], strides = [1, 1]} : vector<24x2xf32> to vector<8x2xf32>
    %477 = vector.extract_strided_slice %459 {offsets = [16, 0], sizes = [8, 2], strides = [1, 1]} : vector<24x2xf32> to vector<8x2xf32>
    %478 = arith.mulf %467, %477 : vector<8x2xf32>
    %479 = arith.addf %476, %478 : vector<8x2xf32>
    %480 = math.tanh %479 : vector<8x2xf32>
    %cst_86 = arith.constant 1.000000e+00 : f32
    %481 = vector.broadcast %cst_86 : f32 to vector<8x2xf32>
    %482 = arith.subf %481, %475 : vector<8x2xf32>
    %483 = arith.mulf %482, %480 : vector<8x2xf32>
    %484 = arith.mulf %475, %456 : vector<8x2xf32>
    %485 = arith.addf %483, %484 : vector<8x2xf32>
    %486 = vector.extract_strided_slice %47 {offsets = [0, 30], sizes = [24, 2], strides = [1, 1]} : vector<24x32xf32> to vector<24x2xf32>
    %cst_87 = arith.constant dense<0.000000e+00> : vector<24x2xf32>
    %487 = tpu.matmul %48, %485, %cst_87 {dimension_numbers = #tpu.dot_dimension_numbers<[1], [0], [0], [1], [0, 0, 1, 1], [], []>} : vector<24x8xf32>, vector<8x2xf32>, vector<24x2xf32> -> vector<24x2xf32>
    %488 = arith.addf %487, %49 : vector<24x2xf32>
    %489 = vector.extract_strided_slice %486 {offsets = [0, 0], sizes = [8, 2], strides = [1, 1]} : vector<24x2xf32> to vector<8x2xf32>
    %490 = vector.extract_strided_slice %488 {offsets = [0, 0], sizes = [8, 2], strides = [1, 1]} : vector<24x2xf32> to vector<8x2xf32>
    %491 = arith.addf %489, %490 : vector<8x2xf32>
    %492 = arith.negf %491 : vector<8x2xf32>
    %493 = math.exp %492 : vector<8x2xf32>
    %cst_88 = arith.constant 1.000000e+00 : f32
    %494 = vector.broadcast %cst_88 : f32 to vector<8x2xf32>
    %495 = arith.addf %494, %493 : vector<8x2xf32>
    %496 = arith.divf %494, %495 : vector<8x2xf32>
    %497 = vector.extract_strided_slice %486 {offsets = [8, 0], sizes = [8, 2], strides = [1, 1]} : vector<24x2xf32> to vector<8x2xf32>
    %498 = vector.extract_strided_slice %488 {offsets = [8, 0], sizes = [8, 2], strides = [1, 1]} : vector<24x2xf32> to vector<8x2xf32>
    %499 = arith.addf %497, %498 : vector<8x2xf32>
    %500 = arith.negf %499 : vector<8x2xf32>
    %501 = math.exp %500 : vector<8x2xf32>
    %cst_89 = arith.constant 1.000000e+00 : f32
    %502 = vector.broadcast %cst_89 : f32 to vector<8x2xf32>
    %503 = arith.addf %502, %501 : vector<8x2xf32>
    %504 = arith.divf %502, %503 : vector<8x2xf32>
    %505 = vector.extract_strided_slice %486 {offsets = [16, 0], sizes = [8, 2], strides = [1, 1]} : vector<24x2xf32> to vector<8x2xf32>
    %506 = vector.extract_strided_slice %488 {offsets = [16, 0], sizes = [8, 2], strides = [1, 1]} : vector<24x2xf32> to vector<8x2xf32>
    %507 = arith.mulf %496, %506 : vector<8x2xf32>
    %508 = arith.addf %505, %507 : vector<8x2xf32>
    %509 = math.tanh %508 : vector<8x2xf32>
    %cst_90 = arith.constant 1.000000e+00 : f32
    %510 = vector.broadcast %cst_90 : f32 to vector<8x2xf32>
    %511 = arith.subf %510, %504 : vector<8x2xf32>
    %512 = arith.mulf %511, %509 : vector<8x2xf32>
    %513 = arith.mulf %504, %485 : vector<8x2xf32>
    %514 = arith.addf %512, %513 : vector<8x2xf32>
    %515 = tpu.concatenate %79, %108, %137, %166, %195, %224, %253, %282, %311, %340, %369, %398, %427, %456, %485, %514 in 1 : vector<8x2xf32>, vector<8x2xf32>, vector<8x2xf32>, vector<8x2xf32>, vector<8x2xf32>, vector<8x2xf32>, vector<8x2xf32>, vector<8x2xf32>, vector<8x2xf32>, vector<8x2xf32>, vector<8x2xf32>, vector<8x2xf32>, vector<8x2xf32>, vector<8x2xf32>, vector<8x2xf32>, vector<8x2xf32> -> vector<8x32xf32>
    %c192 = arith.constant 192 : index
    %c0_91 = arith.constant 0 : index
    %516 = vector.load %arg1[%c192, %c0_91] : memref<760x256xf32, #tpu.memory_space<vmem>>, vector<24x8xf32>
    %cst_92 = arith.constant dense<0.000000e+00> : vector<24x32xf32>
    %517 = tpu.matmul %516, %515, %cst_92 {dimension_numbers = #tpu.dot_dimension_numbers<[1], [0], [0], [1], [0, 0, 1, 1], [], []>} : vector<24x8xf32>, vector<8x32xf32>, vector<24x32xf32> -> vector<24x32xf32>
    %c240 = arith.constant 240 : index
    %c0_93 = arith.constant 0 : index
    %518 = vector.load %arg1[%c240, %c0_93] : memref<760x256xf32, #tpu.memory_space<vmem>>, vector<24x32xf32>
    %519 = arith.addf %517, %518 : vector<24x32xf32>
    %c216 = arith.constant 216 : index
    %c0_94 = arith.constant 0 : index
    %520 = vector.load %arg1[%c216, %c0_94] : memref<760x256xf32, #tpu.memory_space<vmem>>, vector<24x8xf32>
    %c264 = arith.constant 264 : index
    %c0_95 = arith.constant 0 : index
    %521 = vector.load %arg1[%c264, %c0_95] : memref<760x256xf32, #tpu.memory_space<vmem>>, vector<24x2xf32>
    %cst_96 = arith.constant 0.000000e+00 : f32
    %522 = vector.broadcast %cst_96 : f32 to vector<8x2xf32>
    %523 = vector.extract_strided_slice %519 {offsets = [0, 0], sizes = [24, 2], strides = [1, 1]} : vector<24x32xf32> to vector<24x2xf32>
    %cst_97 = arith.constant dense<0.000000e+00> : vector<24x2xf32>
    %524 = tpu.matmul %520, %522, %cst_97 {dimension_numbers = #tpu.dot_dimension_numbers<[1], [0], [0], [1], [0, 0, 1, 1], [], []>} : vector<24x8xf32>, vector<8x2xf32>, vector<24x2xf32> -> vector<24x2xf32>
    %525 = arith.addf %524, %521 : vector<24x2xf32>
    %526 = vector.extract_strided_slice %523 {offsets = [0, 0], sizes = [8, 2], strides = [1, 1]} : vector<24x2xf32> to vector<8x2xf32>
    %527 = vector.extract_strided_slice %525 {offsets = [0, 0], sizes = [8, 2], strides = [1, 1]} : vector<24x2xf32> to vector<8x2xf32>
    %528 = arith.addf %526, %527 : vector<8x2xf32>
    %529 = arith.negf %528 : vector<8x2xf32>
    %530 = math.exp %529 : vector<8x2xf32>
    %cst_98 = arith.constant 1.000000e+00 : f32
    %531 = vector.broadcast %cst_98 : f32 to vector<8x2xf32>
    %532 = arith.addf %531, %530 : vector<8x2xf32>
    %533 = arith.divf %531, %532 : vector<8x2xf32>
    %534 = vector.extract_strided_slice %523 {offsets = [8, 0], sizes = [8, 2], strides = [1, 1]} : vector<24x2xf32> to vector<8x2xf32>
    %535 = vector.extract_strided_slice %525 {offsets = [8, 0], sizes = [8, 2], strides = [1, 1]} : vector<24x2xf32> to vector<8x2xf32>
    %536 = arith.addf %534, %535 : vector<8x2xf32>
    %537 = arith.negf %536 : vector<8x2xf32>
    %538 = math.exp %537 : vector<8x2xf32>
    %cst_99 = arith.constant 1.000000e+00 : f32
    %539 = vector.broadcast %cst_99 : f32 to vector<8x2xf32>
    %540 = arith.addf %539, %538 : vector<8x2xf32>
    %541 = arith.divf %539, %540 : vector<8x2xf32>
    %542 = vector.extract_strided_slice %523 {offsets = [16, 0], sizes = [8, 2], strides = [1, 1]} : vector<24x2xf32> to vector<8x2xf32>
    %543 = vector.extract_strided_slice %525 {offsets = [16, 0], sizes = [8, 2], strides = [1, 1]} : vector<24x2xf32> to vector<8x2xf32>
    %544 = arith.mulf %533, %543 : vector<8x2xf32>
    %545 = arith.addf %542, %544 : vector<8x2xf32>
    %546 = math.tanh %545 : vector<8x2xf32>
    %cst_100 = arith.constant 1.000000e+00 : f32
    %547 = vector.broadcast %cst_100 : f32 to vector<8x2xf32>
    %548 = arith.subf %547, %541 : vector<8x2xf32>
    %549 = arith.mulf %548, %546 : vector<8x2xf32>
    %550 = arith.mulf %541, %522 : vector<8x2xf32>
    %551 = arith.addf %549, %550 : vector<8x2xf32>
    %552 = vector.extract_strided_slice %519 {offsets = [0, 2], sizes = [24, 2], strides = [1, 1]} : vector<24x32xf32> to vector<24x2xf32>
    %cst_101 = arith.constant dense<0.000000e+00> : vector<24x2xf32>
    %553 = tpu.matmul %520, %551, %cst_101 {dimension_numbers = #tpu.dot_dimension_numbers<[1], [0], [0], [1], [0, 0, 1, 1], [], []>} : vector<24x8xf32>, vector<8x2xf32>, vector<24x2xf32> -> vector<24x2xf32>
    %554 = arith.addf %553, %521 : vector<24x2xf32>
    %555 = vector.extract_strided_slice %552 {offsets = [0, 0], sizes = [8, 2], strides = [1, 1]} : vector<24x2xf32> to vector<8x2xf32>
    %556 = vector.extract_strided_slice %554 {offsets = [0, 0], sizes = [8, 2], strides = [1, 1]} : vector<24x2xf32> to vector<8x2xf32>
    %557 = arith.addf %555, %556 : vector<8x2xf32>
    %558 = arith.negf %557 : vector<8x2xf32>
    %559 = math.exp %558 : vector<8x2xf32>
    %cst_102 = arith.constant 1.000000e+00 : f32
    %560 = vector.broadcast %cst_102 : f32 to vector<8x2xf32>
    %561 = arith.addf %560, %559 : vector<8x2xf32>
    %562 = arith.divf %560, %561 : vector<8x2xf32>
    %563 = vector.extract_strided_slice %552 {offsets = [8, 0], sizes = [8, 2], strides = [1, 1]} : vector<24x2xf32> to vector<8x2xf32>
    %564 = vector.extract_strided_slice %554 {offsets = [8, 0], sizes = [8, 2], strides = [1, 1]} : vector<24x2xf32> to vector<8x2xf32>
    %565 = arith.addf %563, %564 : vector<8x2xf32>
    %566 = arith.negf %565 : vector<8x2xf32>
    %567 = math.exp %566 : vector<8x2xf32>
    %cst_103 = arith.constant 1.000000e+00 : f32
    %568 = vector.broadcast %cst_103 : f32 to vector<8x2xf32>
    %569 = arith.addf %568, %567 : vector<8x2xf32>
    %570 = arith.divf %568, %569 : vector<8x2xf32>
    %571 = vector.extract_strided_slice %552 {offsets = [16, 0], sizes = [8, 2], strides = [1, 1]} : vector<24x2xf32> to vector<8x2xf32>
    %572 = vector.extract_strided_slice %554 {offsets = [16, 0], sizes = [8, 2], strides = [1, 1]} : vector<24x2xf32> to vector<8x2xf32>
    %573 = arith.mulf %562, %572 : vector<8x2xf32>
    %574 = arith.addf %571, %573 : vector<8x2xf32>
    %575 = math.tanh %574 : vector<8x2xf32>
    %cst_104 = arith.constant 1.000000e+00 : f32
    %576 = vector.broadcast %cst_104 : f32 to vector<8x2xf32>
    %577 = arith.subf %576, %570 : vector<8x2xf32>
    %578 = arith.mulf %577, %575 : vector<8x2xf32>
    %579 = arith.mulf %570, %551 : vector<8x2xf32>
    %580 = arith.addf %578, %579 : vector<8x2xf32>
    %581 = vector.extract_strided_slice %519 {offsets = [0, 4], sizes = [24, 2], strides = [1, 1]} : vector<24x32xf32> to vector<24x2xf32>
    %cst_105 = arith.constant dense<0.000000e+00> : vector<24x2xf32>
    %582 = tpu.matmul %520, %580, %cst_105 {dimension_numbers = #tpu.dot_dimension_numbers<[1], [0], [0], [1], [0, 0, 1, 1], [], []>} : vector<24x8xf32>, vector<8x2xf32>, vector<24x2xf32> -> vector<24x2xf32>
    %583 = arith.addf %582, %521 : vector<24x2xf32>
    %584 = vector.extract_strided_slice %581 {offsets = [0, 0], sizes = [8, 2], strides = [1, 1]} : vector<24x2xf32> to vector<8x2xf32>
    %585 = vector.extract_strided_slice %583 {offsets = [0, 0], sizes = [8, 2], strides = [1, 1]} : vector<24x2xf32> to vector<8x2xf32>
    %586 = arith.addf %584, %585 : vector<8x2xf32>
    %587 = arith.negf %586 : vector<8x2xf32>
    %588 = math.exp %587 : vector<8x2xf32>
    %cst_106 = arith.constant 1.000000e+00 : f32
    %589 = vector.broadcast %cst_106 : f32 to vector<8x2xf32>
    %590 = arith.addf %589, %588 : vector<8x2xf32>
    %591 = arith.divf %589, %590 : vector<8x2xf32>
    %592 = vector.extract_strided_slice %581 {offsets = [8, 0], sizes = [8, 2], strides = [1, 1]} : vector<24x2xf32> to vector<8x2xf32>
    %593 = vector.extract_strided_slice %583 {offsets = [8, 0], sizes = [8, 2], strides = [1, 1]} : vector<24x2xf32> to vector<8x2xf32>
    %594 = arith.addf %592, %593 : vector<8x2xf32>
    %595 = arith.negf %594 : vector<8x2xf32>
    %596 = math.exp %595 : vector<8x2xf32>
    %cst_107 = arith.constant 1.000000e+00 : f32
    %597 = vector.broadcast %cst_107 : f32 to vector<8x2xf32>
    %598 = arith.addf %597, %596 : vector<8x2xf32>
    %599 = arith.divf %597, %598 : vector<8x2xf32>
    %600 = vector.extract_strided_slice %581 {offsets = [16, 0], sizes = [8, 2], strides = [1, 1]} : vector<24x2xf32> to vector<8x2xf32>
    %601 = vector.extract_strided_slice %583 {offsets = [16, 0], sizes = [8, 2], strides = [1, 1]} : vector<24x2xf32> to vector<8x2xf32>
    %602 = arith.mulf %591, %601 : vector<8x2xf32>
    %603 = arith.addf %600, %602 : vector<8x2xf32>
    %604 = math.tanh %603 : vector<8x2xf32>
    %cst_108 = arith.constant 1.000000e+00 : f32
    %605 = vector.broadcast %cst_108 : f32 to vector<8x2xf32>
    %606 = arith.subf %605, %599 : vector<8x2xf32>
    %607 = arith.mulf %606, %604 : vector<8x2xf32>
    %608 = arith.mulf %599, %580 : vector<8x2xf32>
    %609 = arith.addf %607, %608 : vector<8x2xf32>
    %610 = vector.extract_strided_slice %519 {offsets = [0, 6], sizes = [24, 2], strides = [1, 1]} : vector<24x32xf32> to vector<24x2xf32>
    %cst_109 = arith.constant dense<0.000000e+00> : vector<24x2xf32>
    %611 = tpu.matmul %520, %609, %cst_109 {dimension_numbers = #tpu.dot_dimension_numbers<[1], [0], [0], [1], [0, 0, 1, 1], [], []>} : vector<24x8xf32>, vector<8x2xf32>, vector<24x2xf32> -> vector<24x2xf32>
    %612 = arith.addf %611, %521 : vector<24x2xf32>
    %613 = vector.extract_strided_slice %610 {offsets = [0, 0], sizes = [8, 2], strides = [1, 1]} : vector<24x2xf32> to vector<8x2xf32>
    %614 = vector.extract_strided_slice %612 {offsets = [0, 0], sizes = [8, 2], strides = [1, 1]} : vector<24x2xf32> to vector<8x2xf32>
    %615 = arith.addf %613, %614 : vector<8x2xf32>
    %616 = arith.negf %615 : vector<8x2xf32>
    %617 = math.exp %616 : vector<8x2xf32>
    %cst_110 = arith.constant 1.000000e+00 : f32
    %618 = vector.broadcast %cst_110 : f32 to vector<8x2xf32>
    %619 = arith.addf %618, %617 : vector<8x2xf32>
    %620 = arith.divf %618, %619 : vector<8x2xf32>
    %621 = vector.extract_strided_slice %610 {offsets = [8, 0], sizes = [8, 2], strides = [1, 1]} : vector<24x2xf32> to vector<8x2xf32>
    %622 = vector.extract_strided_slice %612 {offsets = [8, 0], sizes = [8, 2], strides = [1, 1]} : vector<24x2xf32> to vector<8x2xf32>
    %623 = arith.addf %621, %622 : vector<8x2xf32>
    %624 = arith.negf %623 : vector<8x2xf32>
    %625 = math.exp %624 : vector<8x2xf32>
    %cst_111 = arith.constant 1.000000e+00 : f32
    %626 = vector.broadcast %cst_111 : f32 to vector<8x2xf32>
    %627 = arith.addf %626, %625 : vector<8x2xf32>
    %628 = arith.divf %626, %627 : vector<8x2xf32>
    %629 = vector.extract_strided_slice %610 {offsets = [16, 0], sizes = [8, 2], strides = [1, 1]} : vector<24x2xf32> to vector<8x2xf32>
    %630 = vector.extract_strided_slice %612 {offsets = [16, 0], sizes = [8, 2], strides = [1, 1]} : vector<24x2xf32> to vector<8x2xf32>
    %631 = arith.mulf %620, %630 : vector<8x2xf32>
    %632 = arith.addf %629, %631 : vector<8x2xf32>
    %633 = math.tanh %632 : vector<8x2xf32>
    %cst_112 = arith.constant 1.000000e+00 : f32
    %634 = vector.broadcast %cst_112 : f32 to vector<8x2xf32>
    %635 = arith.subf %634, %628 : vector<8x2xf32>
    %636 = arith.mulf %635, %633 : vector<8x2xf32>
    %637 = arith.mulf %628, %609 : vector<8x2xf32>
    %638 = arith.addf %636, %637 : vector<8x2xf32>
    %639 = vector.extract_strided_slice %519 {offsets = [0, 8], sizes = [24, 2], strides = [1, 1]} : vector<24x32xf32> to vector<24x2xf32>
    %cst_113 = arith.constant dense<0.000000e+00> : vector<24x2xf32>
    %640 = tpu.matmul %520, %638, %cst_113 {dimension_numbers = #tpu.dot_dimension_numbers<[1], [0], [0], [1], [0, 0, 1, 1], [], []>} : vector<24x8xf32>, vector<8x2xf32>, vector<24x2xf32> -> vector<24x2xf32>
    %641 = arith.addf %640, %521 : vector<24x2xf32>
    %642 = vector.extract_strided_slice %639 {offsets = [0, 0], sizes = [8, 2], strides = [1, 1]} : vector<24x2xf32> to vector<8x2xf32>
    %643 = vector.extract_strided_slice %641 {offsets = [0, 0], sizes = [8, 2], strides = [1, 1]} : vector<24x2xf32> to vector<8x2xf32>
    %644 = arith.addf %642, %643 : vector<8x2xf32>
    %645 = arith.negf %644 : vector<8x2xf32>
    %646 = math.exp %645 : vector<8x2xf32>
    %cst_114 = arith.constant 1.000000e+00 : f32
    %647 = vector.broadcast %cst_114 : f32 to vector<8x2xf32>
    %648 = arith.addf %647, %646 : vector<8x2xf32>
    %649 = arith.divf %647, %648 : vector<8x2xf32>
    %650 = vector.extract_strided_slice %639 {offsets = [8, 0], sizes = [8, 2], strides = [1, 1]} : vector<24x2xf32> to vector<8x2xf32>
    %651 = vector.extract_strided_slice %641 {offsets = [8, 0], sizes = [8, 2], strides = [1, 1]} : vector<24x2xf32> to vector<8x2xf32>
    %652 = arith.addf %650, %651 : vector<8x2xf32>
    %653 = arith.negf %652 : vector<8x2xf32>
    %654 = math.exp %653 : vector<8x2xf32>
    %cst_115 = arith.constant 1.000000e+00 : f32
    %655 = vector.broadcast %cst_115 : f32 to vector<8x2xf32>
    %656 = arith.addf %655, %654 : vector<8x2xf32>
    %657 = arith.divf %655, %656 : vector<8x2xf32>
    %658 = vector.extract_strided_slice %639 {offsets = [16, 0], sizes = [8, 2], strides = [1, 1]} : vector<24x2xf32> to vector<8x2xf32>
    %659 = vector.extract_strided_slice %641 {offsets = [16, 0], sizes = [8, 2], strides = [1, 1]} : vector<24x2xf32> to vector<8x2xf32>
    %660 = arith.mulf %649, %659 : vector<8x2xf32>
    %661 = arith.addf %658, %660 : vector<8x2xf32>
    %662 = math.tanh %661 : vector<8x2xf32>
    %cst_116 = arith.constant 1.000000e+00 : f32
    %663 = vector.broadcast %cst_116 : f32 to vector<8x2xf32>
    %664 = arith.subf %663, %657 : vector<8x2xf32>
    %665 = arith.mulf %664, %662 : vector<8x2xf32>
    %666 = arith.mulf %657, %638 : vector<8x2xf32>
    %667 = arith.addf %665, %666 : vector<8x2xf32>
    %668 = vector.extract_strided_slice %519 {offsets = [0, 10], sizes = [24, 2], strides = [1, 1]} : vector<24x32xf32> to vector<24x2xf32>
    %cst_117 = arith.constant dense<0.000000e+00> : vector<24x2xf32>
    %669 = tpu.matmul %520, %667, %cst_117 {dimension_numbers = #tpu.dot_dimension_numbers<[1], [0], [0], [1], [0, 0, 1, 1], [], []>} : vector<24x8xf32>, vector<8x2xf32>, vector<24x2xf32> -> vector<24x2xf32>
    %670 = arith.addf %669, %521 : vector<24x2xf32>
    %671 = vector.extract_strided_slice %668 {offsets = [0, 0], sizes = [8, 2], strides = [1, 1]} : vector<24x2xf32> to vector<8x2xf32>
    %672 = vector.extract_strided_slice %670 {offsets = [0, 0], sizes = [8, 2], strides = [1, 1]} : vector<24x2xf32> to vector<8x2xf32>
    %673 = arith.addf %671, %672 : vector<8x2xf32>
    %674 = arith.negf %673 : vector<8x2xf32>
    %675 = math.exp %674 : vector<8x2xf32>
    %cst_118 = arith.constant 1.000000e+00 : f32
    %676 = vector.broadcast %cst_118 : f32 to vector<8x2xf32>
    %677 = arith.addf %676, %675 : vector<8x2xf32>
    %678 = arith.divf %676, %677 : vector<8x2xf32>
    %679 = vector.extract_strided_slice %668 {offsets = [8, 0], sizes = [8, 2], strides = [1, 1]} : vector<24x2xf32> to vector<8x2xf32>
    %680 = vector.extract_strided_slice %670 {offsets = [8, 0], sizes = [8, 2], strides = [1, 1]} : vector<24x2xf32> to vector<8x2xf32>
    %681 = arith.addf %679, %680 : vector<8x2xf32>
    %682 = arith.negf %681 : vector<8x2xf32>
    %683 = math.exp %682 : vector<8x2xf32>
    %cst_119 = arith.constant 1.000000e+00 : f32
    %684 = vector.broadcast %cst_119 : f32 to vector<8x2xf32>
    %685 = arith.addf %684, %683 : vector<8x2xf32>
    %686 = arith.divf %684, %685 : vector<8x2xf32>
    %687 = vector.extract_strided_slice %668 {offsets = [16, 0], sizes = [8, 2], strides = [1, 1]} : vector<24x2xf32> to vector<8x2xf32>
    %688 = vector.extract_strided_slice %670 {offsets = [16, 0], sizes = [8, 2], strides = [1, 1]} : vector<24x2xf32> to vector<8x2xf32>
    %689 = arith.mulf %678, %688 : vector<8x2xf32>
    %690 = arith.addf %687, %689 : vector<8x2xf32>
    %691 = math.tanh %690 : vector<8x2xf32>
    %cst_120 = arith.constant 1.000000e+00 : f32
    %692 = vector.broadcast %cst_120 : f32 to vector<8x2xf32>
    %693 = arith.subf %692, %686 : vector<8x2xf32>
    %694 = arith.mulf %693, %691 : vector<8x2xf32>
    %695 = arith.mulf %686, %667 : vector<8x2xf32>
    %696 = arith.addf %694, %695 : vector<8x2xf32>
    %697 = vector.extract_strided_slice %519 {offsets = [0, 12], sizes = [24, 2], strides = [1, 1]} : vector<24x32xf32> to vector<24x2xf32>
    %cst_121 = arith.constant dense<0.000000e+00> : vector<24x2xf32>
    %698 = tpu.matmul %520, %696, %cst_121 {dimension_numbers = #tpu.dot_dimension_numbers<[1], [0], [0], [1], [0, 0, 1, 1], [], []>} : vector<24x8xf32>, vector<8x2xf32>, vector<24x2xf32> -> vector<24x2xf32>
    %699 = arith.addf %698, %521 : vector<24x2xf32>
    %700 = vector.extract_strided_slice %697 {offsets = [0, 0], sizes = [8, 2], strides = [1, 1]} : vector<24x2xf32> to vector<8x2xf32>
    %701 = vector.extract_strided_slice %699 {offsets = [0, 0], sizes = [8, 2], strides = [1, 1]} : vector<24x2xf32> to vector<8x2xf32>
    %702 = arith.addf %700, %701 : vector<8x2xf32>
    %703 = arith.negf %702 : vector<8x2xf32>
    %704 = math.exp %703 : vector<8x2xf32>
    %cst_122 = arith.constant 1.000000e+00 : f32
    %705 = vector.broadcast %cst_122 : f32 to vector<8x2xf32>
    %706 = arith.addf %705, %704 : vector<8x2xf32>
    %707 = arith.divf %705, %706 : vector<8x2xf32>
    %708 = vector.extract_strided_slice %697 {offsets = [8, 0], sizes = [8, 2], strides = [1, 1]} : vector<24x2xf32> to vector<8x2xf32>
    %709 = vector.extract_strided_slice %699 {offsets = [8, 0], sizes = [8, 2], strides = [1, 1]} : vector<24x2xf32> to vector<8x2xf32>
    %710 = arith.addf %708, %709 : vector<8x2xf32>
    %711 = arith.negf %710 : vector<8x2xf32>
    %712 = math.exp %711 : vector<8x2xf32>
    %cst_123 = arith.constant 1.000000e+00 : f32
    %713 = vector.broadcast %cst_123 : f32 to vector<8x2xf32>
    %714 = arith.addf %713, %712 : vector<8x2xf32>
    %715 = arith.divf %713, %714 : vector<8x2xf32>
    %716 = vector.extract_strided_slice %697 {offsets = [16, 0], sizes = [8, 2], strides = [1, 1]} : vector<24x2xf32> to vector<8x2xf32>
    %717 = vector.extract_strided_slice %699 {offsets = [16, 0], sizes = [8, 2], strides = [1, 1]} : vector<24x2xf32> to vector<8x2xf32>
    %718 = arith.mulf %707, %717 : vector<8x2xf32>
    %719 = arith.addf %716, %718 : vector<8x2xf32>
    %720 = math.tanh %719 : vector<8x2xf32>
    %cst_124 = arith.constant 1.000000e+00 : f32
    %721 = vector.broadcast %cst_124 : f32 to vector<8x2xf32>
    %722 = arith.subf %721, %715 : vector<8x2xf32>
    %723 = arith.mulf %722, %720 : vector<8x2xf32>
    %724 = arith.mulf %715, %696 : vector<8x2xf32>
    %725 = arith.addf %723, %724 : vector<8x2xf32>
    %726 = vector.extract_strided_slice %519 {offsets = [0, 14], sizes = [24, 2], strides = [1, 1]} : vector<24x32xf32> to vector<24x2xf32>
    %cst_125 = arith.constant dense<0.000000e+00> : vector<24x2xf32>
    %727 = tpu.matmul %520, %725, %cst_125 {dimension_numbers = #tpu.dot_dimension_numbers<[1], [0], [0], [1], [0, 0, 1, 1], [], []>} : vector<24x8xf32>, vector<8x2xf32>, vector<24x2xf32> -> vector<24x2xf32>
    %728 = arith.addf %727, %521 : vector<24x2xf32>
    %729 = vector.extract_strided_slice %726 {offsets = [0, 0], sizes = [8, 2], strides = [1, 1]} : vector<24x2xf32> to vector<8x2xf32>
    %730 = vector.extract_strided_slice %728 {offsets = [0, 0], sizes = [8, 2], strides = [1, 1]} : vector<24x2xf32> to vector<8x2xf32>
    %731 = arith.addf %729, %730 : vector<8x2xf32>
    %732 = arith.negf %731 : vector<8x2xf32>
    %733 = math.exp %732 : vector<8x2xf32>
    %cst_126 = arith.constant 1.000000e+00 : f32
    %734 = vector.broadcast %cst_126 : f32 to vector<8x2xf32>
    %735 = arith.addf %734, %733 : vector<8x2xf32>
    %736 = arith.divf %734, %735 : vector<8x2xf32>
    %737 = vector.extract_strided_slice %726 {offsets = [8, 0], sizes = [8, 2], strides = [1, 1]} : vector<24x2xf32> to vector<8x2xf32>
    %738 = vector.extract_strided_slice %728 {offsets = [8, 0], sizes = [8, 2], strides = [1, 1]} : vector<24x2xf32> to vector<8x2xf32>
    %739 = arith.addf %737, %738 : vector<8x2xf32>
    %740 = arith.negf %739 : vector<8x2xf32>
    %741 = math.exp %740 : vector<8x2xf32>
    %cst_127 = arith.constant 1.000000e+00 : f32
    %742 = vector.broadcast %cst_127 : f32 to vector<8x2xf32>
    %743 = arith.addf %742, %741 : vector<8x2xf32>
    %744 = arith.divf %742, %743 : vector<8x2xf32>
    %745 = vector.extract_strided_slice %726 {offsets = [16, 0], sizes = [8, 2], strides = [1, 1]} : vector<24x2xf32> to vector<8x2xf32>
    %746 = vector.extract_strided_slice %728 {offsets = [16, 0], sizes = [8, 2], strides = [1, 1]} : vector<24x2xf32> to vector<8x2xf32>
    %747 = arith.mulf %736, %746 : vector<8x2xf32>
    %748 = arith.addf %745, %747 : vector<8x2xf32>
    %749 = math.tanh %748 : vector<8x2xf32>
    %cst_128 = arith.constant 1.000000e+00 : f32
    %750 = vector.broadcast %cst_128 : f32 to vector<8x2xf32>
    %751 = arith.subf %750, %744 : vector<8x2xf32>
    %752 = arith.mulf %751, %749 : vector<8x2xf32>
    %753 = arith.mulf %744, %725 : vector<8x2xf32>
    %754 = arith.addf %752, %753 : vector<8x2xf32>
    %755 = vector.extract_strided_slice %519 {offsets = [0, 16], sizes = [24, 2], strides = [1, 1]} : vector<24x32xf32> to vector<24x2xf32>
    %cst_129 = arith.constant dense<0.000000e+00> : vector<24x2xf32>
    %756 = tpu.matmul %520, %754, %cst_129 {dimension_numbers = #tpu.dot_dimension_numbers<[1], [0], [0], [1], [0, 0, 1, 1], [], []>} : vector<24x8xf32>, vector<8x2xf32>, vector<24x2xf32> -> vector<24x2xf32>
    %757 = arith.addf %756, %521 : vector<24x2xf32>
    %758 = vector.extract_strided_slice %755 {offsets = [0, 0], sizes = [8, 2], strides = [1, 1]} : vector<24x2xf32> to vector<8x2xf32>
    %759 = vector.extract_strided_slice %757 {offsets = [0, 0], sizes = [8, 2], strides = [1, 1]} : vector<24x2xf32> to vector<8x2xf32>
    %760 = arith.addf %758, %759 : vector<8x2xf32>
    %761 = arith.negf %760 : vector<8x2xf32>
    %762 = math.exp %761 : vector<8x2xf32>
    %cst_130 = arith.constant 1.000000e+00 : f32
    %763 = vector.broadcast %cst_130 : f32 to vector<8x2xf32>
    %764 = arith.addf %763, %762 : vector<8x2xf32>
    %765 = arith.divf %763, %764 : vector<8x2xf32>
    %766 = vector.extract_strided_slice %755 {offsets = [8, 0], sizes = [8, 2], strides = [1, 1]} : vector<24x2xf32> to vector<8x2xf32>
    %767 = vector.extract_strided_slice %757 {offsets = [8, 0], sizes = [8, 2], strides = [1, 1]} : vector<24x2xf32> to vector<8x2xf32>
    %768 = arith.addf %766, %767 : vector<8x2xf32>
    %769 = arith.negf %768 : vector<8x2xf32>
    %770 = math.exp %769 : vector<8x2xf32>
    %cst_131 = arith.constant 1.000000e+00 : f32
    %771 = vector.broadcast %cst_131 : f32 to vector<8x2xf32>
    %772 = arith.addf %771, %770 : vector<8x2xf32>
    %773 = arith.divf %771, %772 : vector<8x2xf32>
    %774 = vector.extract_strided_slice %755 {offsets = [16, 0], sizes = [8, 2], strides = [1, 1]} : vector<24x2xf32> to vector<8x2xf32>
    %775 = vector.extract_strided_slice %757 {offsets = [16, 0], sizes = [8, 2], strides = [1, 1]} : vector<24x2xf32> to vector<8x2xf32>
    %776 = arith.mulf %765, %775 : vector<8x2xf32>
    %777 = arith.addf %774, %776 : vector<8x2xf32>
    %778 = math.tanh %777 : vector<8x2xf32>
    %cst_132 = arith.constant 1.000000e+00 : f32
    %779 = vector.broadcast %cst_132 : f32 to vector<8x2xf32>
    %780 = arith.subf %779, %773 : vector<8x2xf32>
    %781 = arith.mulf %780, %778 : vector<8x2xf32>
    %782 = arith.mulf %773, %754 : vector<8x2xf32>
    %783 = arith.addf %781, %782 : vector<8x2xf32>
    %784 = vector.extract_strided_slice %519 {offsets = [0, 18], sizes = [24, 2], strides = [1, 1]} : vector<24x32xf32> to vector<24x2xf32>
    %cst_133 = arith.constant dense<0.000000e+00> : vector<24x2xf32>
    %785 = tpu.matmul %520, %783, %cst_133 {dimension_numbers = #tpu.dot_dimension_numbers<[1], [0], [0], [1], [0, 0, 1, 1], [], []>} : vector<24x8xf32>, vector<8x2xf32>, vector<24x2xf32> -> vector<24x2xf32>
    %786 = arith.addf %785, %521 : vector<24x2xf32>
    %787 = vector.extract_strided_slice %784 {offsets = [0, 0], sizes = [8, 2], strides = [1, 1]} : vector<24x2xf32> to vector<8x2xf32>
    %788 = vector.extract_strided_slice %786 {offsets = [0, 0], sizes = [8, 2], strides = [1, 1]} : vector<24x2xf32> to vector<8x2xf32>
    %789 = arith.addf %787, %788 : vector<8x2xf32>
    %790 = arith.negf %789 : vector<8x2xf32>
    %791 = math.exp %790 : vector<8x2xf32>
    %cst_134 = arith.constant 1.000000e+00 : f32
    %792 = vector.broadcast %cst_134 : f32 to vector<8x2xf32>
    %793 = arith.addf %792, %791 : vector<8x2xf32>
    %794 = arith.divf %792, %793 : vector<8x2xf32>
    %795 = vector.extract_strided_slice %784 {offsets = [8, 0], sizes = [8, 2], strides = [1, 1]} : vector<24x2xf32> to vector<8x2xf32>
    %796 = vector.extract_strided_slice %786 {offsets = [8, 0], sizes = [8, 2], strides = [1, 1]} : vector<24x2xf32> to vector<8x2xf32>
    %797 = arith.addf %795, %796 : vector<8x2xf32>
    %798 = arith.negf %797 : vector<8x2xf32>
    %799 = math.exp %798 : vector<8x2xf32>
    %cst_135 = arith.constant 1.000000e+00 : f32
    %800 = vector.broadcast %cst_135 : f32 to vector<8x2xf32>
    %801 = arith.addf %800, %799 : vector<8x2xf32>
    %802 = arith.divf %800, %801 : vector<8x2xf32>
    %803 = vector.extract_strided_slice %784 {offsets = [16, 0], sizes = [8, 2], strides = [1, 1]} : vector<24x2xf32> to vector<8x2xf32>
    %804 = vector.extract_strided_slice %786 {offsets = [16, 0], sizes = [8, 2], strides = [1, 1]} : vector<24x2xf32> to vector<8x2xf32>
    %805 = arith.mulf %794, %804 : vector<8x2xf32>
    %806 = arith.addf %803, %805 : vector<8x2xf32>
    %807 = math.tanh %806 : vector<8x2xf32>
    %cst_136 = arith.constant 1.000000e+00 : f32
    %808 = vector.broadcast %cst_136 : f32 to vector<8x2xf32>
    %809 = arith.subf %808, %802 : vector<8x2xf32>
    %810 = arith.mulf %809, %807 : vector<8x2xf32>
    %811 = arith.mulf %802, %783 : vector<8x2xf32>
    %812 = arith.addf %810, %811 : vector<8x2xf32>
    %813 = vector.extract_strided_slice %519 {offsets = [0, 20], sizes = [24, 2], strides = [1, 1]} : vector<24x32xf32> to vector<24x2xf32>
    %cst_137 = arith.constant dense<0.000000e+00> : vector<24x2xf32>
    %814 = tpu.matmul %520, %812, %cst_137 {dimension_numbers = #tpu.dot_dimension_numbers<[1], [0], [0], [1], [0, 0, 1, 1], [], []>} : vector<24x8xf32>, vector<8x2xf32>, vector<24x2xf32> -> vector<24x2xf32>
    %815 = arith.addf %814, %521 : vector<24x2xf32>
    %816 = vector.extract_strided_slice %813 {offsets = [0, 0], sizes = [8, 2], strides = [1, 1]} : vector<24x2xf32> to vector<8x2xf32>
    %817 = vector.extract_strided_slice %815 {offsets = [0, 0], sizes = [8, 2], strides = [1, 1]} : vector<24x2xf32> to vector<8x2xf32>
    %818 = arith.addf %816, %817 : vector<8x2xf32>
    %819 = arith.negf %818 : vector<8x2xf32>
    %820 = math.exp %819 : vector<8x2xf32>
    %cst_138 = arith.constant 1.000000e+00 : f32
    %821 = vector.broadcast %cst_138 : f32 to vector<8x2xf32>
    %822 = arith.addf %821, %820 : vector<8x2xf32>
    %823 = arith.divf %821, %822 : vector<8x2xf32>
    %824 = vector.extract_strided_slice %813 {offsets = [8, 0], sizes = [8, 2], strides = [1, 1]} : vector<24x2xf32> to vector<8x2xf32>
    %825 = vector.extract_strided_slice %815 {offsets = [8, 0], sizes = [8, 2], strides = [1, 1]} : vector<24x2xf32> to vector<8x2xf32>
    %826 = arith.addf %824, %825 : vector<8x2xf32>
    %827 = arith.negf %826 : vector<8x2xf32>
    %828 = math.exp %827 : vector<8x2xf32>
    %cst_139 = arith.constant 1.000000e+00 : f32
    %829 = vector.broadcast %cst_139 : f32 to vector<8x2xf32>
    %830 = arith.addf %829, %828 : vector<8x2xf32>
    %831 = arith.divf %829, %830 : vector<8x2xf32>
    %832 = vector.extract_strided_slice %813 {offsets = [16, 0], sizes = [8, 2], strides = [1, 1]} : vector<24x2xf32> to vector<8x2xf32>
    %833 = vector.extract_strided_slice %815 {offsets = [16, 0], sizes = [8, 2], strides = [1, 1]} : vector<24x2xf32> to vector<8x2xf32>
    %834 = arith.mulf %823, %833 : vector<8x2xf32>
    %835 = arith.addf %832, %834 : vector<8x2xf32>
    %836 = math.tanh %835 : vector<8x2xf32>
    %cst_140 = arith.constant 1.000000e+00 : f32
    %837 = vector.broadcast %cst_140 : f32 to vector<8x2xf32>
    %838 = arith.subf %837, %831 : vector<8x2xf32>
    %839 = arith.mulf %838, %836 : vector<8x2xf32>
    %840 = arith.mulf %831, %812 : vector<8x2xf32>
    %841 = arith.addf %839, %840 : vector<8x2xf32>
    %842 = vector.extract_strided_slice %519 {offsets = [0, 22], sizes = [24, 2], strides = [1, 1]} : vector<24x32xf32> to vector<24x2xf32>
    %cst_141 = arith.constant dense<0.000000e+00> : vector<24x2xf32>
    %843 = tpu.matmul %520, %841, %cst_141 {dimension_numbers = #tpu.dot_dimension_numbers<[1], [0], [0], [1], [0, 0, 1, 1], [], []>} : vector<24x8xf32>, vector<8x2xf32>, vector<24x2xf32> -> vector<24x2xf32>
    %844 = arith.addf %843, %521 : vector<24x2xf32>
    %845 = vector.extract_strided_slice %842 {offsets = [0, 0], sizes = [8, 2], strides = [1, 1]} : vector<24x2xf32> to vector<8x2xf32>
    %846 = vector.extract_strided_slice %844 {offsets = [0, 0], sizes = [8, 2], strides = [1, 1]} : vector<24x2xf32> to vector<8x2xf32>
    %847 = arith.addf %845, %846 : vector<8x2xf32>
    %848 = arith.negf %847 : vector<8x2xf32>
    %849 = math.exp %848 : vector<8x2xf32>
    %cst_142 = arith.constant 1.000000e+00 : f32
    %850 = vector.broadcast %cst_142 : f32 to vector<8x2xf32>
    %851 = arith.addf %850, %849 : vector<8x2xf32>
    %852 = arith.divf %850, %851 : vector<8x2xf32>
    %853 = vector.extract_strided_slice %842 {offsets = [8, 0], sizes = [8, 2], strides = [1, 1]} : vector<24x2xf32> to vector<8x2xf32>
    %854 = vector.extract_strided_slice %844 {offsets = [8, 0], sizes = [8, 2], strides = [1, 1]} : vector<24x2xf32> to vector<8x2xf32>
    %855 = arith.addf %853, %854 : vector<8x2xf32>
    %856 = arith.negf %855 : vector<8x2xf32>
    %857 = math.exp %856 : vector<8x2xf32>
    %cst_143 = arith.constant 1.000000e+00 : f32
    %858 = vector.broadcast %cst_143 : f32 to vector<8x2xf32>
    %859 = arith.addf %858, %857 : vector<8x2xf32>
    %860 = arith.divf %858, %859 : vector<8x2xf32>
    %861 = vector.extract_strided_slice %842 {offsets = [16, 0], sizes = [8, 2], strides = [1, 1]} : vector<24x2xf32> to vector<8x2xf32>
    %862 = vector.extract_strided_slice %844 {offsets = [16, 0], sizes = [8, 2], strides = [1, 1]} : vector<24x2xf32> to vector<8x2xf32>
    %863 = arith.mulf %852, %862 : vector<8x2xf32>
    %864 = arith.addf %861, %863 : vector<8x2xf32>
    %865 = math.tanh %864 : vector<8x2xf32>
    %cst_144 = arith.constant 1.000000e+00 : f32
    %866 = vector.broadcast %cst_144 : f32 to vector<8x2xf32>
    %867 = arith.subf %866, %860 : vector<8x2xf32>
    %868 = arith.mulf %867, %865 : vector<8x2xf32>
    %869 = arith.mulf %860, %841 : vector<8x2xf32>
    %870 = arith.addf %868, %869 : vector<8x2xf32>
    %871 = vector.extract_strided_slice %519 {offsets = [0, 24], sizes = [24, 2], strides = [1, 1]} : vector<24x32xf32> to vector<24x2xf32>
    %cst_145 = arith.constant dense<0.000000e+00> : vector<24x2xf32>
    %872 = tpu.matmul %520, %870, %cst_145 {dimension_numbers = #tpu.dot_dimension_numbers<[1], [0], [0], [1], [0, 0, 1, 1], [], []>} : vector<24x8xf32>, vector<8x2xf32>, vector<24x2xf32> -> vector<24x2xf32>
    %873 = arith.addf %872, %521 : vector<24x2xf32>
    %874 = vector.extract_strided_slice %871 {offsets = [0, 0], sizes = [8, 2], strides = [1, 1]} : vector<24x2xf32> to vector<8x2xf32>
    %875 = vector.extract_strided_slice %873 {offsets = [0, 0], sizes = [8, 2], strides = [1, 1]} : vector<24x2xf32> to vector<8x2xf32>
    %876 = arith.addf %874, %875 : vector<8x2xf32>
    %877 = arith.negf %876 : vector<8x2xf32>
    %878 = math.exp %877 : vector<8x2xf32>
    %cst_146 = arith.constant 1.000000e+00 : f32
    %879 = vector.broadcast %cst_146 : f32 to vector<8x2xf32>
    %880 = arith.addf %879, %878 : vector<8x2xf32>
    %881 = arith.divf %879, %880 : vector<8x2xf32>
    %882 = vector.extract_strided_slice %871 {offsets = [8, 0], sizes = [8, 2], strides = [1, 1]} : vector<24x2xf32> to vector<8x2xf32>
    %883 = vector.extract_strided_slice %873 {offsets = [8, 0], sizes = [8, 2], strides = [1, 1]} : vector<24x2xf32> to vector<8x2xf32>
    %884 = arith.addf %882, %883 : vector<8x2xf32>
    %885 = arith.negf %884 : vector<8x2xf32>
    %886 = math.exp %885 : vector<8x2xf32>
    %cst_147 = arith.constant 1.000000e+00 : f32
    %887 = vector.broadcast %cst_147 : f32 to vector<8x2xf32>
    %888 = arith.addf %887, %886 : vector<8x2xf32>
    %889 = arith.divf %887, %888 : vector<8x2xf32>
    %890 = vector.extract_strided_slice %871 {offsets = [16, 0], sizes = [8, 2], strides = [1, 1]} : vector<24x2xf32> to vector<8x2xf32>
    %891 = vector.extract_strided_slice %873 {offsets = [16, 0], sizes = [8, 2], strides = [1, 1]} : vector<24x2xf32> to vector<8x2xf32>
    %892 = arith.mulf %881, %891 : vector<8x2xf32>
    %893 = arith.addf %890, %892 : vector<8x2xf32>
    %894 = math.tanh %893 : vector<8x2xf32>
    %cst_148 = arith.constant 1.000000e+00 : f32
    %895 = vector.broadcast %cst_148 : f32 to vector<8x2xf32>
    %896 = arith.subf %895, %889 : vector<8x2xf32>
    %897 = arith.mulf %896, %894 : vector<8x2xf32>
    %898 = arith.mulf %889, %870 : vector<8x2xf32>
    %899 = arith.addf %897, %898 : vector<8x2xf32>
    %900 = vector.extract_strided_slice %519 {offsets = [0, 26], sizes = [24, 2], strides = [1, 1]} : vector<24x32xf32> to vector<24x2xf32>
    %cst_149 = arith.constant dense<0.000000e+00> : vector<24x2xf32>
    %901 = tpu.matmul %520, %899, %cst_149 {dimension_numbers = #tpu.dot_dimension_numbers<[1], [0], [0], [1], [0, 0, 1, 1], [], []>} : vector<24x8xf32>, vector<8x2xf32>, vector<24x2xf32> -> vector<24x2xf32>
    %902 = arith.addf %901, %521 : vector<24x2xf32>
    %903 = vector.extract_strided_slice %900 {offsets = [0, 0], sizes = [8, 2], strides = [1, 1]} : vector<24x2xf32> to vector<8x2xf32>
    %904 = vector.extract_strided_slice %902 {offsets = [0, 0], sizes = [8, 2], strides = [1, 1]} : vector<24x2xf32> to vector<8x2xf32>
    %905 = arith.addf %903, %904 : vector<8x2xf32>
    %906 = arith.negf %905 : vector<8x2xf32>
    %907 = math.exp %906 : vector<8x2xf32>
    %cst_150 = arith.constant 1.000000e+00 : f32
    %908 = vector.broadcast %cst_150 : f32 to vector<8x2xf32>
    %909 = arith.addf %908, %907 : vector<8x2xf32>
    %910 = arith.divf %908, %909 : vector<8x2xf32>
    %911 = vector.extract_strided_slice %900 {offsets = [8, 0], sizes = [8, 2], strides = [1, 1]} : vector<24x2xf32> to vector<8x2xf32>
    %912 = vector.extract_strided_slice %902 {offsets = [8, 0], sizes = [8, 2], strides = [1, 1]} : vector<24x2xf32> to vector<8x2xf32>
    %913 = arith.addf %911, %912 : vector<8x2xf32>
    %914 = arith.negf %913 : vector<8x2xf32>
    %915 = math.exp %914 : vector<8x2xf32>
    %cst_151 = arith.constant 1.000000e+00 : f32
    %916 = vector.broadcast %cst_151 : f32 to vector<8x2xf32>
    %917 = arith.addf %916, %915 : vector<8x2xf32>
    %918 = arith.divf %916, %917 : vector<8x2xf32>
    %919 = vector.extract_strided_slice %900 {offsets = [16, 0], sizes = [8, 2], strides = [1, 1]} : vector<24x2xf32> to vector<8x2xf32>
    %920 = vector.extract_strided_slice %902 {offsets = [16, 0], sizes = [8, 2], strides = [1, 1]} : vector<24x2xf32> to vector<8x2xf32>
    %921 = arith.mulf %910, %920 : vector<8x2xf32>
    %922 = arith.addf %919, %921 : vector<8x2xf32>
    %923 = math.tanh %922 : vector<8x2xf32>
    %cst_152 = arith.constant 1.000000e+00 : f32
    %924 = vector.broadcast %cst_152 : f32 to vector<8x2xf32>
    %925 = arith.subf %924, %918 : vector<8x2xf32>
    %926 = arith.mulf %925, %923 : vector<8x2xf32>
    %927 = arith.mulf %918, %899 : vector<8x2xf32>
    %928 = arith.addf %926, %927 : vector<8x2xf32>
    %929 = vector.extract_strided_slice %519 {offsets = [0, 28], sizes = [24, 2], strides = [1, 1]} : vector<24x32xf32> to vector<24x2xf32>
    %cst_153 = arith.constant dense<0.000000e+00> : vector<24x2xf32>
    %930 = tpu.matmul %520, %928, %cst_153 {dimension_numbers = #tpu.dot_dimension_numbers<[1], [0], [0], [1], [0, 0, 1, 1], [], []>} : vector<24x8xf32>, vector<8x2xf32>, vector<24x2xf32> -> vector<24x2xf32>
    %931 = arith.addf %930, %521 : vector<24x2xf32>
    %932 = vector.extract_strided_slice %929 {offsets = [0, 0], sizes = [8, 2], strides = [1, 1]} : vector<24x2xf32> to vector<8x2xf32>
    %933 = vector.extract_strided_slice %931 {offsets = [0, 0], sizes = [8, 2], strides = [1, 1]} : vector<24x2xf32> to vector<8x2xf32>
    %934 = arith.addf %932, %933 : vector<8x2xf32>
    %935 = arith.negf %934 : vector<8x2xf32>
    %936 = math.exp %935 : vector<8x2xf32>
    %cst_154 = arith.constant 1.000000e+00 : f32
    %937 = vector.broadcast %cst_154 : f32 to vector<8x2xf32>
    %938 = arith.addf %937, %936 : vector<8x2xf32>
    %939 = arith.divf %937, %938 : vector<8x2xf32>
    %940 = vector.extract_strided_slice %929 {offsets = [8, 0], sizes = [8, 2], strides = [1, 1]} : vector<24x2xf32> to vector<8x2xf32>
    %941 = vector.extract_strided_slice %931 {offsets = [8, 0], sizes = [8, 2], strides = [1, 1]} : vector<24x2xf32> to vector<8x2xf32>
    %942 = arith.addf %940, %941 : vector<8x2xf32>
    %943 = arith.negf %942 : vector<8x2xf32>
    %944 = math.exp %943 : vector<8x2xf32>
    %cst_155 = arith.constant 1.000000e+00 : f32
    %945 = vector.broadcast %cst_155 : f32 to vector<8x2xf32>
    %946 = arith.addf %945, %944 : vector<8x2xf32>
    %947 = arith.divf %945, %946 : vector<8x2xf32>
    %948 = vector.extract_strided_slice %929 {offsets = [16, 0], sizes = [8, 2], strides = [1, 1]} : vector<24x2xf32> to vector<8x2xf32>
    %949 = vector.extract_strided_slice %931 {offsets = [16, 0], sizes = [8, 2], strides = [1, 1]} : vector<24x2xf32> to vector<8x2xf32>
    %950 = arith.mulf %939, %949 : vector<8x2xf32>
    %951 = arith.addf %948, %950 : vector<8x2xf32>
    %952 = math.tanh %951 : vector<8x2xf32>
    %cst_156 = arith.constant 1.000000e+00 : f32
    %953 = vector.broadcast %cst_156 : f32 to vector<8x2xf32>
    %954 = arith.subf %953, %947 : vector<8x2xf32>
    %955 = arith.mulf %954, %952 : vector<8x2xf32>
    %956 = arith.mulf %947, %928 : vector<8x2xf32>
    %957 = arith.addf %955, %956 : vector<8x2xf32>
    %958 = vector.extract_strided_slice %519 {offsets = [0, 30], sizes = [24, 2], strides = [1, 1]} : vector<24x32xf32> to vector<24x2xf32>
    %cst_157 = arith.constant dense<0.000000e+00> : vector<24x2xf32>
    %959 = tpu.matmul %520, %957, %cst_157 {dimension_numbers = #tpu.dot_dimension_numbers<[1], [0], [0], [1], [0, 0, 1, 1], [], []>} : vector<24x8xf32>, vector<8x2xf32>, vector<24x2xf32> -> vector<24x2xf32>
    %960 = arith.addf %959, %521 : vector<24x2xf32>
    %961 = vector.extract_strided_slice %958 {offsets = [0, 0], sizes = [8, 2], strides = [1, 1]} : vector<24x2xf32> to vector<8x2xf32>
    %962 = vector.extract_strided_slice %960 {offsets = [0, 0], sizes = [8, 2], strides = [1, 1]} : vector<24x2xf32> to vector<8x2xf32>
    %963 = arith.addf %961, %962 : vector<8x2xf32>
    %964 = arith.negf %963 : vector<8x2xf32>
    %965 = math.exp %964 : vector<8x2xf32>
    %cst_158 = arith.constant 1.000000e+00 : f32
    %966 = vector.broadcast %cst_158 : f32 to vector<8x2xf32>
    %967 = arith.addf %966, %965 : vector<8x2xf32>
    %968 = arith.divf %966, %967 : vector<8x2xf32>
    %969 = vector.extract_strided_slice %958 {offsets = [8, 0], sizes = [8, 2], strides = [1, 1]} : vector<24x2xf32> to vector<8x2xf32>
    %970 = vector.extract_strided_slice %960 {offsets = [8, 0], sizes = [8, 2], strides = [1, 1]} : vector<24x2xf32> to vector<8x2xf32>
    %971 = arith.addf %969, %970 : vector<8x2xf32>
    %972 = arith.negf %971 : vector<8x2xf32>
    %973 = math.exp %972 : vector<8x2xf32>
    %cst_159 = arith.constant 1.000000e+00 : f32
    %974 = vector.broadcast %cst_159 : f32 to vector<8x2xf32>
    %975 = arith.addf %974, %973 : vector<8x2xf32>
    %976 = arith.divf %974, %975 : vector<8x2xf32>
    %977 = vector.extract_strided_slice %958 {offsets = [16, 0], sizes = [8, 2], strides = [1, 1]} : vector<24x2xf32> to vector<8x2xf32>
    %978 = vector.extract_strided_slice %960 {offsets = [16, 0], sizes = [8, 2], strides = [1, 1]} : vector<24x2xf32> to vector<8x2xf32>
    %979 = arith.mulf %968, %978 : vector<8x2xf32>
    %980 = arith.addf %977, %979 : vector<8x2xf32>
    %981 = math.tanh %980 : vector<8x2xf32>
    %cst_160 = arith.constant 1.000000e+00 : f32
    %982 = vector.broadcast %cst_160 : f32 to vector<8x2xf32>
    %983 = arith.subf %982, %976 : vector<8x2xf32>
    %984 = arith.mulf %983, %981 : vector<8x2xf32>
    %985 = arith.mulf %976, %957 : vector<8x2xf32>
    %986 = arith.addf %984, %985 : vector<8x2xf32>
    %987 = vector.extract_strided_slice %514 {offsets = [0, 0], sizes = [4, 1], strides = [1, 1]} : vector<8x2xf32> to vector<4x1xf32>
    %988 = vector.extract_strided_slice %986 {offsets = [0, 0], sizes = [4, 1], strides = [1, 1]} : vector<8x2xf32> to vector<4x1xf32>
    %989 = tpu.concatenate %987, %988 in 1 : vector<4x1xf32>, vector<4x1xf32> -> vector<4x2xf32>
    %990 = vector.extract_strided_slice %514 {offsets = [0, 1], sizes = [4, 1], strides = [1, 1]} : vector<8x2xf32> to vector<4x1xf32>
    %991 = vector.extract_strided_slice %986 {offsets = [0, 1], sizes = [4, 1], strides = [1, 1]} : vector<8x2xf32> to vector<4x1xf32>
    %992 = tpu.concatenate %990, %991 in 1 : vector<4x1xf32>, vector<4x1xf32> -> vector<4x2xf32>
    %993 = tpu.concatenate %989, %992 in 0 : vector<4x2xf32>, vector<4x2xf32> -> vector<8x2xf32>
    %c312 = arith.constant 312 : index
    %c0_161 = arith.constant 0 : index
    %994 = vector.load %arg1[%c312, %c0_161] : memref<760x256xf32, #tpu.memory_space<vmem>>, vector<2x8xf32>
    %cst_162 = arith.constant dense<0.000000e+00> : vector<8x8xf32>
    %995 = tpu.matmul %993, %994, %cst_162 {dimension_numbers = #tpu.dot_dimension_numbers<[1], [0], [0], [1], [0, 0, 1, 1], [], []>} : vector<8x2xf32>, vector<2x8xf32>, vector<8x8xf32> -> vector<8x8xf32>
    %c320 = arith.constant 320 : index
    %c0_163 = arith.constant 0 : index
    %996 = vector.load %arg1[%c320, %c0_163] : memref<760x256xf32, #tpu.memory_space<vmem>>, vector<8x8xf32>
    %997 = arith.addf %995, %996 : vector<8x8xf32>
    %998 = tpu.concatenate %42, %997 in 1 : vector<8x8xf32>, vector<8x8xf32> -> vector<8x16xf32>
    %c328 = arith.constant 328 : index
    %c0_164 = arith.constant 0 : index
    %999 = vector.load %arg1[%c328, %c0_164] : memref<760x256xf32, #tpu.memory_space<vmem>>, vector<16x8xf32>
    %cst_165 = arith.constant dense<0.000000e+00> : vector<8x8xf32>
    %1000 = tpu.matmul %998, %999, %cst_165 {dimension_numbers = #tpu.dot_dimension_numbers<[1], [0], [0], [1], [0, 0, 1, 1], [], []>} : vector<8x16xf32>, vector<16x8xf32>, vector<8x8xf32> -> vector<8x8xf32>
    %c344 = arith.constant 344 : index
    %c0_166 = arith.constant 0 : index
    %1001 = vector.load %arg1[%c344, %c0_166] : memref<760x256xf32, #tpu.memory_space<vmem>>, vector<8x8xf32>
    %1002 = arith.addf %1000, %1001 : vector<8x8xf32>
    %cst_167 = arith.constant dense<0.000000e+00> : vector<8xf32>
    %1003 = vector.multi_reduction <add>, %1002, %cst_167 [1] : vector<8x8xf32> to vector<8xf32>
    %1004 = vector.shape_cast %1003 : vector<8xf32> to vector<8x1xf32>
    %1005 = arith.mulf %1002, %1002 : vector<8x8xf32>
    %cst_168 = arith.constant dense<0.000000e+00> : vector<8xf32>
    %1006 = vector.multi_reduction <add>, %1005, %cst_168 [1] : vector<8x8xf32> to vector<8xf32>
    %1007 = vector.shape_cast %1006 : vector<8xf32> to vector<8x1xf32>
    %1008 = vector.extract_strided_slice %1004 {offsets = [0, 0], sizes = [4, 1], strides = [1, 1]} : vector<8x1xf32> to vector<4x1xf32>
    %1009 = vector.extract_strided_slice %1007 {offsets = [0, 0], sizes = [4, 1], strides = [1, 1]} : vector<8x1xf32> to vector<4x1xf32>
    %1010 = vector.extract_strided_slice %1004 {offsets = [4, 0], sizes = [4, 1], strides = [1, 1]} : vector<8x1xf32> to vector<4x1xf32>
    %1011 = arith.addf %1008, %1010 : vector<4x1xf32>
    %1012 = vector.extract_strided_slice %1007 {offsets = [4, 0], sizes = [4, 1], strides = [1, 1]} : vector<8x1xf32> to vector<4x1xf32>
    %1013 = arith.addf %1009, %1012 : vector<4x1xf32>
    %cst_169 = arith.constant 6.250000e-02 : f32
    %1014 = vector.broadcast %cst_169 : f32 to vector<4x1xf32>
    %1015 = arith.mulf %1011, %1014 : vector<4x1xf32>
    %cst_170 = arith.constant 6.250000e-02 : f32
    %1016 = vector.broadcast %cst_170 : f32 to vector<4x1xf32>
    %1017 = arith.mulf %1013, %1016 : vector<4x1xf32>
    %1018 = arith.mulf %1015, %1015 : vector<4x1xf32>
    %1019 = arith.subf %1017, %1018 : vector<4x1xf32>
    %cst_171 = arith.constant 9.99999974E-6 : f32
    %1020 = vector.broadcast %cst_171 : f32 to vector<4x1xf32>
    %1021 = arith.addf %1019, %1020 : vector<4x1xf32>
    %1022 = math.rsqrt %1021 : vector<4x1xf32>
    %c352 = arith.constant 352 : index
    %c0_172 = arith.constant 0 : index
    %1023 = vector.load %arg1[%c352, %c0_172] : memref<760x256xf32, #tpu.memory_space<vmem>>, vector<4x1xf32>
    %1024 = arith.mulf %1022, %1023 : vector<4x1xf32>
    %c360 = arith.constant 360 : index
    %c0_173 = arith.constant 0 : index
    %1025 = vector.load %arg1[%c360, %c0_173] : memref<760x256xf32, #tpu.memory_space<vmem>>, vector<4x1xf32>
    %1026 = arith.mulf %1015, %1024 : vector<4x1xf32>
    %1027 = arith.subf %1025, %1026 : vector<4x1xf32>
    %1028 = tpu.concatenate %1024, %1024 in 0 : vector<4x1xf32>, vector<4x1xf32> -> vector<8x1xf32>
    %1029 = tpu.concatenate %1027, %1027 in 0 : vector<4x1xf32>, vector<4x1xf32> -> vector<8x1xf32>
    %1030 = vector.broadcast %1028 : vector<8x1xf32> to vector<8x8xf32>
    %1031 = arith.mulf %1002, %1030 : vector<8x8xf32>
    %1032 = vector.broadcast %1029 : vector<8x1xf32> to vector<8x8xf32>
    %1033 = arith.addf %1031, %1032 : vector<8x8xf32>
    %c368 = arith.constant 368 : index
    %c0_174 = arith.constant 0 : index
    %1034 = vector.load %arg1[%c368, %c0_174] : memref<760x256xf32, #tpu.memory_space<vmem>>, vector<8x16xf32>
    %cst_175 = arith.constant dense<0.000000e+00> : vector<8x16xf32>
    %1035 = tpu.matmul %1033, %1034, %cst_175 {dimension_numbers = #tpu.dot_dimension_numbers<[1], [0], [0], [1], [0, 0, 1, 1], [], []>} : vector<8x8xf32>, vector<8x16xf32>, vector<8x16xf32> -> vector<8x16xf32>
    %c376 = arith.constant 376 : index
    %c0_176 = arith.constant 0 : index
    %1036 = vector.load %arg1[%c376, %c0_176] : memref<760x256xf32, #tpu.memory_space<vmem>>, vector<8x16xf32>
    %1037 = arith.addf %1035, %1036 : vector<8x16xf32>
    %cst_177 = arith.constant 0.000000e+00 : f32
    %1038 = vector.broadcast %cst_177 : f32 to vector<8x16xf32>
    %1039 = arith.maximumf %1037, %1038 : vector<8x16xf32>
    %c384 = arith.constant 384 : index
    %c0_178 = arith.constant 0 : index
    %1040 = vector.load %arg1[%c384, %c0_178] : memref<760x256xf32, #tpu.memory_space<vmem>>, vector<16x8xf32>
    %cst_179 = arith.constant dense<0.000000e+00> : vector<16x16xf32>
    %1041 = tpu.matmul %1040, %1039, %cst_179 {dimension_numbers = #tpu.dot_dimension_numbers<[1], [0], [0], [1], [0, 0, 1, 1], [], []>} : vector<16x8xf32>, vector<8x16xf32>, vector<16x16xf32> -> vector<16x16xf32>
    %c400 = arith.constant 400 : index
    %c0_180 = arith.constant 0 : index
    %1042 = vector.load %arg1[%c400, %c0_180] : memref<760x256xf32, #tpu.memory_space<vmem>>, vector<16x16xf32>
    %1043 = arith.addf %1041, %1042 : vector<16x16xf32>
    %c416 = arith.constant 416 : index
    %c0_181 = arith.constant 0 : index
    %1044 = vector.load %arg1[%c416, %c0_181] : memref<760x256xf32, #tpu.memory_space<vmem>>, vector<16x32xf32>
    %cst_182 = arith.constant dense<0.000000e+00> : vector<16x32xf32>
    %1045 = tpu.matmul %1043, %1044, %cst_182 {dimension_numbers = #tpu.dot_dimension_numbers<[1], [0], [0], [1], [0, 0, 1, 1], [], []>} : vector<16x16xf32>, vector<16x32xf32>, vector<16x32xf32> -> vector<16x32xf32>
    %c432 = arith.constant 432 : index
    %c0_183 = arith.constant 0 : index
    %1046 = vector.load %arg1[%c432, %c0_183] : memref<760x256xf32, #tpu.memory_space<vmem>>, vector<16x32xf32>
    %1047 = arith.addf %1045, %1046 : vector<16x32xf32>
    %c448 = arith.constant 448 : index
    %c0_184 = arith.constant 0 : index
    %1048 = vector.load %arg1[%c448, %c0_184] : memref<760x256xf32, #tpu.memory_space<vmem>>, vector<128x16xf32>
    %cst_185 = arith.constant dense<0.000000e+00> : vector<128x32xf32>
    %1049 = tpu.matmul %1048, %1047, %cst_185 {dimension_numbers = #tpu.dot_dimension_numbers<[1], [0], [0], [1], [0, 0, 1, 1], [], []>} : vector<128x16xf32>, vector<16x32xf32>, vector<128x32xf32> -> vector<128x32xf32>
    %c576 = arith.constant 576 : index
    %c0_186 = arith.constant 0 : index
    %1050 = vector.load %arg1[%c576, %c0_186] : memref<760x256xf32, #tpu.memory_space<vmem>>, vector<128x32xf32>
    %1051 = arith.addf %1049, %1050 : vector<128x32xf32>
    %cst_187 = arith.constant 0.000000e+00 : f32
    %1052 = vector.broadcast %cst_187 : f32 to vector<128x32xf32>
    %1053 = arith.maximumf %1051, %1052 : vector<128x32xf32>
    %c704 = arith.constant 704 : index
    %c0_188 = arith.constant 0 : index
    %1054 = vector.load %arg1[%c704, %c0_188] : memref<760x256xf32, #tpu.memory_space<vmem>>, vector<6x128xf32>
    %cst_189 = arith.constant dense<0.000000e+00> : vector<6x32xf32>
    %1055 = tpu.matmul %1054, %1053, %cst_189 {dimension_numbers = #tpu.dot_dimension_numbers<[1], [0], [0], [1], [0, 0, 1, 1], [], []>} : vector<6x128xf32>, vector<128x32xf32>, vector<6x32xf32> -> vector<6x32xf32>
    %c712 = arith.constant 712 : index
    %c0_190 = arith.constant 0 : index
    %1056 = vector.load %arg1[%c712, %c0_190] : memref<760x256xf32, #tpu.memory_space<vmem>>, vector<6x32xf32>
    %1057 = arith.addf %1055, %1056 : vector<6x32xf32>
    %c720 = arith.constant 720 : index
    %c0_191 = arith.constant 0 : index
    %1058 = vector.load %arg1[%c720, %c0_191] : memref<760x256xf32, #tpu.memory_space<vmem>>, vector<32x16xf32>
    %cst_192 = arith.constant dense<0.000000e+00> : vector<6x16xf32>
    %1059 = tpu.matmul %1057, %1058, %cst_192 {dimension_numbers = #tpu.dot_dimension_numbers<[1], [0], [0], [1], [0, 0, 1, 1], [], []>} : vector<6x32xf32>, vector<32x16xf32>, vector<6x16xf32> -> vector<6x16xf32>
    %c752 = arith.constant 752 : index
    %c0_193 = arith.constant 0 : index
    %1060 = vector.load %arg1[%c752, %c0_193] : memref<760x256xf32, #tpu.memory_space<vmem>>, vector<6x16xf32>
    %1061 = arith.addf %1059, %1060 : vector<6x16xf32>
    %c0_194 = arith.constant 0 : index
    %c0_195 = arith.constant 0 : index
    %1062 = vector.load %arg2[%c0_194, %c0_195] : memref<6x16xf32, #tpu.memory_space<vmem>>, vector<6x16xf32>
    tpu.vector_store %arg2[%c0_194, %c0_195], %1061 {strides = array<i32>} : memref<6x16xf32, #tpu.memory_space<vmem>>, vector<6x16xf32>,
    return
  }
}

</mosaic_0001>

<bundles_post_ra>
// kernel: forward.1
= control target key start
LH: loop header
LB: loop body
LE: loop exit
PB: predicated region body
PF: predicated region fallthrough
CT: control target
= control target key end

     0   :  { %7 = vsyncpa [#allocation3], 0  ;;  %s6932_s9 = smov [#allocation2]   ;;  %s8041_s0 = inlined_call_operand.vmem [shape: f32[56,32], index: 0, kind: input, shape index: {}]   ;;  %s8042_s1 = inlined_call_operand.hbm [shape: f32[760,256], index: 1, kind: input, shape index: {}]   ;;  %s8043_s2 = inlined_call_operand.vmem [shape: f32[6,16], index: 2, kind: output, shape index: {}]  }
   0x1   :  { %s15_s10 = sshll.u32 %s6932_s9, 4  ;;  %s6908_s13 = scalar_lea.hbm %s8042_s1, 24320  ;;  %s16_s10 = int_to_ptr.vmem [resolvable:$true] %s15_s10 }
   0x2   :  { %p6909_p0 = scmp.ne.s32.totalorder %s8042_s1, %s6908_s13  ;;  %p6912_p1 = scmp.lt.u32.totalorder %s6908_s13, %s8042_s1 }
   0x4   :  { %p6914_p2 = pnand %p6912_p1, %p6909_p0 }
   0x6   :  { %6917 = shalt.err (!%p6914_p2)
}
   0x7   :  { %s6918_s18 = scalar_lea.vmem %s16_s10, 24320  ;;  %p6923_p4 = scmp.lt.s32.totalorder %s16_s10, %s16_s10 }
   0x8   :  { %p6919_p3 = scmp.ne.s32.totalorder %s16_s10, %s6918_s18  ;;  %p6924_p5 = scmp.lt.s32.totalorder %s6918_s18, %s6918_s18 }
   0xa   :  { %p6925_p6 = por %p6924_p5, %p6923_p4 }
   0xc   :  { %p6926_p7 = pnand %p6925_p6, %p6919_p3 }
   0xe   :  { %6929 = shalt.err (!%p6926_p7)
}
   0xf   :  { %s6933_s19 = smov 256   ;;  %s6934_s20 = smov 16  }
  0x10   :  { %21 = dma.hbm_to_vmem [thread:$0]  %s8042_s1, 24320, %s16_s10, [#allocation3], %s6933_s19, %s6933_s19, %s6934_s20  }
  0x11   :  { %6930 = dma.done.wait [#allocation3], 24320  }
  0x12   :  { %6931 = vsyncadd [#allocation3], 4294942976  ;;  %vm30_vm0 = vcmask 64512   ;;  %v25_v0 = vld [vmem:[%s8041_s0] sm:$0xff]  ;;  %v27_v2 = vld [vmem:[#allocation2 + $0x10] sm:$0xff]  ;;  %vm225_vm1 = vcmask 326656  }
  0x13   :  { %v26_v1 = vld [vmem:[#allocation2] sm:$0xff]  ;;  %5851 = vmatprep.subr.mxu0 %v25_v0  ;;  %v216_v3 = vld [vmem:[%s8041_s0 + $0x8] sm:$0xff]  ;;  %v217_v4 = vld [vmem:[%s8041_s0 + $0x10] sm:$0xff]  ;;  %v6935_v12 = vmov 0.0|0.0   ;;  %s6936_s6 = smov 125   ;;  %s6937_s7 = smov 127  }
  0x14   :  { %5853 = vmatprep.mubr.msk.f32.mxu0 %vm30_vm0, %v26_v1  ;;  %v218_v5 = vld [vmem:[%s8041_s0 + $0x18] sm:$0xff]  ;;  %5852 = vmatpush3.msra.mxu0 %v25_v0  ;;  %v6391_v6 = vpack.c.bf16 %v217_v4, %v216_v3  ;;  %v219_v7 = vld [vmem:[%s8041_s0 + $0x20] sm:$0xff]  ;;  %v220_v10 = vld [vmem:[%s8041_s0 + $0x28] sm:$0xff]  ;;  %s6938_s8 = smov 124   ;;  %s6939_s9 = smov 126   ;;  %vm362_vm2 = vcmask 130048  }
  0x15   :  { %v221_v8 = vld [vmem:[#allocation2 + $0x60] sm:$0xff]  ;;  %5854 = vmatmul.mubr.msk.f32.vlgmr.msra.gmra.mrb[0].mxu0 %vm30_vm0, %v27_v2  ;;  %v6395_v9 = vpack.c.bf16 %v219_v7, %v218_v5  ;;  %v222_v11 = vld [vmem:[#allocation2 + $0x70] sm:$0xff]  ;;  %6376 = vmatprep.subr.bf16.mxu1 %v6935_v12  ;;  %s6940_s10 = smov 122   ;;  %s6941_s11 = smov 123   ;;  %v360_v33 = vld [vmem:[#allocation2 + $0xa8] sm:$0xff]  ;;  %vm6944_vm3 = vmmov 0  }
  0x16   :  { %6392 = vmatprep.subr.bf16.mxu0 %v6391_v6  ;;  %5889 = vmatprep.mubr.msk.f32.mxu0 %vm225_vm1, %v221_v8  ;;  %v29_v13 = vld [vmem:[#allocation2 + $0x30] sm:$0xff]  ;;  %v28_v14 = vld [vmem:[#allocation2 + $0x20] sm:$0xff]  ;;  %s6942_s12 = smov 120   ;;  %s6943_s13 = smov 121   ;;  %v6945_v34 = vmov 0.0   ;;  %vm142_vm4 = vcmask 654336  }
  0x17   :  { %6394 = vmatpush3.bf16.msra.mxu0 %v6391_v6  ;;  %v224_v23 = vld [vmem:[#allocation2 + $0x90] sm:$0xff]  ;;  %v223_v24 = vld [vmem:[#allocation2 + $0x80] sm:$0xff]  ;;  %5876 = vmatprep.mubr.msk.f32.mxu1 %vm6944_vm3, %v6945_v34  ;;  %s6946_s14 = smov 12   ;;  %vm440_vm5 = vcmask 97280   ;;  %vm535_vm6 = vcmask 1043456   ;;  %vm525_vm7 = vcmask 31744  }
  0x18   :  { %6396 = vmatprep.subr.bf16.mxu0 %v6395_v9  ;;  %s6948_s17 = smov 4   ;;  %s6949_s18 = smov 6   ;;  %vm2532_vm8 = vcmask 15360   ;;  %vm2535_vm9 = vcmask 48128   ;;  %vm2538_vm10 = vcmask 80896   ;;  %vm2541_vm11 = vcmask 113664  }
  0x19   :  { %s6950_s19 = smov 8   ;;  %s6951_s21 = smov 10   ;;  %vm2544_vm12 = vcmask 146432   ;;  %vm2546_vm13 = vcmask 162816   ;;  %vm2548_vm14 = vcmask 179200   ;;  %vm2550_vm15 = vcmask 195584  }
  0x1a   :  { %s6952_s22 = smov 118   ;;  %s6953_s23 = smov 116  }
  0x1b   :  { %6398 = vmatpush3.bf16.msra.mxu0 %v6395_v9  ;;  %s6954_s24 = smov 14   ;;  %s6955_s25 = smov 114  }
  0x1c   :  { %5887 = vmatprep.subr.mxu0 %v220_v10  ;;  %s6956_s26 = smov 112   ;;  %s6957_s27 = smov 18  }
  0x1d   :  { %s6958_s28 = smov 110   ;;  %s6959_s1 = smov 20  }
  0x1e   :  { %s6960_s29 = smov 108   ;;  %s6961_s30 = smov 22  }
  0x1f   :  { %5888 = vmatpush3.msra.mxu0 %v220_v10  ;;  %s6962_s3 = smov 106   ;;  %s6963_s4 = smov 24  }
  0x20   :  { %5890 = vmatmul.mubr.msk.f32.vlgmr.msra.gmra.mrb[2].mxu0 %vm225_vm1, %v222_v11  ;;  %6399 = vmatprep.subr.bf16.mxu0 %v6935_v12  ;;  %s6964_s5 = smov 104   ;;  %s6969_s15 = smov 30   ;;  %vm2552_vm1 = vcmask 211968  }
  0x21   :  { %5443 = vmatprep.mubr.msk.f32.mxu0 %vm362_vm2, %v360_v33 }
  0xe8   :  { %v5855_v15 = vpop.f32.mrb[0].mxu0 }
  0xe9   :  { %v109_v16 = vadd.f32 %v5855_v15, %v29_v13  ;;  %v103_v17 = vpop.f32.mrb[1].mxu0 }
  0xea   :  { %v104_v18 = vadd.f32 %v103_v17, %v28_v14 }
  0xeb   :  { %v113_v19 = vmax.f32 %v109_v16, 0.0 }
  0xec   :  { %v112_v20 = vmax.f32 %v104_v18, 0.0 }
  0xee   :  { %v6377_v21 = vpack.c.bf16 %v113_v19, %v112_v20  ;;  %v6557_v22 = vpack.i.bf16 %v113_v19, %v112_v20  ;;  %v359_v20 = vld [vmem:[#allocation2 + $0xa0] sm:$0xff] }
  0xf0   :  { %6378 = vmatpush3.bf16.msra.mxu1 %v6377_v21  ;;  %v140_v21 = vld [vmem:[#allocation2 + $0x40] sm:$0xff] }
  0xf1   :  { %6379 = vmatprep.subr.bf16.mxu1 %v6935_v12 }
  0xf3   :  { %v5891_v25 = vpop.f32.mrb[2].mxu0 }
  0xf4   :  { %v304_v26 = vadd.f32 %v5891_v25, %v224_v23  ;;  %v298_v27 = vpop.f32.mrb[3].mxu0  ;;  %v443_v23 = vld [vmem:[#allocation2 + $0x250] sm:$0xff] }
  0xf5   :  { %v299_v28 = vadd.f32 %v298_v27, %v223_v24  ;;  %v361_v25 = vld [vmem:[#allocation2 + $0xb0] sm:$0xff] }
  0xf6   :  { %v308_v29 = vmax.f32 %v304_v26, 0.0 }
  0xf7   :  { %v307_v30 = vmax.f32 %v299_v28, 0.0 }
  0xf9   :  { %v6522_v31 = vpack.i.bf16 %v308_v29, %v307_v30  ;;  %v6400_v32 = vpack.c.bf16 %v308_v29, %v307_v30 }
  0xfb   :  { %6523 = vrot.lane.b32.xlu1 %v6522_v31, %s6936_s6  ;;  %6513 = vrot.lane.b32.xlu0 %v6522_v31, %s6937_s7 }
  0xfc   :  { %6401 = vmatpush1.bf16.msra.mxu0 %v6400_v32 }
  0xfd   :  { %6402 = vmatprep.subr.bf16.mxu0 %v6935_v12 }
  0xff   :  { %6528 = vrot.lane.b32.xlu1 %v6522_v31, %s6938_s8  ;;  %6518 = vrot.lane.b32.xlu0 %v6522_v31, %s6939_s9 }
 0x103   :  { %6538 = vrot.lane.b32.xlu1 %v6522_v31, %s6940_s10  ;;  %6533 = vrot.lane.b32.xlu0 %v6522_v31, %s6941_s11  ;;  %s6967_s11 = smov 28  }
 0x107   :  { %6548 = vrot.lane.b32.xlu1 %v6522_v31, %s6942_s12  ;;  %6543 = vrot.lane.b32.xlu0 %v6522_v31, %s6943_s13  ;;  %v141_v31 = vld [vmem:[#allocation2 + $0x50] sm:$0xff]  ;;  %s6968_s13 = smov 100  }
 0x10b   :  { %6558 = vrot.lane.b32.xlu1 %v6557_v22, %s6939_s9  ;;  %6553 = vrot.lane.b32.xlu0 %v6557_v22, %s6937_s7  ;;  %s6966_s7 = smov 102  }
 0x10f   :  { %6568 = vrot.lane.b32.xlu1 %v6557_v22, %s6938_s8  ;;  %6563 = vrot.lane.b32.xlu0 %v6557_v22, %s6936_s6  ;;  %v442_v22 = vld [vmem:[#allocation2 + $0x240] sm:$0xff]  ;;  %s6965_s6 = smov 26  }
 0x110   :  { %v6427_v24 = vpack.c.bf16 %v443_v23, %v442_v22 }
 0x16d   :  { %v6524_v35 = vpop.permute.xlu1 %6523  ;;  %v6514_v36 = vpop.permute.xlu0 %6513 }
 0x16e   :  { %v6516_v37 = vunpack.i.h.bf16 %v6514_v36  ;;  %v6515_v38 = vunpack.i.l.bf16 %v6514_v36  ;;  %v6526_v44 = vunpack.i.h.bf16 %v6524_v35  ;;  %v6525_v45 = vunpack.i.l.bf16 %v6524_v35  ;;  %v518_v35 = vld [vmem:[%s8041_s0 + $0x30] sm:$0xf]  ;;  %s6947_s0 = smov 2  }
 0x170   :  { %v6403_v39 = vpack.c.bf16 %v6516_v37, %v6515_v38  ;;  %v6409_v49 = vpack.c.bf16 %v6526_v44, %v6525_v45  ;;  %v519_v37 = vld [vmem:[#allocation2 + $0xc0] sm:$0xff]  ;;  %v520_v38 = vld [vmem:[#allocation2 + $0xd0] sm:$0xff] }
 0x171   :  { %v6529_v40 = vpop.permute.xlu1 %6528  ;;  %v6519_v41 = vpop.permute.xlu0 %6518 }
 0x172   :  { %v6521_v42 = vunpack.i.h.bf16 %v6519_v41  ;;  %v6520_v43 = vunpack.i.l.bf16 %v6519_v41  ;;  %6404 = vmatpush1.bf16.msra.mxu0 %v6403_v39  ;;  %v6531_v50 = vunpack.i.h.bf16 %v6529_v40  ;;  %v6530_v51 = vunpack.i.l.bf16 %v6529_v40  ;;  %v521_v39 = vld [vmem:[#allocation2 + $0xe0] sm:$0xff]  ;;  %v7075_v40 = vld [vmem:[#allocation2 + $0xf0] sm:$0xff] }
 0x173   :  { %6405 = vmatprep.subr.bf16.mxu0 %v6935_v12  ;;  %v7081_v41 = vld [vmem:[#allocation2 + $0x100] sm:$0xff] }
 0x174   :  { %v6406_v46 = vpack.c.bf16 %v6521_v42, %v6520_v43  ;;  %v6412_v54 = vpack.c.bf16 %v6531_v50, %v6530_v51  ;;  %v7087_v42 = vld [vmem:[#allocation2 + $0x110] sm:$0xff]  ;;  %v522_v51 = vld [vmem:[#allocation2 + $0x120] sm:$0xff] }
 0x175   :  { %v6539_v47 = vpop.permute.xlu1 %6538  ;;  %v6534_v48 = vpop.permute.xlu0 %6533 }
 0x176   :  { %6407 = vmatpush1.bf16.msra.mxu0 %v6406_v46  ;;  %v6536_v55 = vunpack.i.h.bf16 %v6534_v48  ;;  %v6535_v56 = vunpack.i.l.bf16 %v6534_v48  ;;  %v6541_v61 = vunpack.i.h.bf16 %v6539_v47  ;;  %v6540_v62 = vunpack.i.l.bf16 %v6539_v47 }
 0x177   :  { %6408 = vmatprep.subr.bf16.mxu0 %v6935_v12 }
 0x178   :  { %v6415_v63 = vpack.c.bf16 %v6536_v55, %v6535_v56  ;;  %v6418_v4 = vpack.c.bf16 %v6541_v61, %v6540_v62 }
 0x179   :  { %v6549_v52 = vpop.permute.xlu1 %6548  ;;  %v6544_v53 = vpop.permute.xlu0 %6543 }
 0x17a   :  { %6410 = vmatpush1.bf16.msra.mxu0 %v6409_v49  ;;  %v6546_v5 = vunpack.i.h.bf16 %v6544_v53  ;;  %v6545_v6 = vunpack.i.l.bf16 %v6544_v53  ;;  %v6551_v11 = vunpack.i.h.bf16 %v6549_v52  ;;  %v6550_v13 = vunpack.i.l.bf16 %v6549_v52  ;;  %v7095_v52 = vld [vmem:[#allocation2 + $0x150] sm:$0xff] }
 0x17b   :  { %6411 = vmatprep.subr.bf16.mxu0 %v6935_v12 }
 0x17c   :  { %v6421_v14 = vpack.c.bf16 %v6546_v5, %v6545_v6  ;;  %v6424_v18 = vpack.c.bf16 %v6551_v11, %v6550_v13  ;;  %v524_v11 = vld [vmem:[#allocation2 + $0x140] sm:$0xff] }
 0x17d   :  { %v6559_v57 = vpop.permute.xlu1 %6558  ;;  %v6554_v58 = vpop.permute.xlu0 %6553 }
 0x17e   :  { %v6556_v59 = vunpack.i.h.bf16 %v6554_v58  ;;  %v6555_v60 = vunpack.i.l.bf16 %v6554_v58  ;;  %6413 = vmatpush1.bf16.msra.mxu0 %v6412_v54  ;;  %v6561_v0 = vunpack.i.h.bf16 %v6559_v57  ;;  %v6560_v1 = vunpack.i.l.bf16 %v6559_v57  ;;  %v523_v57 = vld [vmem:[#allocation2 + $0x130] sm:$0xff]  ;;  %v7100_v58 = vld [vmem:[#allocation2 + $0x160] sm:$0xff] }
 0x17f   :  { %6414 = vmatprep.subr.bf16.mxu0 %v6935_v12 }
 0x180   :  { %v6380_v2 = vpack.c.bf16 %v6556_v59, %v6555_v60  ;;  %v6383_v9 = vpack.c.bf16 %v6561_v0, %v6560_v1 }
 0x181   :  { %v6564_v3 = vpop.permute.xlu0 %6563  ;;  %v6569_v10 = vpop.permute.xlu1 %6568 }
 0x182   :  { %6381 = vmatpush3.bf16.msra.mxu1 %v6380_v2  ;;  %6416 = vmatpush1.bf16.msra.mxu0 %v6415_v63  ;;  %v6566_v7 = vunpack.i.h.bf16 %v6564_v3  ;;  %v6565_v8 = vunpack.i.l.bf16 %v6564_v3  ;;  %v6571_v15 = vunpack.i.h.bf16 %v6569_v10  ;;  %v6570_v16 = vunpack.i.l.bf16 %v6569_v10 }
 0x183   :  { %6382 = vmatprep.subr.bf16.mxu1 %v6935_v12  ;;  %6417 = vmatprep.subr.bf16.mxu0 %v6935_v12 }
 0x184   :  { %v6386_v17 = vpack.c.bf16 %v6566_v7, %v6565_v8  ;;  %v6389_v19 = vpack.c.bf16 %v6571_v15, %v6570_v16  ;;  %v7107_v8 = vld [vmem:[#allocation2 + $0x170] sm:$0xff] }
 0x186   :  { %6384 = vmatpush3.bf16.msra.mxu1 %v6383_v9  ;;  %6419 = vmatpush1.bf16.msra.mxu0 %v6418_v4 }
 0x187   :  { %6385 = vmatprep.subr.bf16.mxu1 %v6935_v12  ;;  %6420 = vmatprep.subr.bf16.mxu0 %v6935_v12 }
 0x18a   :  { %6387 = vmatpush3.bf16.msra.mxu1 %v6386_v17  ;;  %6422 = vmatpush1.bf16.msra.mxu0 %v6421_v14 }
 0x18b   :  { %6388 = vmatprep.subr.bf16.mxu1 %v6935_v12  ;;  %6423 = vmatprep.subr.bf16.mxu0 %v6935_v12 }
 0x18e   :  { %6390 = vmatpush3.bf16.msra.mxu1 %v6389_v19  ;;  %6425 = vmatpush1.bf16.msra.mxu0 %v6424_v18 }
 0x18f   :  { %6426 = vmatprep.subr.bf16.mxu1 %v6935_v12  ;;  %5921 = vmatprep.subr.mxu0 %v6945_v34 }
 0x191   :  { %431 = vmatmul.mubr.f32.vlgmr.msra.gmra.mrb[4].mxu0 %v359_v20  ;;  %5877 = vmatmul.mubr.msk.f32.vlgmr.msra.gmra.mrb[0].mxu1 %vm142_vm4, %v140_v21  ;;  %vm2554_vm4 = vcmask 228352  }
 0x192   :  { %5896 = vmatprep.mubr.msk.f32.mxu1 %vm6944_vm3, %v6945_v34  ;;  %5923 = vmatprep.mubr.msk.f32.mxu0 %vm6944_vm3, %v6945_v34 }
 0x193   :  { %6428 = vmatpush3.bf16.msra.mxu1 %v6427_v24 }
 0x194   :  { %5899 = vmatprep.subr.mxu1 %v6945_v34 }
 0x264   :  { %v432_v26 = vpop.f32.mrb[4].mxu0  ;;  %v212_v27 = vpop.f32.mrb[0].mxu1 }
 0x265   :  { %v433_v28 = vadd.f32 %v432_v26, %v361_v25  ;;  %v434_v29 = vpop.f32.mrb[5].mxu0  ;;  %v5878_v30 = vpop.f32.mrb[1].mxu1  ;;  %v213_v32 = vadd.f32 %v212_v27, %v141_v31 }
 0x267   :  { %437 = vrot.lane.b32.xlu0 %v433_v28, %s6946_s14 }
 0x2d9   :  { %v438_v33 = vpop.permute.xlu0 %437 }
 0x2da   :  { %v441_v36 = vsel %vm440_vm5, %v213_v32, %v438_v33 }
 0x2db   :  { %5897 = vmatmul.mubr.msk.f32.vlgmr.msra.gmra.mrb[2].mxu1 %vm362_vm2, %v441_v36 }
 0x2dc   :  { %5900 = vmatpush3.msk.msra.mxu1 %vm535_vm6, %v518_v35  ;;  %5901 = vmatprep.mubr.msk.f32.mxu1 %vm6944_vm3, %v6945_v34 }
 0x2dd   :  { %5910 = vmatprep.subr.mxu1 %v6945_v34 }
 0x2df   :  { %5902 = vmatmul.mubr.msk.f32.vlgmr.msra.gmra.mrb[4].mxu1 %vm525_vm7, %v519_v37 }
 0x2e0   :  { %5904 = vmatprep.mubr.msk.f32.mxu1 %vm6944_vm3, %v6945_v34  ;;  %5911 = vmatpush3.msra.mxu1 %v6945_v34 }
 0x2e1   :  { %5932 = vmatprep.subr.mxu1 %v6945_v34 }
 0x2e3   :  { %5905 = vmatmul.mubr.msk.f32.gmra.mrb[6].mxu1 %vm525_vm7, %v520_v38 }
 0x2e4   :  { %5907 = vmatprep.mubr.msk.f32.mxu1 %vm6944_vm3, %v6945_v34 }
 0x2e7   :  { %5908 = vmatmul.mubr.msk.f32.gmra.mrb[8].mxu1 %vm525_vm7, %v521_v39 }
 0x2e8   :  { %5912 = vmatprep.mubr.msk.f32.mxu1 %vm6944_vm3, %v6945_v34 }
 0x2eb   :  { %5913 = vmatmul.mubr.msk.f32.vlgmr.msra.gmra.mrb[10].mxu1 %vm30_vm0, %v7075_v40 }
 0x2ec   :  { %5915 = vmatprep.mubr.msk.f32.mxu1 %vm6944_vm3, %v6945_v34 }
 0x2ef   :  { %5916 = vmatmul.mubr.msk.f32.gmra.mrb[12].mxu1 %vm30_vm0, %v7081_v41 }
 0x2f0   :  { %5918 = vmatprep.mubr.msk.f32.mxu1 %vm6944_vm3, %v6945_v34 }
 0x2f3   :  { %5919 = vmatmul.mubr.msk.f32.gmra.mrb[14].mxu1 %vm30_vm0, %v7087_v42 }
 0x2f4   :  { %5934 = vmatprep.mubr.msk.f32.mxu1 %vm6944_vm3, %v6945_v34 }
 0x3ae   :  { %v7093_v43 = vpop.f32.mrb[2].mxu1 }
 0x3af   :  { %v5898_v44 = vpop.f32.mrb[3].mxu1 }
 0x3b2   :  { %v605_v45 = vpop.f32.mrb[4].mxu1 }
 0x3b3   :  { %v5903_v46 = vpop.f32.mrb[5].mxu1  ;;  %v7097_v54 = vadd.f32 %v605_v45, %v522_v51 }
 0x3b6   :  { %v610_v47 = vpop.f32.mrb[6].mxu1 }
 0x3b7   :  { %v5906_v48 = vpop.f32.mrb[7].mxu1  ;;  %v7103_v61 = vadd.f32 %v610_v47, %v523_v57 }
 0x3ba   :  { %v615_v49 = vpop.f32.mrb[8].mxu1 }
 0x3bb   :  { %v5909_v50 = vpop.f32.mrb[9].mxu1  ;;  %v7110_v14 = vadd.f32 %v615_v49, %v524_v11 }
 0x3be   :  { %v700_v53 = vpop.f32.mrb[10].mxu1 }
 0x3bf   :  { %v701_v55 = vadd.f32 %v700_v53, %v7095_v52  ;;  %v5914_v56 = vpop.f32.mrb[11].mxu1 }
 0x3c1   :  { %v714_v59 = vadd.f32 %v701_v55, %v7097_v54 }
 0x3c2   :  { %v705_v60 = vpop.f32.mrb[12].mxu1 }
 0x3c3   :  { %v5452_v62 = vmul.f32 -1.442695, %v714_v59  ;;  %v706_v63 = vadd.f32 %v705_v60, %v7100_v58  ;;  %v5917_v0 = vpop.f32.mrb[13].mxu1 }
 0x3c5   :  { %6574 = vpow2.f32 %v5452_v62  ;;  %v721_v1 = vadd.f32 %v706_v63, %v7103_v61 }
 0x3c6   :  { %v710_v2 = vpop.f32.mrb[14].mxu1 }
 0x3c7   :  { %v5920_v3 = vpop.f32.mrb[15].mxu1  ;;  %v5453_v4 = vmul.f32 -1.442695, %v721_v1  ;;  %v711_v10 = vadd.f32 %v710_v2, %v7107_v8 }
 0x3c9   :  { %6576 = vpow2.f32 %v5453_v4 }
 0x3cf   :  { %v6575_v5 = vpop.eup %6574 }
 0x3d0   :  { %v718_v6 = vadd.f32 1.0, %v6575_v5 }
 0x3d2   :  { %6578 = vrcp.f32 %v718_v6 }
 0x3d3   :  { %v6577_v7 = vpop.eup %6576 }
 0x3d4   :  { %v725_v9 = vadd.f32 1.0, %v6577_v7 }
 0x3d6   :  { %6580 = vrcp.f32 %v725_v9 }
 0x3dc   :  { %v6579_v13 = vpop.eup %6578 }
 0x3dd   :  { %v728_v15 = vmul.f32 %v6579_v13, %v711_v10 }
 0x3df   :  { %v729_v16 = vadd.f32 %v728_v15, %v7110_v14 }
 0x3e0   :  { %v6581_v17 = vpop.eup %6580 }
 0x3e1   :  { %6582 = vtanh.f32 %v729_v16  ;;  %v731_v18 = vsub.f32 1.0, %v6581_v17  ;;  %v733_v21 = vmul.f32 0.0, %v6581_v17 }
 0x3eb   :  { %v6583_v19 = vpop.eup %6582 }
 0x3ec   :  { %v732_v20 = vmul.f32 %v6583_v19, %v731_v18 }
 0x3ee   :  { %v7113_v22 = vadd.f32 %v733_v21, %v732_v20 }
 0x3f0   :  { %5922 = vmatpush3.msra.mxu0 %v7113_v22 }
 0x3f1   :  { %5924 = vmatmul.mubr.msk.f32.vlgmr.msra.gmra.mrb[6].mxu0 %vm30_vm0, %v7075_v40  ;;  %5943 = vmatprep.subr.mxu0 %v6945_v34 }
 0x3f2   :  { %5926 = vmatprep.mubr.msk.f32.mxu0 %vm6944_vm3, %v6945_v34 }
 0x3f5   :  { %5927 = vmatmul.mubr.msk.f32.gmra.mrb[8].mxu0 %vm30_vm0, %v7081_v41 }
 0x3f6   :  { %5929 = vmatprep.mubr.msk.f32.mxu0 %vm6944_vm3, %v6945_v34 }
 0x3f9   :  { %5930 = vmatmul.mubr.msk.f32.gmra.mrb[10].mxu0 %vm30_vm0, %v7087_v42 }
 0x3fa   :  { %5945 = vmatprep.mubr.msk.f32.mxu0 %vm6944_vm3, %v6945_v34 }
 0x4c4   :  { %v801_v23 = vpop.f32.mrb[6].mxu0 }
 0x4c5   :  { %v802_v24 = vadd.f32 %v801_v23, %v7095_v52  ;;  %v5925_v25 = vpop.f32.mrb[7].mxu0 }
 0x4c7   :  { %816 = vrot.lane.b32.xlu1 %v802_v24, %s6947_s0 }
 0x4c8   :  { %v806_v26 = vpop.f32.mrb[8].mxu0 }
 0x4c9   :  { %v807_v27 = vadd.f32 %v806_v26, %v7100_v58  ;;  %v5928_v28 = vpop.f32.mrb[9].mxu0 }
 0x4cb   :  { %827 = vrot.lane.b32.xlu0 %v807_v27, %s6947_s0 }
 0x4cc   :  { %v811_v29 = vpop.f32.mrb[10].mxu0 }
 0x4cd   :  { %v812_v30 = vadd.f32 %v811_v29, %v7107_v8  ;;  %v5931_v31 = vpop.f32.mrb[11].mxu0 }
 0x4cf   :  { %847 = vrot.lane.b32.xlu0 %v7113_v22, %s6947_s0  ;;  %838 = vrot.lane.b32.xlu1 %v812_v30, %s6947_s0 }
 0x539   :  { %v817_v32 = vpop.permute.xlu1 %816 }
 0x53a   :  { %v819_v33 = vadd.f32 %v817_v32, %v7097_v54 }
 0x53c   :  { %v5457_v35 = vmul.f32 -1.442695, %v819_v33 }
 0x53d   :  { %v828_v36 = vpop.permute.xlu0 %827 }
 0x53e   :  { %6584 = vpow2.f32 %v5457_v35  ;;  %v830_v37 = vadd.f32 %v828_v36, %v7103_v61 }
 0x540   :  { %v5458_v38 = vmul.f32 -1.442695, %v830_v37 }
 0x541   :  { %v839_v47 = vpop.permute.xlu1 %838  ;;  %v848_v56 = vpop.permute.xlu0 %847 }
 0x542   :  { %6586 = vpow2.f32 %v5458_v38 }
 0x548   :  { %v6585_v39 = vpop.eup %6584 }
 0x549   :  { %v823_v44 = vadd.f32 1.0, %v6585_v39 }
 0x54b   :  { %6588 = vrcp.f32 %v823_v44 }
 0x54c   :  { %v6587_v45 = vpop.eup %6586 }
 0x54d   :  { %v834_v46 = vadd.f32 1.0, %v6587_v45 }
 0x54f   :  { %6590 = vrcp.f32 %v834_v46 }
 0x555   :  { %v6589_v48 = vpop.eup %6588 }
 0x556   :  { %v841_v49 = vmul.f32 %v6589_v48, %v839_v47 }
 0x558   :  { %v842_v50 = vadd.f32 %v841_v49, %v7110_v14 }
 0x559   :  { %v6591_v51 = vpop.eup %6590 }
 0x55a   :  { %6592 = vtanh.f32 %v842_v50  ;;  %v844_v53 = vsub.f32 1.0, %v6591_v51  ;;  %v850_v57 = vmul.f32 %v6591_v51, %v848_v56 }
 0x564   :  { %v6593_v55 = vpop.eup %6592 }
 0x565   :  { %v845_v59 = vmul.f32 %v6593_v55, %v844_v53 }
 0x567   :  { %v7140_v60 = vadd.f32 %v850_v57, %v845_v59 }
 0x569   :  { %853 = vrot.lane.b32.xlu1 %v7140_v60, %s6939_s9 }
 0x5db   :  { %v854_v62 = vpop.permute.xlu1 %853 }
 0x5dc   :  { %5933 = vmatpush3.msra.mxu1 %v854_v62 }
 0x5dd   :  { %5935 = vmatmul.mubr.msk.f32.vlgmr.msra.gmra.mrb[16].mxu1 %vm30_vm0, %v7075_v40  ;;  %5954 = vmatprep.subr.mxu1 %v6945_v34 }
 0x5de   :  { %5937 = vmatprep.mubr.msk.f32.mxu1 %vm6944_vm3, %v6945_v34 }
 0x5e1   :  { %5938 = vmatmul.mubr.msk.f32.gmra.mrb[18].mxu1 %vm30_vm0, %v7081_v41 }
 0x5e2   :  { %5940 = vmatprep.mubr.msk.f32.mxu1 %vm6944_vm3, %v6945_v34 }
 0x5e5   :  { %5941 = vmatmul.mubr.msk.f32.gmra.mrb[20].mxu1 %vm30_vm0, %v7087_v42 }
 0x5e6   :  { %5956 = vmatprep.mubr.msk.f32.mxu1 %vm6944_vm3, %v6945_v34 }
 0x6b0   :  { %v922_v63 = vpop.f32.mrb[16].mxu1 }
 0x6b1   :  { %v923_v0 = vadd.f32 %v922_v63, %v7095_v52  ;;  %v5936_v1 = vpop.f32.mrb[17].mxu1 }
 0x6b3   :  { %937 = vrot.lane.b32.xlu0 %v923_v0, %s6948_s17 }
 0x6b4   :  { %v927_v2 = vpop.f32.mrb[18].mxu1 }
 0x6b5   :  { %v928_v3 = vadd.f32 %v927_v2, %v7100_v58  ;;  %v5939_v4 = vpop.f32.mrb[19].mxu1 }
 0x6b7   :  { %948 = vrot.lane.b32.xlu1 %v928_v3, %s6948_s17 }
 0x6b8   :  { %v932_v5 = vpop.f32.mrb[20].mxu1 }
 0x6b9   :  { %v933_v6 = vadd.f32 %v932_v5, %v7107_v8  ;;  %v5942_v7 = vpop.f32.mrb[21].mxu1 }
 0x6bb   :  { %967 = vrot.lane.b32.xlu1 %v7140_v60, %s6947_s0  ;;  %959 = vrot.lane.b32.xlu0 %v933_v6, %s6948_s17 }
 0x725   :  { %v938_v9 = vpop.permute.xlu0 %937 }
 0x726   :  { %v940_v10 = vadd.f32 %v938_v9, %v7097_v54 }
 0x728   :  { %v5462_v11 = vmul.f32 -1.442695, %v940_v10 }
 0x729   :  { %v949_v13 = vpop.permute.xlu1 %948 }
 0x72a   :  { %6594 = vpow2.f32 %v5462_v11  ;;  %v951_v15 = vadd.f32 %v949_v13, %v7103_v61 }
 0x72c   :  { %v5463_v16 = vmul.f32 -1.442695, %v951_v15 }
 0x72d   :  { %v960_v21 = vpop.permute.xlu0 %959  ;;  %v968_v29 = vpop.permute.xlu1 %967 }
 0x72e   :  { %6596 = vpow2.f32 %v5463_v16 }
 0x734   :  { %v6595_v17 = vpop.eup %6594 }
 0x735   :  { %v944_v18 = vadd.f32 1.0, %v6595_v17 }
 0x737   :  { %6598 = vrcp.f32 %v944_v18 }
 0x738   :  { %v6597_v19 = vpop.eup %6596 }
 0x739   :  { %v955_v20 = vadd.f32 1.0, %v6597_v19 }
 0x73b   :  { %6600 = vrcp.f32 %v955_v20 }
 0x741   :  { %v6599_v23 = vpop.eup %6598 }
 0x742   :  { %v962_v24 = vmul.f32 %v6599_v23, %v960_v21 }
 0x744   :  { %v963_v25 = vadd.f32 %v962_v24, %v7110_v14 }
 0x745   :  { %v6601_v26 = vpop.eup %6600 }
 0x746   :  { %6602 = vtanh.f32 %v963_v25  ;;  %v965_v27 = vsub.f32 1.0, %v6601_v26  ;;  %v970_v30 = vmul.f32 %v6601_v26, %v968_v29 }
 0x750   :  { %v6603_v28 = vpop.eup %6602 }
 0x751   :  { %v966_v31 = vmul.f32 %v6603_v28, %v965_v27 }
 0x753   :  { %v7168_v32 = vadd.f32 %v970_v30, %v966_v31 }
 0x755   :  { %973 = vrot.lane.b32.xlu0 %v7168_v32, %s6938_s8 }
 0x7c7   :  { %v974_v33 = vpop.permute.xlu0 %973 }
 0x7c8   :  { %5944 = vmatpush3.msra.mxu0 %v974_v33 }
 0x7c9   :  { %5946 = vmatmul.mubr.msk.f32.vlgmr.msra.gmra.mrb[12].mxu0 %vm30_vm0, %v7075_v40  ;;  %5965 = vmatprep.subr.mxu0 %v6945_v34 }
 0x7ca   :  { %5948 = vmatprep.mubr.msk.f32.mxu0 %vm6944_vm3, %v6945_v34 }
 0x7cd   :  { %5949 = vmatmul.mubr.msk.f32.gmra.mrb[14].mxu0 %vm30_vm0, %v7081_v41 }
 0x7ce   :  { %5951 = vmatprep.mubr.msk.f32.mxu0 %vm6944_vm3, %v6945_v34 }
 0x7d1   :  { %5952 = vmatmul.mubr.msk.f32.gmra.mrb[16].mxu0 %vm30_vm0, %v7087_v42 }
 0x7d2   :  { %5967 = vmatprep.mubr.msk.f32.mxu0 %vm6944_vm3, %v6945_v34 }
 0x89c   :  { %v1042_v35 = vpop.f32.mrb[12].mxu0 }
 0x89d   :  { %v1043_v36 = vadd.f32 %v1042_v35, %v7095_v52  ;;  %v5947_v37 = vpop.f32.mrb[13].mxu0 }
 0x89f   :  { %1057 = vrot.lane.b32.xlu1 %v1043_v36, %s6949_s18 }
 0x8a0   :  { %v1047_v38 = vpop.f32.mrb[14].mxu0 }
 0x8a1   :  { %v1048_v39 = vadd.f32 %v1047_v38, %v7100_v58  ;;  %v5950_v44 = vpop.f32.mrb[15].mxu0 }
 0x8a3   :  { %1068 = vrot.lane.b32.xlu0 %v1048_v39, %s6949_s18 }
 0x8a4   :  { %v1052_v45 = vpop.f32.mrb[16].mxu0 }
 0x8a5   :  { %v1053_v46 = vadd.f32 %v1052_v45, %v7107_v8  ;;  %v5953_v47 = vpop.f32.mrb[17].mxu0 }
 0x8a7   :  { %1087 = vrot.lane.b32.xlu0 %v7168_v32, %s6947_s0  ;;  %1079 = vrot.lane.b32.xlu1 %v1053_v46, %s6949_s18 }
 0x911   :  { %v1058_v48 = vpop.permute.xlu1 %1057 }
 0x912   :  { %v1060_v49 = vadd.f32 %v1058_v48, %v7097_v54 }
 0x914   :  { %v5467_v50 = vmul.f32 -1.442695, %v1060_v49 }
 0x915   :  { %v1069_v51 = vpop.permute.xlu0 %1068 }
 0x916   :  { %6604 = vpow2.f32 %v5467_v50  ;;  %v1071_v53 = vadd.f32 %v1069_v51, %v7103_v61 }
 0x918   :  { %v5468_v55 = vmul.f32 -1.442695, %v1071_v53 }
 0x919   :  { %v1080_v63 = vpop.permute.xlu1 %1079  ;;  %v1088_v6 = vpop.permute.xlu0 %1087 }
 0x91a   :  { %6606 = vpow2.f32 %v5468_v55 }
 0x920   :  { %v6605_v56 = vpop.eup %6604 }
 0x921   :  { %v1064_v57 = vadd.f32 1.0, %v6605_v56 }
 0x923   :  { %6608 = vrcp.f32 %v1064_v57 }
 0x924   :  { %v6607_v59 = vpop.eup %6606 }
 0x925   :  { %v1075_v62 = vadd.f32 1.0, %v6607_v59 }
 0x927   :  { %6610 = vrcp.f32 %v1075_v62 }
 0x92d   :  { %v6609_v0 = vpop.eup %6608 }
 0x92e   :  { %v1082_v1 = vmul.f32 %v6609_v0, %v1080_v63 }
 0x930   :  { %v1083_v2 = vadd.f32 %v1082_v1, %v7110_v14 }
 0x931   :  { %v6611_v3 = vpop.eup %6610 }
 0x932   :  { %6612 = vtanh.f32 %v1083_v2  ;;  %v1085_v4 = vsub.f32 1.0, %v6611_v3  ;;  %v1090_v7 = vmul.f32 %v6611_v3, %v1088_v6 }
 0x93c   :  { %v6613_v5 = vpop.eup %6612 }
 0x93d   :  { %v1086_v9 = vmul.f32 %v6613_v5, %v1085_v4 }
 0x93f   :  { %v7196_v10 = vadd.f32 %v1090_v7, %v1086_v9 }
 0x941   :  { %1093 = vrot.lane.b32.xlu1 %v7196_v10, %s6940_s10 }
 0x9b3   :  { %v1094_v11 = vpop.permute.xlu1 %1093 }
 0x9b4   :  { %5955 = vmatpush3.msra.mxu1 %v1094_v11 }
 0x9b5   :  { %5957 = vmatmul.mubr.msk.f32.vlgmr.msra.gmra.mrb[22].mxu1 %vm30_vm0, %v7075_v40  ;;  %5976 = vmatprep.subr.mxu1 %v6945_v34 }
 0x9b6   :  { %5959 = vmatprep.mubr.msk.f32.mxu1 %vm6944_vm3, %v6945_v34 }
 0x9b9   :  { %5960 = vmatmul.mubr.msk.f32.gmra.mrb[24].mxu1 %vm30_vm0, %v7081_v41 }
 0x9ba   :  { %5962 = vmatprep.mubr.msk.f32.mxu1 %vm6944_vm3, %v6945_v34 }
 0x9bd   :  { %5963 = vmatmul.mubr.msk.f32.gmra.mrb[26].mxu1 %vm30_vm0, %v7087_v42 }
 0x9be   :  { %5978 = vmatprep.mubr.msk.f32.mxu1 %vm6944_vm3, %v6945_v34 }
 0xa88   :  { %v1162_v13 = vpop.f32.mrb[22].mxu1 }
 0xa89   :  { %v1163_v15 = vadd.f32 %v1162_v13, %v7095_v52  ;;  %v5958_v16 = vpop.f32.mrb[23].mxu1 }
 0xa8b   :  { %1177 = vrot.lane.b32.xlu0 %v1163_v15, %s6950_s19 }
 0xa8c   :  { %v1167_v17 = vpop.f32.mrb[24].mxu1 }
 0xa8d   :  { %v1168_v18 = vadd.f32 %v1167_v17, %v7100_v58  ;;  %v5961_v19 = vpop.f32.mrb[25].mxu1 }
 0xa8f   :  { %1188 = vrot.lane.b32.xlu1 %v1168_v18, %s6950_s19 }
 0xa90   :  { %v1172_v20 = vpop.f32.mrb[26].mxu1 }
 0xa91   :  { %v1173_v21 = vadd.f32 %v1172_v20, %v7107_v8  ;;  %v5964_v23 = vpop.f32.mrb[27].mxu1 }
 0xa93   :  { %1207 = vrot.lane.b32.xlu1 %v7196_v10, %s6947_s0  ;;  %1199 = vrot.lane.b32.xlu0 %v1173_v21, %s6950_s19 }
 0xafd   :  { %v1178_v24 = vpop.permute.xlu0 %1177 }
 0xafe   :  { %v1180_v25 = vadd.f32 %v1178_v24, %v7097_v54 }
 0xb00   :  { %v5472_v26 = vmul.f32 -1.442695, %v1180_v25 }
 0xb01   :  { %v1189_v27 = vpop.permute.xlu1 %1188 }
 0xb02   :  { %6614 = vpow2.f32 %v5472_v26  ;;  %v1191_v28 = vadd.f32 %v1189_v27, %v7103_v61 }
 0xb04   :  { %v5473_v29 = vmul.f32 -1.442695, %v1191_v28 }
 0xb05   :  { %v1200_v36 = vpop.permute.xlu0 %1199  ;;  %v1208_v47 = vpop.permute.xlu1 %1207 }
 0xb06   :  { %6616 = vpow2.f32 %v5473_v29 }
 0xb0c   :  { %v6615_v30 = vpop.eup %6614 }
 0xb0d   :  { %v1184_v31 = vadd.f32 1.0, %v6615_v30 }
 0xb0f   :  { %6618 = vrcp.f32 %v1184_v31 }
 0xb10   :  { %v6617_v33 = vpop.eup %6616 }
 0xb11   :  { %v1195_v35 = vadd.f32 1.0, %v6617_v33 }
 0xb13   :  { %6620 = vrcp.f32 %v1195_v35 }
 0xb19   :  { %v6619_v37 = vpop.eup %6618 }
 0xb1a   :  { %v1202_v38 = vmul.f32 %v6619_v37, %v1200_v36 }
 0xb1c   :  { %v1203_v39 = vadd.f32 %v1202_v38, %v7110_v14 }
 0xb1d   :  { %v6621_v44 = vpop.eup %6620 }
 0xb1e   :  { %6622 = vtanh.f32 %v1203_v39  ;;  %v1205_v45 = vsub.f32 1.0, %v6621_v44  ;;  %v1210_v48 = vmul.f32 %v6621_v44, %v1208_v47 }
 0xb28   :  { %v6623_v46 = vpop.eup %6622 }
 0xb29   :  { %v1206_v49 = vmul.f32 %v6623_v46, %v1205_v45 }
 0xb2b   :  { %v7224_v50 = vadd.f32 %v1210_v48, %v1206_v49 }
 0xb2d   :  { %1213 = vrot.lane.b32.xlu0 %v7224_v50, %s6942_s12 }
 0xb9f   :  { %v1214_v51 = vpop.permute.xlu0 %1213 }
 0xba0   :  { %5966 = vmatpush3.msra.mxu0 %v1214_v51 }
 0xba1   :  { %5968 = vmatmul.mubr.msk.f32.vlgmr.msra.gmra.mrb[18].mxu0 %vm30_vm0, %v7075_v40  ;;  %5987 = vmatprep.subr.mxu0 %v6945_v34 }
 0xba2   :  { %5970 = vmatprep.mubr.msk.f32.mxu0 %vm6944_vm3, %v6945_v34 }
 0xba5   :  { %5971 = vmatmul.mubr.msk.f32.gmra.mrb[20].mxu0 %vm30_vm0, %v7081_v41 }
 0xba6   :  { %5973 = vmatprep.mubr.msk.f32.mxu0 %vm6944_vm3, %v6945_v34 }
 0xba9   :  { %5974 = vmatmul.mubr.msk.f32.gmra.mrb[22].mxu0 %vm30_vm0, %v7087_v42 }
 0xbaa   :  { %5989 = vmatprep.mubr.msk.f32.mxu0 %vm6944_vm3, %v6945_v34 }
 0xc74   :  { %v1282_v53 = vpop.f32.mrb[18].mxu0 }
 0xc75   :  { %v1283_v55 = vadd.f32 %v1282_v53, %v7095_v52  ;;  %v5969_v56 = vpop.f32.mrb[19].mxu0 }
 0xc77   :  { %1297 = vrot.lane.b32.xlu1 %v1283_v55, %s6951_s21 }
 0xc78   :  { %v1287_v57 = vpop.f32.mrb[20].mxu0 }
 0xc79   :  { %v1288_v59 = vadd.f32 %v1287_v57, %v7100_v58  ;;  %v5972_v62 = vpop.f32.mrb[21].mxu0 }
 0xc7b   :  { %1308 = vrot.lane.b32.xlu0 %v1288_v59, %s6951_s21 }
 0xc7c   :  { %v1292_v63 = vpop.f32.mrb[22].mxu0 }
 0xc7d   :  { %v1293_v0 = vadd.f32 %v1292_v63, %v7107_v8  ;;  %v5975_v1 = vpop.f32.mrb[23].mxu0 }
 0xc7f   :  { %1327 = vrot.lane.b32.xlu0 %v7224_v50, %s6947_s0  ;;  %1319 = vrot.lane.b32.xlu1 %v1293_v0, %s6951_s21 }
 0xce9   :  { %v1298_v2 = vpop.permute.xlu1 %1297 }
 0xcea   :  { %v1300_v3 = vadd.f32 %v1298_v2, %v7097_v54 }
 0xcec   :  { %v5477_v4 = vmul.f32 -1.442695, %v1300_v3 }
 0xced   :  { %v1309_v5 = vpop.permute.xlu0 %1308 }
 0xcee   :  { %6624 = vpow2.f32 %v5477_v4  ;;  %v1311_v6 = vadd.f32 %v1309_v5, %v7103_v61 }
 0xcf0   :  { %v5478_v7 = vmul.f32 -1.442695, %v1311_v6 }
 0xcf1   :  { %v1320_v16 = vpop.permute.xlu1 %1319  ;;  %v1328_v24 = vpop.permute.xlu0 %1327 }
 0xcf2   :  { %6626 = vpow2.f32 %v5478_v7 }
 0xcf8   :  { %v6625_v9 = vpop.eup %6624 }
 0xcf9   :  { %v1304_v11 = vadd.f32 1.0, %v6625_v9 }
 0xcfb   :  { %6628 = vrcp.f32 %v1304_v11 }
 0xcfc   :  { %v6627_v13 = vpop.eup %6626 }
 0xcfd   :  { %v1315_v15 = vadd.f32 1.0, %v6627_v13 }
 0xcff   :  { %6630 = vrcp.f32 %v1315_v15 }
 0xd05   :  { %v6629_v17 = vpop.eup %6628 }
 0xd06   :  { %v1322_v18 = vmul.f32 %v6629_v17, %v1320_v16 }
 0xd08   :  { %v1323_v19 = vadd.f32 %v1322_v18, %v7110_v14 }
 0xd09   :  { %v6631_v20 = vpop.eup %6630 }
 0xd0a   :  { %6632 = vtanh.f32 %v1323_v19  ;;  %v1325_v21 = vsub.f32 1.0, %v6631_v20  ;;  %v1330_v25 = vmul.f32 %v6631_v20, %v1328_v24 }
 0xd14   :  { %v6633_v23 = vpop.eup %6632 }
 0xd15   :  { %v1326_v26 = vmul.f32 %v6633_v23, %v1325_v21 }
 0xd17   :  { %v7252_v27 = vadd.f32 %v1330_v25, %v1326_v26 }
 0xd19   :  { %1333 = vrot.lane.b32.xlu1 %v7252_v27, %s6952_s22 }
 0xd8b   :  { %v1334_v28 = vpop.permute.xlu1 %1333 }
 0xd8c   :  { %5977 = vmatpush3.msra.mxu1 %v1334_v28 }
 0xd8d   :  { %5979 = vmatmul.mubr.msk.f32.vlgmr.msra.gmra.mrb[28].mxu1 %vm30_vm0, %v7075_v40  ;;  %5998 = vmatprep.subr.mxu1 %v6945_v34 }
 0xd8e   :  { %5981 = vmatprep.mubr.msk.f32.mxu1 %vm6944_vm3, %v6945_v34 }
 0xd91   :  { %5982 = vmatmul.mubr.msk.f32.gmra.mrb[30].mxu1 %vm30_vm0, %v7081_v41 }
 0xd92   :  { %5984 = vmatprep.mubr.msk.f32.mxu1 %vm6944_vm3, %v6945_v34 }
 0xd95   :  { %5985 = vmatmul.mubr.msk.f32.gmra.mrb[32].mxu1 %vm30_vm0, %v7087_v42 }
 0xd96   :  { %6000 = vmatprep.mubr.msk.f32.mxu1 %vm6944_vm3, %v6945_v34 }
 0xe60   :  { %v1402_v29 = vpop.f32.mrb[28].mxu1 }
 0xe61   :  { %v1403_v30 = vadd.f32 %v1402_v29, %v7095_v52  ;;  %v5980_v31 = vpop.f32.mrb[29].mxu1 }
 0xe63   :  { %1417 = vrot.lane.b32.xlu0 %v1403_v30, %s6946_s14 }
 0xe64   :  { %v1407_v33 = vpop.f32.mrb[30].mxu1 }
 0xe65   :  { %v1408_v35 = vadd.f32 %v1407_v33, %v7100_v58  ;;  %v5983_v36 = vpop.f32.mrb[31].mxu1 }
 0xe67   :  { %1428 = vrot.lane.b32.xlu1 %v1408_v35, %s6946_s14 }
 0xe68   :  { %v1412_v37 = vpop.f32.mrb[32].mxu1 }
 0xe69   :  { %v1413_v38 = vadd.f32 %v1412_v37, %v7107_v8  ;;  %v5986_v39 = vpop.f32.mrb[33].mxu1 }
 0xe6b   :  { %1447 = vrot.lane.b32.xlu1 %v7252_v27, %s6947_s0  ;;  %1439 = vrot.lane.b32.xlu0 %v1413_v38, %s6946_s14 }
 0xed5   :  { %v1418_v44 = vpop.permute.xlu0 %1417 }
 0xed6   :  { %v1420_v45 = vadd.f32 %v1418_v44, %v7097_v54 }
 0xed8   :  { %v5482_v46 = vmul.f32 -1.442695, %v1420_v45 }
 0xed9   :  { %v1429_v47 = vpop.permute.xlu1 %1428 }
 0xeda   :  { %6634 = vpow2.f32 %v5482_v46  ;;  %v1431_v48 = vadd.f32 %v1429_v47, %v7103_v61 }
 0xedc   :  { %v5483_v49 = vmul.f32 -1.442695, %v1431_v48 }
 0xedd   :  { %v1440_v57 = vpop.permute.xlu0 %1439  ;;  %v1448_v3 = vpop.permute.xlu1 %1447 }
 0xede   :  { %6636 = vpow2.f32 %v5483_v49 }
 0xee4   :  { %v6635_v51 = vpop.eup %6634 }
 0xee5   :  { %v1424_v53 = vadd.f32 1.0, %v6635_v51 }
 0xee7   :  { %6638 = vrcp.f32 %v1424_v53 }
 0xee8   :  { %v6637_v55 = vpop.eup %6636 }
 0xee9   :  { %v1435_v56 = vadd.f32 1.0, %v6637_v55 }
 0xeeb   :  { %6640 = vrcp.f32 %v1435_v56 }
 0xef1   :  { %v6639_v59 = vpop.eup %6638 }
 0xef2   :  { %v1442_v62 = vmul.f32 %v6639_v59, %v1440_v57 }
 0xef4   :  { %v1443_v63 = vadd.f32 %v1442_v62, %v7110_v14 }
 0xef5   :  { %v6641_v0 = vpop.eup %6640 }
 0xef6   :  { %6642 = vtanh.f32 %v1443_v63  ;;  %v1445_v1 = vsub.f32 1.0, %v6641_v0  ;;  %v1450_v4 = vmul.f32 %v6641_v0, %v1448_v3 }
 0xf00   :  { %v6643_v2 = vpop.eup %6642 }
 0xf01   :  { %v1446_v5 = vmul.f32 %v6643_v2, %v1445_v1 }
 0xf03   :  { %v7280_v6 = vadd.f32 %v1450_v4, %v1446_v5 }
 0xf05   :  { %1453 = vrot.lane.b32.xlu0 %v7280_v6, %s6953_s23 }
 0xf77   :  { %v1454_v7 = vpop.permute.xlu0 %1453 }
 0xf78   :  { %5988 = vmatpush3.msra.mxu0 %v1454_v7 }
 0xf79   :  { %5990 = vmatmul.mubr.msk.f32.vlgmr.msra.gmra.mrb[24].mxu0 %vm30_vm0, %v7075_v40  ;;  %6009 = vmatprep.subr.mxu0 %v6945_v34 }
 0xf7a   :  { %5992 = vmatprep.mubr.msk.f32.mxu0 %vm6944_vm3, %v6945_v34 }
 0xf7d   :  { %5993 = vmatmul.mubr.msk.f32.gmra.mrb[26].mxu0 %vm30_vm0, %v7081_v41 }
 0xf7e   :  { %5995 = vmatprep.mubr.msk.f32.mxu0 %vm6944_vm3, %v6945_v34 }
 0xf81   :  { %5996 = vmatmul.mubr.msk.f32.gmra.mrb[28].mxu0 %vm30_vm0, %v7087_v42 }
 0xf82   :  { %6011 = vmatprep.mubr.msk.f32.mxu0 %vm6944_vm3, %v6945_v34 }
0x104c   :  { %v1522_v9 = vpop.f32.mrb[24].mxu0 }
0x104d   :  { %v1523_v11 = vadd.f32 %v1522_v9, %v7095_v52  ;;  %v5991_v13 = vpop.f32.mrb[25].mxu0 }
0x104f   :  { %1537 = vrot.lane.b32.xlu1 %v1523_v11, %s6954_s24 }
0x1050   :  { %v1527_v15 = vpop.f32.mrb[26].mxu0 }
0x1051   :  { %v1528_v16 = vadd.f32 %v1527_v15, %v7100_v58  ;;  %v5994_v17 = vpop.f32.mrb[27].mxu0 }
0x1053   :  { %1548 = vrot.lane.b32.xlu0 %v1528_v16, %s6954_s24 }
0x1054   :  { %v1532_v18 = vpop.f32.mrb[28].mxu0 }
0x1055   :  { %v1533_v19 = vadd.f32 %v1532_v18, %v7107_v8  ;;  %v5997_v20 = vpop.f32.mrb[29].mxu0 }
0x1057   :  { %1567 = vrot.lane.b32.xlu0 %v7280_v6, %s6947_s0  ;;  %1559 = vrot.lane.b32.xlu1 %v1533_v19, %s6954_s24 }
0x10c1   :  { %v1538_v21 = vpop.permute.xlu1 %1537 }
0x10c2   :  { %v1540_v23 = vadd.f32 %v1538_v21, %v7097_v54 }
0x10c4   :  { %v5487_v24 = vmul.f32 -1.442695, %v1540_v23 }
0x10c5   :  { %v1549_v25 = vpop.permute.xlu0 %1548 }
0x10c6   :  { %6644 = vpow2.f32 %v5487_v24  ;;  %v1551_v26 = vadd.f32 %v1549_v25, %v7103_v61 }
0x10c8   :  { %v5488_v28 = vmul.f32 -1.442695, %v1551_v26 }
0x10c9   :  { %v1560_v35 = vpop.permute.xlu1 %1559  ;;  %v1568_v46 = vpop.permute.xlu0 %1567 }
0x10ca   :  { %6646 = vpow2.f32 %v5488_v28 }
0x10d0   :  { %v6645_v29 = vpop.eup %6644 }
0x10d1   :  { %v1544_v30 = vadd.f32 1.0, %v6645_v29 }
0x10d3   :  { %6648 = vrcp.f32 %v1544_v30 }
0x10d4   :  { %v6647_v31 = vpop.eup %6646 }
0x10d5   :  { %v1555_v33 = vadd.f32 1.0, %v6647_v31 }
0x10d7   :  { %6650 = vrcp.f32 %v1555_v33 }
0x10dd   :  { %v6649_v36 = vpop.eup %6648 }
0x10de   :  { %v1562_v37 = vmul.f32 %v6649_v36, %v1560_v35 }
0x10e0   :  { %v1563_v38 = vadd.f32 %v1562_v37, %v7110_v14 }
0x10e1   :  { %v6651_v39 = vpop.eup %6650 }
0x10e2   :  { %6652 = vtanh.f32 %v1563_v38  ;;  %v1565_v44 = vsub.f32 1.0, %v6651_v39  ;;  %v1570_v47 = vmul.f32 %v6651_v39, %v1568_v46 }
0x10ec   :  { %v6653_v45 = vpop.eup %6652 }
0x10ed   :  { %v1566_v48 = vmul.f32 %v6653_v45, %v1565_v44 }
0x10ef   :  { %v7308_v49 = vadd.f32 %v1570_v47, %v1566_v48 }
0x10f1   :  { %1573 = vrot.lane.b32.xlu1 %v7308_v49, %s6955_s25 }
0x1163   :  { %v1574_v51 = vpop.permute.xlu1 %1573 }
0x1164   :  { %5999 = vmatpush3.msra.mxu1 %v1574_v51 }
0x1165   :  { %6001 = vmatmul.mubr.msk.f32.vlgmr.msra.gmra.mrb[34].mxu1 %vm30_vm0, %v7075_v40  ;;  %6020 = vmatprep.subr.mxu1 %v6945_v34 }
0x1166   :  { %6003 = vmatprep.mubr.msk.f32.mxu1 %vm6944_vm3, %v6945_v34 }
0x1169   :  { %6004 = vmatmul.mubr.msk.f32.gmra.mrb[36].mxu1 %vm30_vm0, %v7081_v41 }
0x116a   :  { %6006 = vmatprep.mubr.msk.f32.mxu1 %vm6944_vm3, %v6945_v34 }
0x116d   :  { %6007 = vmatmul.mubr.msk.f32.gmra.mrb[38].mxu1 %vm30_vm0, %v7087_v42 }
0x116e   :  { %6022 = vmatprep.mubr.msk.f32.mxu1 %vm6944_vm3, %v6945_v34 }
0x1238   :  { %v1642_v53 = vpop.f32.mrb[34].mxu1 }
0x1239   :  { %v1643_v55 = vadd.f32 %v1642_v53, %v7095_v52  ;;  %v6002_v56 = vpop.f32.mrb[35].mxu1 }
0x123b   :  { %1657 = vrot.lane.b32.xlu0 %v1643_v55, %s6934_s20 }
0x123c   :  { %v1647_v57 = vpop.f32.mrb[36].mxu1 }
0x123d   :  { %v1648_v59 = vadd.f32 %v1647_v57, %v7100_v58  ;;  %v6005_v62 = vpop.f32.mrb[37].mxu1 }
0x123f   :  { %1668 = vrot.lane.b32.xlu1 %v1648_v59, %s6934_s20 }
0x1240   :  { %v1652_v63 = vpop.f32.mrb[38].mxu1 }
0x1241   :  { %v1653_v0 = vadd.f32 %v1652_v63, %v7107_v8  ;;  %v6008_v1 = vpop.f32.mrb[39].mxu1 }
0x1243   :  { %1687 = vrot.lane.b32.xlu1 %v7308_v49, %s6947_s0  ;;  %1679 = vrot.lane.b32.xlu0 %v1653_v0, %s6934_s20 }
0x12ad   :  { %v1658_v2 = vpop.permute.xlu0 %1657 }
0x12ae   :  { %v1660_v3 = vadd.f32 %v1658_v2, %v7097_v54 }
0x12b0   :  { %v5492_v4 = vmul.f32 -1.442695, %v1660_v3 }
0x12b1   :  { %v1669_v5 = vpop.permute.xlu1 %1668 }
0x12b2   :  { %6654 = vpow2.f32 %v5492_v4  ;;  %v1671_v7 = vadd.f32 %v1669_v5, %v7103_v61 }
0x12b4   :  { %v5493_v9 = vmul.f32 -1.442695, %v1671_v7 }
0x12b5   :  { %v1680_v17 = vpop.permute.xlu0 %1679  ;;  %v1688_v25 = vpop.permute.xlu1 %1687 }
0x12b6   :  { %6656 = vpow2.f32 %v5493_v9 }
0x12bc   :  { %v6655_v11 = vpop.eup %6654 }
0x12bd   :  { %v1664_v13 = vadd.f32 1.0, %v6655_v11 }
0x12bf   :  { %6658 = vrcp.f32 %v1664_v13 }
0x12c0   :  { %v6657_v15 = vpop.eup %6656 }
0x12c1   :  { %v1675_v16 = vadd.f32 1.0, %v6657_v15 }
0x12c3   :  { %6660 = vrcp.f32 %v1675_v16 }
0x12c9   :  { %v6659_v18 = vpop.eup %6658 }
0x12ca   :  { %v1682_v19 = vmul.f32 %v6659_v18, %v1680_v17 }
0x12cc   :  { %v1683_v20 = vadd.f32 %v1682_v19, %v7110_v14 }
0x12cd   :  { %v6661_v21 = vpop.eup %6660 }
0x12ce   :  { %6662 = vtanh.f32 %v1683_v20  ;;  %v1685_v23 = vsub.f32 1.0, %v6661_v21  ;;  %v1690_v26 = vmul.f32 %v6661_v21, %v1688_v25 }
0x12d8   :  { %v6663_v24 = vpop.eup %6662 }
0x12d9   :  { %v1686_v28 = vmul.f32 %v6663_v24, %v1685_v23 }
0x12db   :  { %v7336_v29 = vadd.f32 %v1690_v26, %v1686_v28 }
0x12dd   :  { %1693 = vrot.lane.b32.xlu0 %v7336_v29, %s6956_s26 }
0x134f   :  { %v1694_v30 = vpop.permute.xlu0 %1693 }
0x1350   :  { %6010 = vmatpush3.msra.mxu0 %v1694_v30 }
0x1351   :  { %6012 = vmatmul.mubr.msk.f32.vlgmr.msra.gmra.mrb[30].mxu0 %vm30_vm0, %v7075_v40  ;;  %6031 = vmatprep.subr.mxu0 %v6945_v34 }
0x1352   :  { %6014 = vmatprep.mubr.msk.f32.mxu0 %vm6944_vm3, %v6945_v34 }
0x1355   :  { %6015 = vmatmul.mubr.msk.f32.gmra.mrb[32].mxu0 %vm30_vm0, %v7081_v41 }
0x1356   :  { %6017 = vmatprep.mubr.msk.f32.mxu0 %vm6944_vm3, %v6945_v34 }
0x1359   :  { %6018 = vmatmul.mubr.msk.f32.gmra.mrb[34].mxu0 %vm30_vm0, %v7087_v42 }
0x135a   :  { %6033 = vmatprep.mubr.msk.f32.mxu0 %vm6944_vm3, %v6945_v34 }
0x1424   :  { %v1762_v31 = vpop.f32.mrb[30].mxu0 }
0x1425   :  { %v1763_v33 = vadd.f32 %v1762_v31, %v7095_v52  ;;  %v6013_v35 = vpop.f32.mrb[31].mxu0 }
0x1427   :  { %1777 = vrot.lane.b32.xlu1 %v1763_v33, %s6957_s27 }
0x1428   :  { %v1767_v36 = vpop.f32.mrb[32].mxu0 }
0x1429   :  { %v1768_v37 = vadd.f32 %v1767_v36, %v7100_v58  ;;  %v6016_v38 = vpop.f32.mrb[33].mxu0 }
0x142b   :  { %1788 = vrot.lane.b32.xlu0 %v1768_v37, %s6957_s27 }
0x142c   :  { %v1772_v39 = vpop.f32.mrb[34].mxu0 }
0x142d   :  { %v1773_v44 = vadd.f32 %v1772_v39, %v7107_v8  ;;  %v6019_v45 = vpop.f32.mrb[35].mxu0 }
0x142f   :  { %1807 = vrot.lane.b32.xlu0 %v7336_v29, %s6947_s0  ;;  %1799 = vrot.lane.b32.xlu1 %v1773_v44, %s6957_s27 }
0x1499   :  { %v1778_v46 = vpop.permute.xlu1 %1777 }
0x149a   :  { %v1780_v47 = vadd.f32 %v1778_v46, %v7097_v54 }
0x149c   :  { %v5497_v48 = vmul.f32 -1.442695, %v1780_v47 }
0x149d   :  { %v1789_v51 = vpop.permute.xlu0 %1788 }
0x149e   :  { %6664 = vpow2.f32 %v5497_v48  ;;  %v1791_v53 = vadd.f32 %v1789_v51, %v7103_v61 }
0x14a0   :  { %v5498_v55 = vmul.f32 -1.442695, %v1791_v53  ;;  %v7396_v53 = vld [vmem:[#allocation2 + $0xf0] sm:$0xff] }
0x14a1   :  { %v1800_v63 = vpop.permute.xlu1 %1799  ;;  %v1808_v7 = vpop.permute.xlu0 %1807 }
0x14a2   :  { %6666 = vpow2.f32 %v5498_v55  ;;  %v7403_v55 = vld [vmem:[#allocation2 + $0x100] sm:$0xff] }
0x14a8   :  { %v6665_v56 = vpop.eup %6664 }
0x14a9   :  { %v1784_v57 = vadd.f32 1.0, %v6665_v56  ;;  %v7409_v56 = vld [vmem:[#allocation2 + $0x110] sm:$0xff] }
0x14ab   :  { %6668 = vrcp.f32 %v1784_v57 }
0x14ac   :  { %v6667_v59 = vpop.eup %6666 }
0x14ad   :  { %v1795_v62 = vadd.f32 1.0, %v6667_v59  ;;  %v7415_v59 = vld [vmem:[#allocation2 + $0x150] sm:$0xff] }
0x14af   :  { %6670 = vrcp.f32 %v1795_v62 }
0x14b5   :  { %v6669_v0 = vpop.eup %6668 }
0x14b6   :  { %v1802_v1 = vmul.f32 %v6669_v0, %v1800_v63 }
0x14b8   :  { %v1803_v2 = vadd.f32 %v1802_v1, %v7110_v14  ;;  %v7419_v1 = vld [vmem:[#allocation2 + $0x160] sm:$0xff] }
0x14b9   :  { %v6671_v3 = vpop.eup %6670 }
0x14ba   :  { %6672 = vtanh.f32 %v1803_v2  ;;  %v1805_v4 = vsub.f32 1.0, %v6671_v3  ;;  %v1810_v9 = vmul.f32 %v6671_v3, %v1808_v7 }
0x14c4   :  { %v6673_v5 = vpop.eup %6672 }
0x14c5   :  { %v1806_v11 = vmul.f32 %v6673_v5, %v1805_v4  ;;  %v7423_v5 = vld [vmem:[#allocation2 + $0x170] sm:$0xff] }
0x14c7   :  { %v7364_v13 = vadd.f32 %v1810_v9, %v1806_v11 }
0x14c9   :  { %1813 = vrot.lane.b32.xlu1 %v7364_v13, %s6958_s28 }
0x153b   :  { %v1814_v15 = vpop.permute.xlu1 %1813 }
0x153c   :  { %6021 = vmatpush3.msra.mxu1 %v1814_v15 }
0x153d   :  { %6023 = vmatmul.mubr.msk.f32.vlgmr.msra.gmra.mrb[40].mxu1 %vm30_vm0, %v7075_v40  ;;  %6042 = vmatprep.subr.mxu1 %v6945_v34 }
0x153e   :  { %6025 = vmatprep.mubr.msk.f32.mxu1 %vm6944_vm3, %v6945_v34 }
0x1541   :  { %6026 = vmatmul.mubr.msk.f32.gmra.mrb[42].mxu1 %vm30_vm0, %v7081_v41 }
0x1542   :  { %6028 = vmatprep.mubr.msk.f32.mxu1 %vm6944_vm3, %v6945_v34 }
0x1545   :  { %6029 = vmatmul.mubr.msk.f32.gmra.mrb[44].mxu1 %vm30_vm0, %v7087_v42 }
0x1546   :  { %6044 = vmatprep.mubr.msk.f32.mxu1 %vm6944_vm3, %v6945_v34 }
0x1610   :  { %v1882_v16 = vpop.f32.mrb[40].mxu1 }
0x1611   :  { %v1883_v40 = vadd.f32 %v1882_v16, %v7095_v52  ;;  %v6024_v17 = vpop.f32.mrb[41].mxu1 }
0x1613   :  { %1897 = vrot.lane.b32.xlu0 %v1883_v40, %s6959_s1 }
0x1614   :  { %v1887_v18 = vpop.f32.mrb[42].mxu1 }
0x1615   :  { %v1888_v19 = vadd.f32 %v1887_v18, %v7100_v58  ;;  %v6027_v41 = vpop.f32.mrb[43].mxu1 }
0x1617   :  { %1908 = vrot.lane.b32.xlu1 %v1888_v19, %s6959_s1 }
0x1618   :  { %v1892_v20 = vpop.f32.mrb[44].mxu1 }
0x1619   :  { %v1893_v21 = vadd.f32 %v1892_v20, %v7107_v8  ;;  %v6030_v42 = vpop.f32.mrb[45].mxu1 }
0x161b   :  { %1927 = vrot.lane.b32.xlu1 %v7364_v13, %s6947_s0  ;;  %1919 = vrot.lane.b32.xlu0 %v1893_v21, %s6959_s1 }
0x1685   :  { %v1898_v52 = vpop.permute.xlu0 %1897 }
0x1686   :  { %v1900_v23 = vadd.f32 %v1898_v52, %v7097_v54 }
0x1688   :  { %v5502_v24 = vmul.f32 -1.442695, %v1900_v23 }
0x1689   :  { %v1909_v25 = vpop.permute.xlu1 %1908 }
0x168a   :  { %6674 = vpow2.f32 %v5502_v24  ;;  %v1911_v58 = vadd.f32 %v1909_v25, %v7103_v61 }
0x168c   :  { %v5503_v26 = vmul.f32 -1.442695, %v1911_v58 }
0x168d   :  { %v1920_v33 = vpop.permute.xlu0 %1919  ;;  %v1928_v45 = vpop.permute.xlu1 %1927 }
0x168e   :  { %6676 = vpow2.f32 %v5503_v26 }
0x1694   :  { %v6675_v28 = vpop.eup %6674 }
0x1695   :  { %v1904_v30 = vadd.f32 1.0, %v6675_v28 }
0x1697   :  { %6678 = vrcp.f32 %v1904_v30 }
0x1698   :  { %v6677_v8 = vpop.eup %6676 }
0x1699   :  { %v1915_v31 = vadd.f32 1.0, %v6677_v8 }
0x169b   :  { %6680 = vrcp.f32 %v1915_v31 }
0x16a1   :  { %v6679_v35 = vpop.eup %6678 }
0x16a2   :  { %v1922_v36 = vmul.f32 %v6679_v35, %v1920_v33 }
0x16a4   :  { %v1923_v37 = vadd.f32 %v1922_v36, %v7110_v14 }
0x16a5   :  { %v6681_v38 = vpop.eup %6680 }
0x16a6   :  { %6682 = vtanh.f32 %v1923_v37  ;;  %v1925_v39 = vsub.f32 1.0, %v6681_v38  ;;  %v1930_v46 = vmul.f32 %v6681_v38, %v1928_v45 }
0x16b0   :  { %v6683_v44 = vpop.eup %6682 }
0x16b1   :  { %v1926_v47 = vmul.f32 %v6683_v44, %v1925_v39 }
0x16b3   :  { %v7392_v48 = vadd.f32 %v1930_v46, %v1926_v47 }
0x16b5   :  { %1933 = vrot.lane.b32.xlu0 %v7392_v48, %s6960_s29 }
0x1727   :  { %v1934_v51 = vpop.permute.xlu0 %1933 }
0x1728   :  { %6032 = vmatpush3.msra.mxu0 %v1934_v51 }
0x1729   :  { %6034 = vmatmul.mubr.msk.f32.vlgmr.msra.gmra.mrb[36].mxu0 %vm30_vm0, %v7396_v53  ;;  %6053 = vmatprep.subr.mxu0 %v6945_v34 }
0x172a   :  { %6036 = vmatprep.mubr.msk.f32.mxu0 %vm6944_vm3, %v6945_v34 }
0x172d   :  { %6037 = vmatmul.mubr.msk.f32.gmra.mrb[38].mxu0 %vm30_vm0, %v7403_v55 }
0x172e   :  { %6039 = vmatprep.mubr.msk.f32.mxu0 %vm6944_vm3, %v6945_v34 }
0x1731   :  { %6040 = vmatmul.mubr.msk.f32.gmra.mrb[40].mxu0 %vm30_vm0, %v7409_v56 }
0x1732   :  { %6055 = vmatprep.mubr.msk.f32.mxu0 %vm6944_vm3, %v6945_v34 }
0x17fc   :  { %v2002_v57 = vpop.f32.mrb[36].mxu0 }
0x17fd   :  { %v2003_v62 = vadd.f32 %v7415_v59, %v2002_v57  ;;  %v6035_v63 = vpop.f32.mrb[37].mxu0 }
0x17ff   :  { %2017 = vrot.lane.b32.xlu1 %v2003_v62, %s6961_s30 }
0x1800   :  { %v2007_v0 = vpop.f32.mrb[38].mxu0 }
0x1801   :  { %v2008_v2 = vadd.f32 %v7419_v1, %v2007_v0  ;;  %v6038_v3 = vpop.f32.mrb[39].mxu0 }
0x1803   :  { %2028 = vrot.lane.b32.xlu0 %v2008_v2, %s6961_s30 }
0x1804   :  { %v2012_v4 = vpop.f32.mrb[40].mxu0 }
0x1805   :  { %v2013_v7 = vadd.f32 %v7423_v5, %v2012_v4  ;;  %v6041_v9 = vpop.f32.mrb[41].mxu0 }
0x1807   :  { %2047 = vrot.lane.b32.xlu0 %v7392_v48, %s6947_s0  ;;  %2039 = vrot.lane.b32.xlu1 %v2013_v7, %s6961_s30 }
0x1871   :  { %v2018_v11 = vpop.permute.xlu1 %2017 }
0x1872   :  { %v2020_v15 = vadd.f32 %v2018_v11, %v7097_v54 }
0x1874   :  { %v5507_v16 = vmul.f32 -1.442695, %v2020_v15 }
0x1875   :  { %v2029_v40 = vpop.permute.xlu0 %2028 }
0x1876   :  { %6684 = vpow2.f32 %v5507_v16  ;;  %v2031_v17 = vadd.f32 %v2029_v40, %v7103_v61 }
0x1878   :  { %v5508_v18 = vmul.f32 -1.442695, %v2031_v17 }
0x1879   :  { %v2040_v42 = vpop.permute.xlu1 %2039  ;;  %v2048_v28 = vpop.permute.xlu0 %2047 }
0x187a   :  { %6686 = vpow2.f32 %v5508_v18 }
0x1880   :  { %v6685_v19 = vpop.eup %6684 }
0x1881   :  { %v2024_v41 = vadd.f32 1.0, %v6685_v19 }
0x1883   :  { %6688 = vrcp.f32 %v2024_v41 }
0x1884   :  { %v6687_v20 = vpop.eup %6686 }
0x1885   :  { %v2035_v21 = vadd.f32 1.0, %v6687_v20 }
0x1887   :  { %6690 = vrcp.f32 %v2035_v21 }
0x188d   :  { %v6689_v52 = vpop.eup %6688 }
0x188e   :  { %v2042_v23 = vmul.f32 %v6689_v52, %v2040_v42 }
0x1890   :  { %v2043_v24 = vadd.f32 %v2042_v23, %v7110_v14 }
0x1891   :  { %v6691_v25 = vpop.eup %6690 }
0x1892   :  { %6692 = vtanh.f32 %v2043_v24  ;;  %v2045_v58 = vsub.f32 1.0, %v6691_v25  ;;  %v2050_v30 = vmul.f32 %v6691_v25, %v2048_v28 }
0x189c   :  { %v6693_v26 = vpop.eup %6692 }
0x189d   :  { %v2046_v8 = vmul.f32 %v6693_v26, %v2045_v58 }
0x189f   :  { %v7432_v31 = vadd.f32 %v2050_v30, %v2046_v8 }
0x18a1   :  { %2053 = vrot.lane.b32.xlu1 %v7432_v31, %s6962_s3 }
0x1913   :  { %v2054_v33 = vpop.permute.xlu1 %2053 }
0x1914   :  { %6043 = vmatpush3.msra.mxu1 %v2054_v33 }
0x1915   :  { %6045 = vmatmul.mubr.msk.f32.vlgmr.msra.gmra.mrb[46].mxu1 %vm30_vm0, %v7396_v53  ;;  %6064 = vmatprep.subr.mxu1 %v6945_v34 }
0x1916   :  { %6047 = vmatprep.mubr.msk.f32.mxu1 %vm6944_vm3, %v6945_v34 }
0x1919   :  { %6048 = vmatmul.mubr.msk.f32.gmra.mrb[48].mxu1 %vm30_vm0, %v7403_v55 }
0x191a   :  { %6050 = vmatprep.mubr.msk.f32.mxu1 %vm6944_vm3, %v6945_v34 }
0x191d   :  { %6051 = vmatmul.mubr.msk.f32.gmra.mrb[50].mxu1 %vm30_vm0, %v7409_v56 }
0x191e   :  { %6066 = vmatprep.mubr.msk.f32.mxu1 %vm6944_vm3, %v6945_v34 }
0x19e8   :  { %v2122_v35 = vpop.f32.mrb[46].mxu1 }
0x19e9   :  { %v2123_v36 = vadd.f32 %v7415_v59, %v2122_v35  ;;  %v6046_v37 = vpop.f32.mrb[47].mxu1 }
0x19eb   :  { %2137 = vrot.lane.b32.xlu0 %v2123_v36, %s6963_s4 }
0x19ec   :  { %v2127_v38 = vpop.f32.mrb[48].mxu1 }
0x19ed   :  { %v2128_v39 = vadd.f32 %v7419_v1, %v2127_v38  ;;  %v6049_v44 = vpop.f32.mrb[49].mxu1 }
0x19ef   :  { %2148 = vrot.lane.b32.xlu1 %v2128_v39, %s6963_s4 }
0x19f0   :  { %v2132_v45 = vpop.f32.mrb[50].mxu1 }
0x19f1   :  { %v2133_v46 = vadd.f32 %v7423_v5, %v2132_v45  ;;  %v6052_v47 = vpop.f32.mrb[51].mxu1 }
0x19f3   :  { %2167 = vrot.lane.b32.xlu1 %v7432_v31, %s6947_s0  ;;  %2159 = vrot.lane.b32.xlu0 %v2133_v46, %s6963_s4 }
0x1a5d   :  { %v2138_v51 = vpop.permute.xlu0 %2137 }
0x1a5e   :  { %v2140_v57 = vadd.f32 %v2138_v51, %v7097_v54 }
0x1a60   :  { %v5512_v62 = vmul.f32 -1.442695, %v2140_v57 }
0x1a61   :  { %v2149_v63 = vpop.permute.xlu1 %2148 }
0x1a62   :  { %6694 = vpow2.f32 %v5512_v62  ;;  %v2151_v0 = vadd.f32 %v2149_v63, %v7103_v61 }
0x1a64   :  { %v5513_v2 = vmul.f32 -1.442695, %v2151_v0 }
0x1a65   :  { %v2160_v11 = vpop.permute.xlu0 %2159  ;;  %v2168_v41 = vpop.permute.xlu1 %2167 }
0x1a66   :  { %6696 = vpow2.f32 %v5513_v2 }
0x1a6c   :  { %v6695_v3 = vpop.eup %6694 }
0x1a6d   :  { %v2144_v4 = vadd.f32 1.0, %v6695_v3 }
0x1a6f   :  { %6698 = vrcp.f32 %v2144_v4 }
0x1a70   :  { %v6697_v7 = vpop.eup %6696 }
0x1a71   :  { %v2155_v9 = vadd.f32 1.0, %v6697_v7 }
0x1a73   :  { %6700 = vrcp.f32 %v2155_v9 }
0x1a79   :  { %v6699_v15 = vpop.eup %6698 }
0x1a7a   :  { %v2162_v16 = vmul.f32 %v6699_v15, %v2160_v11 }
0x1a7c   :  { %v2163_v40 = vadd.f32 %v2162_v16, %v7110_v14 }
0x1a7d   :  { %v6701_v17 = vpop.eup %6700 }
0x1a7e   :  { %6702 = vtanh.f32 %v2163_v40  ;;  %v2165_v18 = vsub.f32 1.0, %v6701_v17  ;;  %v2170_v20 = vmul.f32 %v6701_v17, %v2168_v41 }
0x1a88   :  { %v6703_v19 = vpop.eup %6702 }
0x1a89   :  { %v2166_v21 = vmul.f32 %v6703_v19, %v2165_v18 }
0x1a8b   :  { %v7460_v42 = vadd.f32 %v2170_v20, %v2166_v21 }
0x1a8d   :  { %2173 = vrot.lane.b32.xlu0 %v7460_v42, %s6964_s5 }
0x1aff   :  { %v2174_v52 = vpop.permute.xlu0 %2173 }
0x1b00   :  { %6054 = vmatpush3.msra.mxu0 %v2174_v52 }
0x1b01   :  { %6056 = vmatmul.mubr.msk.f32.vlgmr.msra.gmra.mrb[42].mxu0 %vm30_vm0, %v7396_v53  ;;  %6075 = vmatprep.subr.mxu0 %v6945_v34 }
0x1b02   :  { %6058 = vmatprep.mubr.msk.f32.mxu0 %vm6944_vm3, %v6945_v34 }
0x1b05   :  { %6059 = vmatmul.mubr.msk.f32.gmra.mrb[44].mxu0 %vm30_vm0, %v7403_v55 }
0x1b06   :  { %6061 = vmatprep.mubr.msk.f32.mxu0 %vm6944_vm3, %v6945_v34 }
0x1b09   :  { %6062 = vmatmul.mubr.msk.f32.gmra.mrb[46].mxu0 %vm30_vm0, %v7409_v56 }
0x1b0a   :  { %6077 = vmatprep.mubr.msk.f32.mxu0 %vm6944_vm3, %v6945_v34 }
0x1bd4   :  { %v2242_v23 = vpop.f32.mrb[42].mxu0 }
0x1bd5   :  { %v2243_v24 = vadd.f32 %v7415_v59, %v2242_v23  ;;  %v6057_v25 = vpop.f32.mrb[43].mxu0 }
0x1bd7   :  { %2257 = vrot.lane.b32.xlu1 %v2243_v24, %s6965_s6 }
0x1bd8   :  { %v2247_v58 = vpop.f32.mrb[44].mxu0 }
0x1bd9   :  { %v2248_v26 = vadd.f32 %v7419_v1, %v2247_v58  ;;  %v6060_v28 = vpop.f32.mrb[45].mxu0 }
0x1bdb   :  { %2268 = vrot.lane.b32.xlu0 %v2248_v26, %s6965_s6 }
0x1bdc   :  { %v2252_v30 = vpop.f32.mrb[46].mxu0 }
0x1bdd   :  { %v2253_v8 = vadd.f32 %v7423_v5, %v2252_v30  ;;  %v6063_v33 = vpop.f32.mrb[47].mxu0 }
0x1bdf   :  { %2287 = vrot.lane.b32.xlu0 %v7460_v42, %s6947_s0  ;;  %2279 = vrot.lane.b32.xlu1 %v2253_v8, %s6965_s6 }
0x1c49   :  { %v2258_v35 = vpop.permute.xlu1 %2257 }
0x1c4a   :  { %v2260_v36 = vadd.f32 %v2258_v35, %v7097_v54 }
0x1c4c   :  { %v5517_v37 = vmul.f32 -1.442695, %v2260_v36 }
0x1c4d   :  { %v2269_v38 = vpop.permute.xlu0 %2268 }
0x1c4e   :  { %6704 = vpow2.f32 %v5517_v37  ;;  %v2271_v39 = vadd.f32 %v2269_v38, %v7103_v61 }
0x1c50   :  { %v5518_v44 = vmul.f32 -1.442695, %v2271_v39 }
0x1c51   :  { %v2280_v57 = vpop.permute.xlu1 %2279  ;;  %v2288_v7 = vpop.permute.xlu0 %2287 }
0x1c52   :  { %6706 = vpow2.f32 %v5518_v44 }
0x1c58   :  { %v6705_v45 = vpop.eup %6704 }
0x1c59   :  { %v2264_v46 = vadd.f32 1.0, %v6705_v45 }
0x1c5b   :  { %6708 = vrcp.f32 %v2264_v46 }
0x1c5c   :  { %v6707_v47 = vpop.eup %6706 }
0x1c5d   :  { %v2275_v51 = vadd.f32 1.0, %v6707_v47 }
0x1c5f   :  { %6710 = vrcp.f32 %v2275_v51 }
0x1c65   :  { %v6709_v62 = vpop.eup %6708 }
0x1c66   :  { %v2282_v63 = vmul.f32 %v6709_v62, %v2280_v57 }
0x1c68   :  { %v2283_v0 = vadd.f32 %v2282_v63, %v7110_v14 }
0x1c69   :  { %v6711_v2 = vpop.eup %6710 }
0x1c6a   :  { %6712 = vtanh.f32 %v2283_v0  ;;  %v2285_v3 = vsub.f32 1.0, %v6711_v2  ;;  %v2290_v9 = vmul.f32 %v6711_v2, %v2288_v7 }
0x1c74   :  { %v6713_v4 = vpop.eup %6712 }
0x1c75   :  { %v2286_v11 = vmul.f32 %v6713_v4, %v2285_v3 }
0x1c77   :  { %v7488_v15 = vadd.f32 %v2290_v9, %v2286_v11 }
0x1c79   :  { %2293 = vrot.lane.b32.xlu1 %v7488_v15, %s6966_s7 }
0x1ceb   :  { %v2294_v16 = vpop.permute.xlu1 %2293 }
0x1cec   :  { %6065 = vmatpush3.msra.mxu1 %v2294_v16 }
0x1ced   :  { %6067 = vmatmul.mubr.msk.f32.vlgmr.msra.gmra.mrb[52].mxu1 %vm30_vm0, %v7396_v53  ;;  %6086 = vmatprep.subr.mxu1 %v6945_v34 }
0x1cee   :  { %6069 = vmatprep.mubr.msk.f32.mxu1 %vm6944_vm3, %v6945_v34 }
0x1cf1   :  { %6070 = vmatmul.mubr.msk.f32.gmra.mrb[54].mxu1 %vm30_vm0, %v7403_v55 }
0x1cf2   :  { %6072 = vmatprep.mubr.msk.f32.mxu1 %vm6944_vm3, %v6945_v34 }
0x1cf5   :  { %6073 = vmatmul.mubr.msk.f32.gmra.mrb[56].mxu1 %vm30_vm0, %v7409_v56 }
0x1cf6   :  { %6088 = vmatprep.mubr.msk.f32.mxu1 %vm6944_vm3, %v6945_v34 }
0x1dc0   :  { %v2362_v40 = vpop.f32.mrb[52].mxu1 }
0x1dc1   :  { %v2363_v17 = vadd.f32 %v7415_v59, %v2362_v40  ;;  %v6068_v18 = vpop.f32.mrb[53].mxu1 }
0x1dc3   :  { %2377 = vrot.lane.b32.xlu0 %v2363_v17, %s6967_s11 }
0x1dc4   :  { %v2367_v19 = vpop.f32.mrb[54].mxu1 }
0x1dc5   :  { %v2368_v41 = vadd.f32 %v7419_v1, %v2367_v19  ;;  %v6071_v20 = vpop.f32.mrb[55].mxu1 }
0x1dc7   :  { %2388 = vrot.lane.b32.xlu1 %v2368_v41, %s6967_s11 }
0x1dc8   :  { %v2372_v21 = vpop.f32.mrb[56].mxu1 }
0x1dc9   :  { %v2373_v52 = vadd.f32 %v7423_v5, %v2372_v21  ;;  %v6074_v23 = vpop.f32.mrb[57].mxu1 }
0x1dcb   :  { %2407 = vrot.lane.b32.xlu1 %v7488_v15, %s6947_s0  ;;  %2399 = vrot.lane.b32.xlu0 %v2373_v52, %s6967_s11 }
0x1e35   :  { %v2378_v24 = vpop.permute.xlu0 %2377 }
0x1e36   :  { %v2380_v25 = vadd.f32 %v2378_v24, %v7097_v54 }
0x1e38   :  { %v5522_v58 = vmul.f32 -1.442695, %v2380_v25 }
0x1e39   :  { %v2389_v26 = vpop.permute.xlu1 %2388 }
0x1e3a   :  { %6714 = vpow2.f32 %v5522_v58  ;;  %v2391_v28 = vadd.f32 %v2389_v26, %v7103_v61 }
0x1e3c   :  { %v5523_v30 = vmul.f32 -1.442695, %v2391_v28 }
0x1e3d   :  { %v2400_v37 = vpop.permute.xlu0 %2399  ;;  %v2408_v51 = vpop.permute.xlu1 %2407 }
0x1e3e   :  { %6716 = vpow2.f32 %v5523_v30 }
0x1e44   :  { %v6715_v8 = vpop.eup %6714 }
0x1e45   :  { %v2384_v33 = vadd.f32 1.0, %v6715_v8 }
0x1e47   :  { %6718 = vrcp.f32 %v2384_v33 }
0x1e48   :  { %v6717_v35 = vpop.eup %6716 }
0x1e49   :  { %v2395_v36 = vadd.f32 1.0, %v6717_v35 }
0x1e4b   :  { %6720 = vrcp.f32 %v2395_v36 }
0x1e51   :  { %v6719_v38 = vpop.eup %6718 }
0x1e52   :  { %v2402_v39 = vmul.f32 %v6719_v38, %v2400_v37 }
0x1e54   :  { %v2403_v44 = vadd.f32 %v2402_v39, %v7110_v14  ;;  %v2558_v39 = vld [vmem:[#allocation2 + $0x180] sm:$0xff] }
0x1e55   :  { %v6721_v45 = vpop.eup %6720 }
0x1e56   :  { %6722 = vtanh.f32 %v2403_v44  ;;  %v2405_v46 = vsub.f32 1.0, %v6721_v45  ;;  %v2410_v57 = vmul.f32 %v6721_v45, %v2408_v51 }
0x1e60   :  { %v6723_v47 = vpop.eup %6722 }
0x1e61   :  { %v2406_v62 = vmul.f32 %v6723_v47, %v2405_v46 }
0x1e63   :  { %v7516_v63 = vadd.f32 %v2410_v57, %v2406_v62  ;;  %v7597_v57 = vld [vmem:[#allocation2 + $0x210] sm:$0xff]  ;;  %v2561_v62 = vld [vmem:[#allocation2 + $0x1e0] sm:$0xff] }
0x1e65   :  { %2413 = vrot.lane.b32.xlu0 %v7516_v63, %s6968_s13 }
0x1ed7   :  { %v2414_v0 = vpop.permute.xlu0 %2413 }
0x1ed8   :  { %6076 = vmatpush3.msra.mxu0 %v2414_v0 }
0x1ed9   :  { %6078 = vmatmul.mubr.msk.f32.vlgmr.msra.gmra.mrb[48].mxu0 %vm30_vm0, %v7396_v53  ;;  %6097 = vmatprep.subr.mxu0 %v6945_v34 }
0x1eda   :  { %6080 = vmatprep.mubr.msk.f32.mxu0 %vm6944_vm3, %v6945_v34  ;;  %6098 = vmatpush3.msra.mxu0 %v6945_v34 }
0x1edb   :  { %6119 = vmatprep.subr.mxu0 %v6945_v34 }
0x1edd   :  { %6081 = vmatmul.mubr.msk.f32.gmra.mrb[50].mxu0 %vm30_vm0, %v7403_v55 }
0x1ede   :  { %6083 = vmatprep.mubr.msk.f32.mxu0 %vm6944_vm3, %v6945_v34 }
0x1ee1   :  { %6084 = vmatmul.mubr.msk.f32.gmra.mrb[52].mxu0 %vm30_vm0, %v7409_v56 }
0x1ee2   :  { %6099 = vmatprep.mubr.msk.f32.mxu0 %vm6944_vm3, %v6945_v34 }
0x1fac   :  { %v2482_v53 = vpop.f32.mrb[48].mxu0 }
0x1fad   :  { %v2483_v2 = vadd.f32 %v7415_v59, %v2482_v53  ;;  %v6079_v3 = vpop.f32.mrb[49].mxu0  ;;  %v7543_v59 = vld [vmem:[#allocation2 + $0x1b0] sm:$0xff]  ;;  %v7600_v53 = vld [vmem:[#allocation2 + $0x220] sm:$0xff] }
0x1fae   :  { %6100 = vmatmul.mubr.msk.f32.vlgmr.msra.gmra.mrb[54].mxu0 %vm30_vm0, %v7543_v59 }
0x1faf   :  { %2497 = vrot.lane.b32.xlu1 %v2483_v2, %s6969_s15  ;;  %6102 = vmatprep.mubr.msk.f32.mxu0 %vm6944_vm3, %v6945_v34 }
0x1fb0   :  { %v2487_v4 = vpop.f32.mrb[50].mxu0 }
0x1fb1   :  { %v2488_v7 = vadd.f32 %v7419_v1, %v2487_v4  ;;  %v6082_v55 = vpop.f32.mrb[51].mxu0  ;;  %v7549_v1 = vld [vmem:[#allocation2 + $0x1c0] sm:$0xff]  ;;  %v2562_v4 = vld [vmem:[#allocation2 + $0x1f0] sm:$0xff] }
0x1fb2   :  { %6103 = vmatmul.mubr.msk.f32.gmra.mrb[56].mxu0 %vm30_vm0, %v7549_v1 }
0x1fb3   :  { %2508 = vrot.lane.b32.xlu0 %v2488_v7, %s6969_s15  ;;  %6105 = vmatprep.mubr.msk.f32.mxu0 %vm6944_vm3, %v6945_v34 }
0x1fb4   :  { %v2492_v9 = vpop.f32.mrb[52].mxu0 }
0x1fb5   :  { %v2493_v11 = vadd.f32 %v7423_v5, %v2492_v9  ;;  %v6085_v56 = vpop.f32.mrb[53].mxu0  ;;  %v7555_v5 = vld [vmem:[#allocation2 + $0x1d0] sm:$0xff] }
0x1fb6   :  { %6106 = vmatmul.mubr.msk.f32.gmra.mrb[58].mxu0 %vm30_vm0, %v7555_v5 }
0x1fb7   :  { %2527 = vrot.lane.b32.xlu0 %v7516_v63, %s6947_s0  ;;  %2519 = vrot.lane.b32.xlu1 %v2493_v11, %s6969_s15 }
0x1fb8   :  { %6121 = vmatprep.mubr.msk.f32.mxu0 %vm6944_vm3, %v6945_v34 }
0x2021   :  { %v2498_v16 = vpop.permute.xlu1 %2497 }
0x2022   :  { %v2500_v40 = vadd.f32 %v2498_v16, %v7097_v54  ;;  %v2533_v54 = vsel %vm2532_vm8, %v7113_v22, %v7140_v60 }
0x2024   :  { %v5527_v17 = vmul.f32 -1.442695, %v2500_v40 }
0x2025   :  { %v2509_v18 = vpop.permute.xlu0 %2508 }
0x2026   :  { %6724 = vpow2.f32 %v5527_v17  ;;  %v2511_v19 = vadd.f32 %v2509_v18, %v7103_v61  ;;  %v2534_v61 = vsel %vm525_vm7, %v2533_v54, %v7168_v32  ;;  %vm4592_vm7 = vcmask 1041408  }
0x2027   :  { %v2536_v28 = vsel %vm2535_vm9, %v2534_v61, %v7196_v10  ;;  %vm4574_vm9 = vcmask 7168  }
0x2028   :  { %v5528_v41 = vmul.f32 -1.442695, %v2511_v19  ;;  %v2537_v30 = vsel %vm30_vm0, %v2536_v28, %v7224_v50 }
0x2029   :  { %v2520_v24 = vpop.permute.xlu1 %2519  ;;  %v2539_v8 = vsel %vm2538_vm10, %v2537_v30, %v7252_v27  ;;  %v2528_v27 = vpop.permute.xlu0 %2527 }
0x202a   :  { %6726 = vpow2.f32 %v5528_v41 }
0x2030   :  { %v6725_v20 = vpop.eup %6724 }
0x2031   :  { %v2504_v21 = vadd.f32 1.0, %v6725_v20 }
0x2033   :  { %6728 = vrcp.f32 %v2504_v21 }
0x2034   :  { %v6727_v52 = vpop.eup %6726 }
0x2035   :  { %v2515_v23 = vadd.f32 1.0, %v6727_v52  ;;  %v7609_v52 = vld [vmem:[#allocation2 + $0x230] sm:$0xff] }
0x2037   :  { %6730 = vrcp.f32 %v2515_v23 }
0x203d   :  { %v6729_v25 = vpop.eup %6728 }
0x203e   :  { %v2522_v58 = vmul.f32 %v6729_v25, %v2520_v24  ;;  %v2563_v24 = vld [vmem:[#allocation2 + $0x200] sm:$0xff] }
0x2040   :  { %v2523_v26 = vadd.f32 %v2522_v58, %v7110_v14  ;;  %v2540_v14 = vsel %vm440_vm5, %v2539_v8, %v7280_v6  ;;  %vm2556_vm5 = vcmask 244736  }
0x2041   :  { %v6731_v33 = vpop.eup %6730  ;;  %v2542_v35 = vsel %vm2541_vm11, %v2540_v14, %v7308_v49 }
0x2042   :  { %6732 = vtanh.f32 %v2523_v26  ;;  %v2543_v22 = vsel %vm362_vm2, %v2542_v35, %v7336_v29  ;;  %v2525_v32 = vsub.f32 1.0, %v6731_v33  ;;  %v2530_v6 = vmul.f32 %v6731_v33, %v2528_v27 }
0x2043   :  { %v2545_v60 = vsel %vm2544_vm12, %v2543_v22, %v7364_v13 }
0x2044   :  { %v2547_v50 = vsel %vm2546_vm13, %v2545_v60, %v7392_v48  ;;  %v2559_v48 = vld [vmem:[#allocation2 + $0x190] sm:$0xff] }
0x2045   :  { %v2549_v36 = vsel %vm2548_vm14, %v2547_v50, %v7432_v31  ;;  %v2560_v31 = vld [vmem:[#allocation2 + $0x1a0] sm:$0xff] }
0x2046   :  { %v2551_v49 = vsel %vm2550_vm15, %v2549_v36, %v7460_v42 }
0x2047   :  { %v2553_v29 = vsel %vm2552_vm1, %v2551_v49, %v7488_v15 }
0x2048   :  { %v2555_v13 = vsel %vm2554_vm4, %v2553_v29, %v7516_v63 }
0x204c   :  { %v6733_v10 = vpop.eup %6732 }
0x204d   :  { %v2526_v37 = vmul.f32 %v6733_v10, %v2525_v32 }
0x204f   :  { %v7582_v38 = vadd.f32 %v2530_v6, %v2526_v37 }
0x2051   :  { %v2557_v44 = vsel %vm2556_vm5, %v2555_v13, %v7582_v38 }
0x2052   :  { %6087 = vmatpush3.msra.mxu1 %v2557_v44 }
0x2053   :  { %6089 = vmatmul.mubr.msk.f32.vlgmr.msra.gmra.mrb[58].mxu1 %vm30_vm0, %v2558_v39  ;;  %6108 = vmatprep.subr.mxu1 %v6945_v34 }
0x2054   :  { %6091 = vmatprep.mubr.msk.f32.mxu1 %vm6944_vm3, %v6945_v34 }
0x2057   :  { %6092 = vmatmul.mubr.msk.f32.gmra.mrb[60].mxu1 %vm30_vm0, %v2559_v48 }
0x2058   :  { %6094 = vmatprep.mubr.msk.f32.mxu1 %vm6944_vm3, %v6945_v34 }
0x205b   :  { %6095 = vmatmul.mubr.msk.f32.gmra.mrb[62].mxu1 %vm30_vm0, %v2560_v31 }
0x205c   :  { %6110 = vmatprep.mubr.msk.f32.mxu1 %vm6944_vm3, %v6945_v34 }
0x2081   :  { %v2734_v42 = vpop.f32.mrb[54].mxu0 }
0x2082   :  { %v6101_v15 = vpop.f32.mrb[55].mxu0  ;;  %v2735_v63 = vadd.f32 %v2734_v42, %v7597_v57 }
0x2085   :  { %v2739_v45 = vpop.f32.mrb[56].mxu0 }
0x2086   :  { %v6104_v46 = vpop.f32.mrb[57].mxu0  ;;  %v2740_v7 = vadd.f32 %v2739_v45, %v7600_v53 }
0x2089   :  { %v2744_v47 = vpop.f32.mrb[58].mxu0 }
0x208a   :  { %v6107_v51 = vpop.f32.mrb[59].mxu0  ;;  %v2745_v25 = vadd.f32 %v2744_v47, %v7609_v52 }
0x2126   :  { %v2639_v0 = vpop.f32.mrb[58].mxu1 }
0x2127   :  { %v7602_v2 = vadd.f32 %v2639_v0, %v2561_v62  ;;  %v6090_v3 = vpop.f32.mrb[59].mxu1 }
0x2129   :  { %v2748_v55 = vadd.f32 %v2735_v63, %v7602_v2 }
0x212a   :  { %v2644_v9 = vpop.f32.mrb[60].mxu1 }
0x212b   :  { %v7606_v11 = vadd.f32 %v2644_v9, %v2562_v4  ;;  %v6093_v56 = vpop.f32.mrb[61].mxu1  ;;  %v5535_v16 = vmul.f32 -1.442695, %v2748_v55 }
0x212d   :  { %v2755_v40 = vadd.f32 %v2740_v7, %v7606_v11  ;;  %6734 = vpow2.f32 %v5535_v16 }
0x212e   :  { %v2649_v17 = vpop.f32.mrb[62].mxu1 }
0x212f   :  { %v5536_v18 = vmul.f32 -1.442695, %v2755_v40  ;;  %v6096_v19 = vpop.f32.mrb[63].mxu1  ;;  %v7612_v58 = vadd.f32 %v2649_v17, %v2563_v24 }
0x2131   :  { %6736 = vpow2.f32 %v5536_v18 }
0x2137   :  { %v6735_v41 = vpop.eup %6734 }
0x2138   :  { %v2752_v20 = vadd.f32 1.0, %v6735_v41 }
0x213a   :  { %6738 = vrcp.f32 %v2752_v20 }
0x213b   :  { %v6737_v21 = vpop.eup %6736 }
0x213c   :  { %v2759_v23 = vadd.f32 1.0, %v6737_v21 }
0x213e   :  { %6740 = vrcp.f32 %v2759_v23 }
0x2144   :  { %v6739_v26 = vpop.eup %6738 }
0x2145   :  { %v2762_v54 = vmul.f32 %v6739_v26, %v2745_v25 }
0x2147   :  { %v2763_v61 = vadd.f32 %v2762_v54, %v7612_v58 }
0x2148   :  { %v6741_v28 = vpop.eup %6740 }
0x2149   :  { %6742 = vtanh.f32 %v2763_v61  ;;  %v2765_v30 = vsub.f32 1.0, %v6741_v28  ;;  %v2767_v14 = vmul.f32 0.0, %v6741_v28 }
0x2153   :  { %v6743_v8 = vpop.eup %6742 }
0x2154   :  { %v2766_v33 = vmul.f32 %v6743_v8, %v2765_v30 }
0x2156   :  { %v2768_v35 = vadd.f32 %v2767_v14, %v2766_v33 }
0x2158   :  { %6109 = vmatpush3.msra.mxu1 %v2768_v35 }
0x2159   :  { %6111 = vmatmul.mubr.msk.f32.vlgmr.msra.gmra.mrb[64].mxu1 %vm30_vm0, %v7543_v59  ;;  %6130 = vmatprep.subr.mxu1 %v6945_v34 }
0x215a   :  { %6113 = vmatprep.mubr.msk.f32.mxu1 %vm6944_vm3, %v6945_v34 }
0x215d   :  { %6114 = vmatmul.mubr.msk.f32.gmra.mrb[66].mxu1 %vm30_vm0, %v7549_v1 }
0x215e   :  { %6116 = vmatprep.mubr.msk.f32.mxu1 %vm6944_vm3, %v6945_v34 }
0x2161   :  { %6117 = vmatmul.mubr.msk.f32.gmra.mrb[68].mxu1 %vm30_vm0, %v7555_v5 }
0x2162   :  { %6132 = vmatprep.mubr.msk.f32.mxu1 %vm6944_vm3, %v6945_v34 }
0x222c   :  { %v2835_v22 = vpop.f32.mrb[64].mxu1 }
0x222d   :  { %v2836_v60 = vadd.f32 %v2835_v22, %v7597_v57  ;;  %v6112_v32 = vpop.f32.mrb[65].mxu1 }
0x222f   :  { %2850 = vrot.lane.b32.xlu1 %v2836_v60, %s6947_s0 }
0x2230   :  { %v2840_v10 = vpop.f32.mrb[66].mxu1 }
0x2231   :  { %v2841_v50 = vadd.f32 %v2840_v10, %v7600_v53  ;;  %v6115_v27 = vpop.f32.mrb[67].mxu1 }
0x2233   :  { %2861 = vrot.lane.b32.xlu0 %v2841_v50, %s6947_s0 }
0x2234   :  { %v2845_v36 = vpop.f32.mrb[68].mxu1 }
0x2235   :  { %v2846_v6 = vadd.f32 %v2845_v36, %v7609_v52  ;;  %v6118_v37 = vpop.f32.mrb[69].mxu1 }
0x2237   :  { %2881 = vrot.lane.b32.xlu0 %v2768_v35, %s6947_s0  ;;  %2872 = vrot.lane.b32.xlu1 %v2846_v6, %s6947_s0 }
0x22a1   :  { %v2851_v49 = vpop.permute.xlu1 %2850 }
0x22a2   :  { %v2853_v29 = vadd.f32 %v2851_v49, %v7602_v2 }
0x22a4   :  { %v5540_v13 = vmul.f32 -1.442695, %v2853_v29 }
0x22a5   :  { %v2862_v39 = vpop.permute.xlu0 %2861 }
0x22a6   :  { %6744 = vpow2.f32 %v5540_v13  ;;  %v2864_v44 = vadd.f32 %v2862_v39, %v7606_v11 }
0x22a8   :  { %v5541_v48 = vmul.f32 -1.442695, %v2864_v44 }
0x22a9   :  { %v2873_v46 = vpop.permute.xlu1 %2872  ;;  %v2882_v4 = vpop.permute.xlu0 %2881 }
0x22aa   :  { %6746 = vpow2.f32 %v5541_v48 }
0x22b0   :  { %v6745_v31 = vpop.eup %6744 }
0x22b1   :  { %v2857_v42 = vadd.f32 1.0, %v6745_v31 }
0x22b3   :  { %6748 = vrcp.f32 %v2857_v42 }
0x22b4   :  { %v6747_v15 = vpop.eup %6746 }
0x22b5   :  { %v2868_v45 = vadd.f32 1.0, %v6747_v15 }
0x22b7   :  { %6750 = vrcp.f32 %v2868_v45 }
0x22bd   :  { %v6749_v47 = vpop.eup %6748 }
0x22be   :  { %v2875_v51 = vmul.f32 %v6749_v47, %v2873_v46 }
0x22c0   :  { %v2876_v62 = vadd.f32 %v2875_v51, %v7612_v58 }
0x22c1   :  { %v6751_v63 = vpop.eup %6750 }
0x22c2   :  { %6752 = vtanh.f32 %v2876_v62  ;;  %v2878_v0 = vsub.f32 1.0, %v6751_v63  ;;  %v2884_v7 = vmul.f32 %v6751_v63, %v2882_v4 }
0x22cc   :  { %v6753_v3 = vpop.eup %6752 }
0x22cd   :  { %v2879_v55 = vmul.f32 %v6753_v3, %v2878_v0 }
0x22cf   :  { %v2885_v9 = vadd.f32 %v2884_v7, %v2879_v55 }
0x22d1   :  { %2887 = vrot.lane.b32.xlu1 %v2885_v9, %s6939_s9  ;;  %s6972_s9 = smov 99  }
0x2343   :  { %v2888_v56 = vpop.permute.xlu1 %2887 }
0x2344   :  { %6120 = vmatpush3.msra.mxu0 %v2888_v56 }
0x2345   :  { %6122 = vmatmul.mubr.msk.f32.vlgmr.msra.gmra.mrb[60].mxu0 %vm30_vm0, %v7543_v59  ;;  %6141 = vmatprep.subr.mxu0 %v6945_v34 }
0x2346   :  { %6124 = vmatprep.mubr.msk.f32.mxu0 %vm6944_vm3, %v6945_v34 }
0x2349   :  { %6125 = vmatmul.mubr.msk.f32.gmra.mrb[62].mxu0 %vm30_vm0, %v7549_v1 }
0x234a   :  { %6127 = vmatprep.mubr.msk.f32.mxu0 %vm6944_vm3, %v6945_v34 }
0x234d   :  { %6128 = vmatmul.mubr.msk.f32.gmra.mrb[64].mxu0 %vm30_vm0, %v7555_v5 }
0x234e   :  { %6143 = vmatprep.mubr.msk.f32.mxu0 %vm6944_vm3, %v6945_v34 }
0x2418   :  { %v2956_v16 = vpop.f32.mrb[60].mxu0 }
0x2419   :  { %v2957_v40 = vadd.f32 %v2956_v16, %v7597_v57  ;;  %v6123_v17 = vpop.f32.mrb[61].mxu0 }
0x241b   :  { %2971 = vrot.lane.b32.xlu0 %v2957_v40, %s6948_s17 }
0x241c   :  { %v2961_v18 = vpop.f32.mrb[62].mxu0 }
0x241d   :  { %v2962_v19 = vadd.f32 %v2961_v18, %v7600_v53  ;;  %v6126_v41 = vpop.f32.mrb[63].mxu0 }
0x241f   :  { %2982 = vrot.lane.b32.xlu1 %v2962_v19, %s6948_s17 }
0x2420   :  { %v2966_v20 = vpop.f32.mrb[64].mxu0 }
0x2421   :  { %v2967_v21 = vadd.f32 %v2966_v20, %v7609_v52  ;;  %v6129_v23 = vpop.f32.mrb[65].mxu0 }
0x2423   :  { %3001 = vrot.lane.b32.xlu1 %v2885_v9, %s6947_s0  ;;  %2993 = vrot.lane.b32.xlu0 %v2967_v21, %s6948_s17 }
0x248d   :  { %v2972_v24 = vpop.permute.xlu0 %2971 }
0x248e   :  { %v2974_v25 = vadd.f32 %v2972_v24, %v7602_v2 }
0x2490   :  { %v5545_v26 = vmul.f32 -1.442695, %v2974_v25 }
0x2491   :  { %v2983_v54 = vpop.permute.xlu1 %2982 }
0x2492   :  { %6754 = vpow2.f32 %v5545_v26  ;;  %v2985_v61 = vadd.f32 %v2983_v54, %v7606_v11 }
0x2494   :  { %v5546_v28 = vmul.f32 -1.442695, %v2985_v61 }
0x2495   :  { %v2994_v35 = vpop.permute.xlu0 %2993  ;;  %v3002_v36 = vpop.permute.xlu1 %3001 }
0x2496   :  { %6756 = vpow2.f32 %v5546_v28 }
0x249c   :  { %v6755_v30 = vpop.eup %6754 }
0x249d   :  { %v2978_v8 = vadd.f32 1.0, %v6755_v30 }
0x249f   :  { %6758 = vrcp.f32 %v2978_v8 }
0x24a0   :  { %v6757_v33 = vpop.eup %6756 }
0x24a1   :  { %v2989_v14 = vadd.f32 1.0, %v6757_v33 }
0x24a3   :  { %6760 = vrcp.f32 %v2989_v14 }
0x24a9   :  { %v6759_v22 = vpop.eup %6758 }
0x24aa   :  { %v2996_v60 = vmul.f32 %v6759_v22, %v2994_v35 }
0x24ac   :  { %v2997_v32 = vadd.f32 %v2996_v60, %v7612_v58 }
0x24ad   :  { %v6761_v10 = vpop.eup %6760 }
0x24ae   :  { %6762 = vtanh.f32 %v2997_v32  ;;  %v2999_v50 = vsub.f32 1.0, %v6761_v10  ;;  %v3004_v6 = vmul.f32 %v6761_v10, %v3002_v36 }
0x24b8   :  { %v6763_v27 = vpop.eup %6762 }
0x24b9   :  { %v3000_v37 = vmul.f32 %v6763_v27, %v2999_v50 }
0x24bb   :  { %v3005_v49 = vadd.f32 %v3004_v6, %v3000_v37 }
0x24bd   :  { %3007 = vrot.lane.b32.xlu0 %v3005_v49, %s6938_s8  ;;  %s6971_s8 = smov 98  }
0x252f   :  { %v3008_v29 = vpop.permute.xlu0 %3007 }
0x2530   :  { %6131 = vmatpush3.msra.mxu1 %v3008_v29 }
0x2531   :  { %6133 = vmatmul.mubr.msk.f32.vlgmr.msra.gmra.mrb[70].mxu1 %vm30_vm0, %v7543_v59  ;;  %6152 = vmatprep.subr.mxu1 %v6945_v34 }
0x2532   :  { %6135 = vmatprep.mubr.msk.f32.mxu1 %vm6944_vm3, %v6945_v34 }
0x2535   :  { %6136 = vmatmul.mubr.msk.f32.gmra.mrb[72].mxu1 %vm30_vm0, %v7549_v1 }
0x2536   :  { %6138 = vmatprep.mubr.msk.f32.mxu1 %vm6944_vm3, %v6945_v34 }
0x2539   :  { %6139 = vmatmul.mubr.msk.f32.gmra.mrb[74].mxu1 %vm30_vm0, %v7555_v5 }
0x253a   :  { %6154 = vmatprep.mubr.msk.f32.mxu1 %vm6944_vm3, %v6945_v34 }
0x2604   :  { %v3076_v13 = vpop.f32.mrb[70].mxu1 }
0x2605   :  { %v3077_v39 = vadd.f32 %v3076_v13, %v7597_v57  ;;  %v6134_v44 = vpop.f32.mrb[71].mxu1 }
0x2607   :  { %3091 = vrot.lane.b32.xlu1 %v3077_v39, %s6949_s18 }
0x2608   :  { %v3081_v48 = vpop.f32.mrb[72].mxu1 }
0x2609   :  { %v3082_v31 = vadd.f32 %v3081_v48, %v7600_v53  ;;  %v6137_v42 = vpop.f32.mrb[73].mxu1 }
0x260b   :  { %3102 = vrot.lane.b32.xlu0 %v3082_v31, %s6949_s18 }
0x260c   :  { %v3086_v15 = vpop.f32.mrb[74].mxu1 }
0x260d   :  { %v3087_v45 = vadd.f32 %v3086_v15, %v7609_v52  ;;  %v6140_v46 = vpop.f32.mrb[75].mxu1 }
0x260f   :  { %3121 = vrot.lane.b32.xlu0 %v3005_v49, %s6947_s0  ;;  %3113 = vrot.lane.b32.xlu1 %v3087_v45, %s6949_s18 }
0x2679   :  { %v3092_v47 = vpop.permute.xlu1 %3091 }
0x267a   :  { %v3094_v51 = vadd.f32 %v3092_v47, %v7602_v2 }
0x267c   :  { %v5550_v62 = vmul.f32 -1.442695, %v3094_v51 }
0x267d   :  { %v3103_v63 = vpop.permute.xlu0 %3102 }
0x267e   :  { %6764 = vpow2.f32 %v5550_v62  ;;  %v3105_v0 = vadd.f32 %v3103_v63, %v7606_v11 }
0x2680   :  { %v5551_v3 = vmul.f32 -1.442695, %v3105_v0 }
0x2681   :  { %v3114_v56 = vpop.permute.xlu1 %3113  ;;  %v3122_v20 = vpop.permute.xlu0 %3121 }
0x2682   :  { %6766 = vpow2.f32 %v5551_v3 }
0x2688   :  { %v6765_v4 = vpop.eup %6764 }
0x2689   :  { %v3098_v7 = vadd.f32 1.0, %v6765_v4 }
0x268b   :  { %6768 = vrcp.f32 %v3098_v7 }
0x268c   :  { %v6767_v55 = vpop.eup %6766 }
0x268d   :  { %v3109_v9 = vadd.f32 1.0, %v6767_v55 }
0x268f   :  { %6770 = vrcp.f32 %v3109_v9 }
0x2695   :  { %v6769_v16 = vpop.eup %6768 }
0x2696   :  { %v3116_v40 = vmul.f32 %v6769_v16, %v3114_v56 }
0x2698   :  { %v3117_v17 = vadd.f32 %v3116_v40, %v7612_v58 }
0x2699   :  { %v6771_v18 = vpop.eup %6770 }
0x269a   :  { %6772 = vtanh.f32 %v3117_v17  ;;  %v3119_v19 = vsub.f32 1.0, %v6771_v18  ;;  %v3124_v21 = vmul.f32 %v6771_v18, %v3122_v20 }
0x26a4   :  { %v6773_v41 = vpop.eup %6772 }
0x26a5   :  { %v3120_v23 = vmul.f32 %v6773_v41, %v3119_v19 }
0x26a7   :  { %v3125_v24 = vadd.f32 %v3124_v21, %v3120_v23 }
0x26a9   :  { %3127 = vrot.lane.b32.xlu1 %v3125_v24, %s6940_s10 }
0x271b   :  { %v3128_v25 = vpop.permute.xlu1 %3127 }
0x271c   :  { %6142 = vmatpush3.msra.mxu0 %v3128_v25 }
0x271d   :  { %6144 = vmatmul.mubr.msk.f32.vlgmr.msra.gmra.mrb[66].mxu0 %vm30_vm0, %v7543_v59  ;;  %6163 = vmatprep.subr.mxu0 %v6945_v34 }
0x271e   :  { %6146 = vmatprep.mubr.msk.f32.mxu0 %vm6944_vm3, %v6945_v34 }
0x2721   :  { %6147 = vmatmul.mubr.msk.f32.gmra.mrb[68].mxu0 %vm30_vm0, %v7549_v1 }
0x2722   :  { %6149 = vmatprep.mubr.msk.f32.mxu0 %vm6944_vm3, %v6945_v34 }
0x2725   :  { %6150 = vmatmul.mubr.msk.f32.gmra.mrb[70].mxu0 %vm30_vm0, %v7555_v5 }
0x2726   :  { %6165 = vmatprep.mubr.msk.f32.mxu0 %vm6944_vm3, %v6945_v34 }
0x27f0   :  { %v3196_v26 = vpop.f32.mrb[66].mxu0 }
0x27f1   :  { %v3197_v54 = vadd.f32 %v3196_v26, %v7597_v57  ;;  %v6145_v61 = vpop.f32.mrb[67].mxu0 }
0x27f3   :  { %3211 = vrot.lane.b32.xlu0 %v3197_v54, %s6950_s19 }
0x27f4   :  { %v3201_v28 = vpop.f32.mrb[68].mxu0 }
0x27f5   :  { %v3202_v30 = vadd.f32 %v3201_v28, %v7600_v53  ;;  %v6148_v8 = vpop.f32.mrb[69].mxu0 }
0x27f7   :  { %3222 = vrot.lane.b32.xlu1 %v3202_v30, %s6950_s19 }
0x27f8   :  { %v3206_v33 = vpop.f32.mrb[70].mxu0 }
0x27f9   :  { %v3207_v14 = vadd.f32 %v3206_v33, %v7609_v52  ;;  %v6151_v35 = vpop.f32.mrb[71].mxu0 }
0x27fb   :  { %3241 = vrot.lane.b32.xlu1 %v3125_v24, %s6947_s0  ;;  %3233 = vrot.lane.b32.xlu0 %v3207_v14, %s6950_s19 }
0x2865   :  { %v3212_v22 = vpop.permute.xlu0 %3211 }
0x2866   :  { %v3214_v60 = vadd.f32 %v3212_v22, %v7602_v2 }
0x2868   :  { %v5555_v32 = vmul.f32 -1.442695, %v3214_v60 }
0x2869   :  { %v3223_v10 = vpop.permute.xlu1 %3222 }
0x286a   :  { %6774 = vpow2.f32 %v5555_v32  ;;  %v3225_v50 = vadd.f32 %v3223_v10, %v7606_v11 }
0x286c   :  { %v5556_v27 = vmul.f32 -1.442695, %v3225_v50 }
0x286d   :  { %v3234_v29 = vpop.permute.xlu0 %3233  ;;  %v3242_v15 = vpop.permute.xlu1 %3241 }
0x286e   :  { %6776 = vpow2.f32 %v5556_v27 }
0x2874   :  { %v6775_v36 = vpop.eup %6774 }
0x2875   :  { %v3218_v6 = vadd.f32 1.0, %v6775_v36 }
0x2877   :  { %6778 = vrcp.f32 %v3218_v6 }
0x2878   :  { %v6777_v37 = vpop.eup %6776 }
0x2879   :  { %v3229_v49 = vadd.f32 1.0, %v6777_v37 }
0x287b   :  { %6780 = vrcp.f32 %v3229_v49 }
0x2881   :  { %v6779_v13 = vpop.eup %6778 }
0x2882   :  { %v3236_v39 = vmul.f32 %v6779_v13, %v3234_v29 }
0x2884   :  { %v3237_v44 = vadd.f32 %v3236_v39, %v7612_v58 }
0x2885   :  { %v6781_v48 = vpop.eup %6780 }
0x2886   :  { %6782 = vtanh.f32 %v3237_v44  ;;  %v3239_v31 = vsub.f32 1.0, %v6781_v48  ;;  %v3244_v45 = vmul.f32 %v6781_v48, %v3242_v15 }
0x2890   :  { %v6783_v42 = vpop.eup %6782 }
0x2891   :  { %v3240_v46 = vmul.f32 %v6783_v42, %v3239_v31 }
0x2893   :  { %v3245_v47 = vadd.f32 %v3244_v45, %v3240_v46 }
0x2895   :  { %3247 = vrot.lane.b32.xlu0 %v3245_v47, %s6942_s12 }
0x2907   :  { %v3248_v51 = vpop.permute.xlu0 %3247 }
0x2908   :  { %6153 = vmatpush3.msra.mxu1 %v3248_v51 }
0x2909   :  { %6155 = vmatmul.mubr.msk.f32.vlgmr.msra.gmra.mrb[76].mxu1 %vm30_vm0, %v7543_v59  ;;  %6174 = vmatprep.subr.mxu1 %v6945_v34 }
0x290a   :  { %6157 = vmatprep.mubr.msk.f32.mxu1 %vm6944_vm3, %v6945_v34 }
0x290d   :  { %6158 = vmatmul.mubr.msk.f32.gmra.mrb[78].mxu1 %vm30_vm0, %v7549_v1 }
0x290e   :  { %6160 = vmatprep.mubr.msk.f32.mxu1 %vm6944_vm3, %v6945_v34 }
0x2911   :  { %6161 = vmatmul.mubr.msk.f32.gmra.mrb[80].mxu1 %vm30_vm0, %v7555_v5 }
0x2912   :  { %6176 = vmatprep.mubr.msk.f32.mxu1 %vm6944_vm3, %v6945_v34 }
0x29dc   :  { %v3316_v62 = vpop.f32.mrb[76].mxu1 }
0x29dd   :  { %v3317_v63 = vadd.f32 %v3316_v62, %v7597_v57  ;;  %v6156_v0 = vpop.f32.mrb[77].mxu1 }
0x29df   :  { %3331 = vrot.lane.b32.xlu1 %v3317_v63, %s6951_s21 }
0x29e0   :  { %v3321_v3 = vpop.f32.mrb[78].mxu1 }
0x29e1   :  { %v3322_v4 = vadd.f32 %v3321_v3, %v7600_v53  ;;  %v6159_v7 = vpop.f32.mrb[79].mxu1 }
0x29e3   :  { %3342 = vrot.lane.b32.xlu0 %v3322_v4, %s6951_s21 }
0x29e4   :  { %v3326_v55 = vpop.f32.mrb[80].mxu1 }
0x29e5   :  { %v3327_v9 = vadd.f32 %v3326_v55, %v7609_v52  ;;  %v6162_v56 = vpop.f32.mrb[81].mxu1 }
0x29e7   :  { %3361 = vrot.lane.b32.xlu0 %v3245_v47, %s6947_s0  ;;  %3353 = vrot.lane.b32.xlu1 %v3327_v9, %s6951_s21 }
0x2a51   :  { %v3332_v16 = vpop.permute.xlu1 %3331 }
0x2a52   :  { %v3334_v40 = vadd.f32 %v3332_v16, %v7602_v2 }
0x2a54   :  { %v5560_v17 = vmul.f32 -1.442695, %v3334_v40 }
0x2a55   :  { %v3343_v18 = vpop.permute.xlu0 %3342 }
0x2a56   :  { %6784 = vpow2.f32 %v5560_v17  ;;  %v3345_v19 = vadd.f32 %v3343_v18, %v7606_v11 }
0x2a58   :  { %v5561_v41 = vmul.f32 -1.442695, %v3345_v19 }
0x2a59   :  { %v3354_v25 = vpop.permute.xlu1 %3353  ;;  %v3362_v33 = vpop.permute.xlu0 %3361 }
0x2a5a   :  { %6786 = vpow2.f32 %v5561_v41 }
0x2a60   :  { %v6785_v20 = vpop.eup %6784 }
0x2a61   :  { %v3338_v21 = vadd.f32 1.0, %v6785_v20 }
0x2a63   :  { %6788 = vrcp.f32 %v3338_v21 }
0x2a64   :  { %v6787_v23 = vpop.eup %6786 }
0x2a65   :  { %v3349_v24 = vadd.f32 1.0, %v6787_v23 }
0x2a67   :  { %6790 = vrcp.f32 %v3349_v24 }
0x2a6d   :  { %v6789_v26 = vpop.eup %6788 }
0x2a6e   :  { %v3356_v54 = vmul.f32 %v6789_v26, %v3354_v25 }
0x2a70   :  { %v3357_v61 = vadd.f32 %v3356_v54, %v7612_v58 }
0x2a71   :  { %v6791_v28 = vpop.eup %6790 }
0x2a72   :  { %6792 = vtanh.f32 %v3357_v61  ;;  %v3359_v30 = vsub.f32 1.0, %v6791_v28  ;;  %v3364_v14 = vmul.f32 %v6791_v28, %v3362_v33 }
0x2a7c   :  { %v6793_v8 = vpop.eup %6792 }
0x2a7d   :  { %v3360_v35 = vmul.f32 %v6793_v8, %v3359_v30 }
0x2a7f   :  { %v3365_v22 = vadd.f32 %v3364_v14, %v3360_v35 }
0x2a81   :  { %3367 = vrot.lane.b32.xlu1 %v3365_v22, %s6952_s22 }
0x2af3   :  { %v3368_v60 = vpop.permute.xlu1 %3367 }
0x2af4   :  { %6164 = vmatpush3.msra.mxu0 %v3368_v60 }
0x2af5   :  { %6166 = vmatmul.mubr.msk.f32.vlgmr.msra.gmra.mrb[72].mxu0 %vm30_vm0, %v7543_v59  ;;  %6185 = vmatprep.subr.mxu0 %v6945_v34 }
0x2af6   :  { %6168 = vmatprep.mubr.msk.f32.mxu0 %vm6944_vm3, %v6945_v34 }
0x2af9   :  { %6169 = vmatmul.mubr.msk.f32.gmra.mrb[74].mxu0 %vm30_vm0, %v7549_v1 }
0x2afa   :  { %6171 = vmatprep.mubr.msk.f32.mxu0 %vm6944_vm3, %v6945_v34 }
0x2afd   :  { %6172 = vmatmul.mubr.msk.f32.gmra.mrb[76].mxu0 %vm30_vm0, %v7555_v5 }
0x2afe   :  { %6187 = vmatprep.mubr.msk.f32.mxu0 %vm6944_vm3, %v6945_v34 }
0x2bc8   :  { %v3436_v32 = vpop.f32.mrb[72].mxu0 }
0x2bc9   :  { %v3437_v10 = vadd.f32 %v3436_v32, %v7597_v57  ;;  %v6167_v50 = vpop.f32.mrb[73].mxu0 }
0x2bcb   :  { %3451 = vrot.lane.b32.xlu0 %v3437_v10, %s6946_s14 }
0x2bcc   :  { %v3441_v27 = vpop.f32.mrb[74].mxu0 }
0x2bcd   :  { %v3442_v36 = vadd.f32 %v3441_v27, %v7600_v53  ;;  %v6170_v6 = vpop.f32.mrb[75].mxu0 }
0x2bcf   :  { %3462 = vrot.lane.b32.xlu1 %v3442_v36, %s6946_s14 }
0x2bd0   :  { %v3446_v37 = vpop.f32.mrb[76].mxu0 }
0x2bd1   :  { %v3447_v49 = vadd.f32 %v3446_v37, %v7609_v52  ;;  %v6173_v29 = vpop.f32.mrb[77].mxu0 }
0x2bd3   :  { %3481 = vrot.lane.b32.xlu1 %v3365_v22, %s6947_s0  ;;  %3473 = vrot.lane.b32.xlu0 %v3447_v49, %s6946_s14 }
0x2c3d   :  { %v3452_v13 = vpop.permute.xlu0 %3451 }
0x2c3e   :  { %v3454_v39 = vadd.f32 %v3452_v13, %v7602_v2 }
0x2c40   :  { %v5565_v44 = vmul.f32 -1.442695, %v3454_v39 }
0x2c41   :  { %v3463_v48 = vpop.permute.xlu1 %3462 }
0x2c42   :  { %6794 = vpow2.f32 %v5565_v44  ;;  %v3465_v31 = vadd.f32 %v3463_v48, %v7606_v11 }
0x2c44   :  { %v5566_v42 = vmul.f32 -1.442695, %v3465_v31 }
0x2c45   :  { %v3474_v51 = vpop.permute.xlu0 %3473  ;;  %v3482_v55 = vpop.permute.xlu1 %3481 }
0x2c46   :  { %6796 = vpow2.f32 %v5566_v42 }
0x2c4c   :  { %v6795_v15 = vpop.eup %6794 }
0x2c4d   :  { %v3458_v45 = vadd.f32 1.0, %v6795_v15 }
0x2c4f   :  { %6798 = vrcp.f32 %v3458_v45 }
0x2c50   :  { %v6797_v46 = vpop.eup %6796 }
0x2c51   :  { %v3469_v47 = vadd.f32 1.0, %v6797_v46 }
0x2c53   :  { %6800 = vrcp.f32 %v3469_v47 }
0x2c59   :  { %v6799_v62 = vpop.eup %6798 }
0x2c5a   :  { %v3476_v63 = vmul.f32 %v6799_v62, %v3474_v51 }
0x2c5c   :  { %v3477_v0 = vadd.f32 %v3476_v63, %v7612_v58 }
0x2c5d   :  { %v6801_v3 = vpop.eup %6800 }
0x2c5e   :  { %6802 = vtanh.f32 %v3477_v0  ;;  %v3479_v4 = vsub.f32 1.0, %v6801_v3  ;;  %v3484_v9 = vmul.f32 %v6801_v3, %v3482_v55 }
0x2c68   :  { %v6803_v7 = vpop.eup %6802 }
0x2c69   :  { %v3480_v56 = vmul.f32 %v6803_v7, %v3479_v4 }
0x2c6b   :  { %v3485_v16 = vadd.f32 %v3484_v9, %v3480_v56 }
0x2c6d   :  { %3487 = vrot.lane.b32.xlu0 %v3485_v16, %s6953_s23 }
0x2cdf   :  { %v3488_v40 = vpop.permute.xlu0 %3487 }
0x2ce0   :  { %6175 = vmatpush3.msra.mxu1 %v3488_v40 }
0x2ce1   :  { %6177 = vmatmul.mubr.msk.f32.vlgmr.msra.gmra.mrb[82].mxu1 %vm30_vm0, %v7543_v59  ;;  %6196 = vmatprep.subr.mxu1 %v6945_v34 }
0x2ce2   :  { %6179 = vmatprep.mubr.msk.f32.mxu1 %vm6944_vm3, %v6945_v34 }
0x2ce5   :  { %6180 = vmatmul.mubr.msk.f32.gmra.mrb[84].mxu1 %vm30_vm0, %v7549_v1 }
0x2ce6   :  { %6182 = vmatprep.mubr.msk.f32.mxu1 %vm6944_vm3, %v6945_v34 }
0x2ce9   :  { %6183 = vmatmul.mubr.msk.f32.gmra.mrb[86].mxu1 %vm30_vm0, %v7555_v5 }
0x2cea   :  { %6198 = vmatprep.mubr.msk.f32.mxu1 %vm6944_vm3, %v6945_v34 }
0x2db4   :  { %v3556_v17 = vpop.f32.mrb[82].mxu1 }
0x2db5   :  { %v3557_v18 = vadd.f32 %v3556_v17, %v7597_v57  ;;  %v6178_v19 = vpop.f32.mrb[83].mxu1 }
0x2db7   :  { %3571 = vrot.lane.b32.xlu1 %v3557_v18, %s6954_s24 }
0x2db8   :  { %v3561_v41 = vpop.f32.mrb[84].mxu1 }
0x2db9   :  { %v3562_v20 = vadd.f32 %v3561_v41, %v7600_v53  ;;  %v6181_v21 = vpop.f32.mrb[85].mxu1 }
0x2dbb   :  { %3582 = vrot.lane.b32.xlu0 %v3562_v20, %s6954_s24 }
0x2dbc   :  { %v3566_v23 = vpop.f32.mrb[86].mxu1 }
0x2dbd   :  { %v3567_v24 = vadd.f32 %v3566_v23, %v7609_v52  ;;  %v6184_v25 = vpop.f32.mrb[87].mxu1 }
0x2dbf   :  { %3601 = vrot.lane.b32.xlu0 %v3485_v16, %s6947_s0  ;;  %3593 = vrot.lane.b32.xlu1 %v3567_v24, %s6954_s24 }
0x2e29   :  { %v3572_v26 = vpop.permute.xlu1 %3571 }
0x2e2a   :  { %v3574_v54 = vadd.f32 %v3572_v26, %v7602_v2 }
0x2e2c   :  { %v5570_v61 = vmul.f32 -1.442695, %v3574_v54 }
0x2e2d   :  { %v3583_v28 = vpop.permute.xlu0 %3582 }
0x2e2e   :  { %6804 = vpow2.f32 %v5570_v61  ;;  %v3585_v30 = vadd.f32 %v3583_v28, %v7606_v11 }
0x2e30   :  { %v5571_v8 = vmul.f32 -1.442695, %v3585_v30 }
0x2e31   :  { %v3594_v60 = vpop.permute.xlu1 %3593  ;;  %v3602_v37 = vpop.permute.xlu0 %3601 }
0x2e32   :  { %6806 = vpow2.f32 %v5571_v8 }
0x2e38   :  { %v6805_v33 = vpop.eup %6804 }
0x2e39   :  { %v3578_v14 = vadd.f32 1.0, %v6805_v33 }
0x2e3b   :  { %6808 = vrcp.f32 %v3578_v14 }
0x2e3c   :  { %v6807_v35 = vpop.eup %6806 }
0x2e3d   :  { %v3589_v22 = vadd.f32 1.0, %v6807_v35 }
0x2e3f   :  { %6810 = vrcp.f32 %v3589_v22 }
0x2e45   :  { %v6809_v32 = vpop.eup %6808 }
0x2e46   :  { %v3596_v10 = vmul.f32 %v6809_v32, %v3594_v60 }
0x2e48   :  { %v3597_v50 = vadd.f32 %v3596_v10, %v7612_v58 }
0x2e49   :  { %v6811_v27 = vpop.eup %6810 }
0x2e4a   :  { %6812 = vtanh.f32 %v3597_v50  ;;  %v3599_v36 = vsub.f32 1.0, %v6811_v27  ;;  %v3604_v49 = vmul.f32 %v6811_v27, %v3602_v37 }
0x2e54   :  { %v6813_v6 = vpop.eup %6812 }
0x2e55   :  { %v3600_v29 = vmul.f32 %v6813_v6, %v3599_v36 }
0x2e57   :  { %v3605_v13 = vadd.f32 %v3604_v49, %v3600_v29 }
0x2e59   :  { %3607 = vrot.lane.b32.xlu1 %v3605_v13, %s6955_s25 }
0x2ecb   :  { %v3608_v39 = vpop.permute.xlu1 %3607 }
0x2ecc   :  { %6186 = vmatpush3.msra.mxu0 %v3608_v39 }
0x2ecd   :  { %6188 = vmatmul.mubr.msk.f32.vlgmr.msra.gmra.mrb[78].mxu0 %vm30_vm0, %v7543_v59  ;;  %6207 = vmatprep.subr.mxu0 %v6945_v34 }
0x2ece   :  { %6190 = vmatprep.mubr.msk.f32.mxu0 %vm6944_vm3, %v6945_v34 }
0x2ed1   :  { %6191 = vmatmul.mubr.msk.f32.gmra.mrb[80].mxu0 %vm30_vm0, %v7549_v1 }
0x2ed2   :  { %6193 = vmatprep.mubr.msk.f32.mxu0 %vm6944_vm3, %v6945_v34 }
0x2ed5   :  { %6194 = vmatmul.mubr.msk.f32.gmra.mrb[82].mxu0 %vm30_vm0, %v7555_v5 }
0x2ed6   :  { %6209 = vmatprep.mubr.msk.f32.mxu0 %vm6944_vm3, %v6945_v34 }
0x2fa0   :  { %v3676_v44 = vpop.f32.mrb[78].mxu0 }
0x2fa1   :  { %v3677_v48 = vadd.f32 %v3676_v44, %v7597_v57  ;;  %v6189_v31 = vpop.f32.mrb[79].mxu0 }
0x2fa3   :  { %3691 = vrot.lane.b32.xlu0 %v3677_v48, %s6934_s20 }
0x2fa4   :  { %v3681_v42 = vpop.f32.mrb[80].mxu0 }
0x2fa5   :  { %v3682_v15 = vadd.f32 %v3681_v42, %v7600_v53  ;;  %v6192_v45 = vpop.f32.mrb[81].mxu0 }
0x2fa7   :  { %3702 = vrot.lane.b32.xlu1 %v3682_v15, %s6934_s20 }
0x2fa8   :  { %v3686_v46 = vpop.f32.mrb[82].mxu0 }
0x2fa9   :  { %v3687_v47 = vadd.f32 %v3686_v46, %v7609_v52  ;;  %v6195_v51 = vpop.f32.mrb[83].mxu0 }
0x2faa   :  { %v7831_v51 = vld [vmem:[#allocation2 + $0x1b0] sm:$0xff] }
0x2fab   :  { %3721 = vrot.lane.b32.xlu1 %v3605_v13, %s6947_s0  ;;  %3713 = vrot.lane.b32.xlu0 %v3687_v47, %s6934_s20  ;;  %s6970_s20 = smov 97  }
0x3015   :  { %v3692_v62 = vpop.permute.xlu0 %3691 }
0x3016   :  { %v3694_v63 = vadd.f32 %v3692_v62, %v7602_v2  ;;  %v7838_v62 = vld [vmem:[#allocation2 + $0x1c0] sm:$0xff] }
0x3018   :  { %v5575_v0 = vmul.f32 -1.442695, %v3694_v63  ;;  %v7844_v63 = vld [vmem:[#allocation2 + $0x1d0] sm:$0xff] }
0x3019   :  { %v3703_v3 = vpop.permute.xlu1 %3702 }
0x301a   :  { %6814 = vpow2.f32 %v5575_v0  ;;  %v3705_v4 = vadd.f32 %v3703_v3, %v7606_v11 }
0x301c   :  { %v5576_v7 = vmul.f32 -1.442695, %v3705_v4 }
0x301d   :  { %v3714_v40 = vpop.permute.xlu0 %3713  ;;  %v3722_v23 = vpop.permute.xlu1 %3721 }
0x301e   :  { %6816 = vpow2.f32 %v5576_v7 }
0x3024   :  { %v6815_v55 = vpop.eup %6814 }
0x3025   :  { %v3698_v9 = vadd.f32 1.0, %v6815_v55 }
0x3027   :  { %6818 = vrcp.f32 %v3698_v9 }
0x3028   :  { %v6817_v56 = vpop.eup %6816 }
0x3029   :  { %v3709_v16 = vadd.f32 1.0, %v6817_v56 }
0x302b   :  { %6820 = vrcp.f32 %v3709_v16 }
0x3031   :  { %v6819_v17 = vpop.eup %6818 }
0x3032   :  { %v3716_v18 = vmul.f32 %v6819_v17, %v3714_v40 }
0x3034   :  { %v3717_v19 = vadd.f32 %v3716_v18, %v7612_v58 }
0x3035   :  { %v6821_v41 = vpop.eup %6820 }
0x3036   :  { %6822 = vtanh.f32 %v3717_v19  ;;  %v3719_v20 = vsub.f32 1.0, %v6821_v41  ;;  %v3724_v24 = vmul.f32 %v6821_v41, %v3722_v23 }
0x3040   :  { %v6823_v21 = vpop.eup %6822 }
0x3041   :  { %v3720_v25 = vmul.f32 %v6823_v21, %v3719_v20 }
0x3043   :  { %v3725_v26 = vadd.f32 %v3724_v24, %v3720_v25 }
0x3045   :  { %3727 = vrot.lane.b32.xlu0 %v3725_v26, %s6956_s26 }
0x30b7   :  { %v3728_v54 = vpop.permute.xlu0 %3727 }
0x30b8   :  { %6197 = vmatpush3.msra.mxu1 %v3728_v54 }
0x30b9   :  { %6199 = vmatmul.mubr.msk.f32.vlgmr.msra.gmra.mrb[88].mxu1 %vm30_vm0, %v7543_v59  ;;  %6218 = vmatprep.subr.mxu1 %v6945_v34 }
0x30ba   :  { %6201 = vmatprep.mubr.msk.f32.mxu1 %vm6944_vm3, %v6945_v34 }
0x30bd   :  { %6202 = vmatmul.mubr.msk.f32.gmra.mrb[90].mxu1 %vm30_vm0, %v7549_v1 }
0x30be   :  { %6204 = vmatprep.mubr.msk.f32.mxu1 %vm6944_vm3, %v6945_v34 }
0x30c1   :  { %6205 = vmatmul.mubr.msk.f32.gmra.mrb[92].mxu1 %vm30_vm0, %v7555_v5 }
0x30c2   :  { %6220 = vmatprep.mubr.msk.f32.mxu1 %vm6944_vm3, %v6945_v34 }
0x318c   :  { %v3796_v61 = vpop.f32.mrb[88].mxu1 }
0x318d   :  { %v3797_v59 = vadd.f32 %v3796_v61, %v7597_v57  ;;  %v6200_v28 = vpop.f32.mrb[89].mxu1 }
0x318f   :  { %3811 = vrot.lane.b32.xlu1 %v3797_v59, %s6957_s27 }
0x3190   :  { %v3801_v30 = vpop.f32.mrb[90].mxu1 }
0x3191   :  { %v3802_v8 = vadd.f32 %v3801_v30, %v7600_v53  ;;  %v6203_v33 = vpop.f32.mrb[91].mxu1 }
0x3193   :  { %3822 = vrot.lane.b32.xlu0 %v3802_v8, %s6957_s27 }
0x3194   :  { %v3806_v1 = vpop.f32.mrb[92].mxu1 }
0x3195   :  { %v3807_v14 = vadd.f32 %v3806_v1, %v7609_v52  ;;  %v6206_v35 = vpop.f32.mrb[93].mxu1 }
0x3197   :  { %3841 = vrot.lane.b32.xlu0 %v3725_v26, %s6947_s0  ;;  %3833 = vrot.lane.b32.xlu1 %v3807_v14, %s6957_s27 }
0x3201   :  { %v3812_v5 = vpop.permute.xlu1 %3811 }
0x3202   :  { %v3814_v22 = vadd.f32 %v3812_v5, %v7602_v2  ;;  %v7874_v5 = vld [vmem:[#allocation2 + $0x210] sm:$0xff] }
0x3204   :  { %v5580_v60 = vmul.f32 -1.442695, %v3814_v22 }
0x3205   :  { %v3823_v32 = vpop.permute.xlu0 %3822 }
0x3206   :  { %6824 = vpow2.f32 %v5580_v60  ;;  %v3825_v10 = vadd.f32 %v3823_v32, %v7606_v11 }
0x3208   :  { %v5581_v50 = vmul.f32 -1.442695, %v3825_v10  ;;  %v7878_v10 = vld [vmem:[#allocation2 + $0x220] sm:$0xff] }
0x3209   :  { %v3834_v49 = vpop.permute.xlu1 %3833  ;;  %v3842_v42 = vpop.permute.xlu0 %3841 }
0x320a   :  { %6826 = vpow2.f32 %v5581_v50 }
0x3210   :  { %v6825_v27 = vpop.eup %6824 }
0x3211   :  { %v3818_v36 = vadd.f32 1.0, %v6825_v27 }
0x3213   :  { %6828 = vrcp.f32 %v3818_v36 }
0x3214   :  { %v6827_v6 = vpop.eup %6826 }
0x3215   :  { %v3829_v37 = vadd.f32 1.0, %v6827_v6  ;;  %v7882_v6 = vld [vmem:[#allocation2 + $0x230] sm:$0xff] }
0x3217   :  { %6830 = vrcp.f32 %v3829_v37 }
0x321d   :  { %v6829_v29 = vpop.eup %6828 }
0x321e   :  { %v3836_v13 = vmul.f32 %v6829_v29, %v3834_v49 }
0x3220   :  { %v3837_v39 = vadd.f32 %v3836_v13, %v7612_v58 }
0x3221   :  { %v6831_v44 = vpop.eup %6830 }
0x3222   :  { %6832 = vtanh.f32 %v3837_v39  ;;  %v3839_v48 = vsub.f32 1.0, %v6831_v44  ;;  %v3844_v15 = vmul.f32 %v6831_v44, %v3842_v42 }
0x322c   :  { %v6833_v31 = vpop.eup %6832 }
0x322d   :  { %v3840_v45 = vmul.f32 %v6833_v31, %v3839_v48 }
0x322f   :  { %v3845_v46 = vadd.f32 %v3844_v15, %v3840_v45 }
0x3231   :  { %3847 = vrot.lane.b32.xlu1 %v3845_v46, %s6958_s28 }
0x32a3   :  { %v3848_v47 = vpop.permute.xlu1 %3847 }
0x32a4   :  { %6208 = vmatpush3.msra.mxu0 %v3848_v47 }
0x32a5   :  { %6210 = vmatmul.mubr.msk.f32.vlgmr.msra.gmra.mrb[84].mxu0 %vm30_vm0, %v7831_v51  ;;  %6229 = vmatprep.subr.mxu0 %v6945_v34 }
0x32a6   :  { %6212 = vmatprep.mubr.msk.f32.mxu0 %vm6944_vm3, %v6945_v34 }
0x32a9   :  { %6213 = vmatmul.mubr.msk.f32.gmra.mrb[86].mxu0 %vm30_vm0, %v7838_v62 }
0x32aa   :  { %6215 = vmatprep.mubr.msk.f32.mxu0 %vm6944_vm3, %v6945_v34 }
0x32ad   :  { %6216 = vmatmul.mubr.msk.f32.gmra.mrb[88].mxu0 %vm30_vm0, %v7844_v63 }
0x32ae   :  { %6231 = vmatprep.mubr.msk.f32.mxu0 %vm6944_vm3, %v6945_v34 }
0x3378   :  { %v3916_v0 = vpop.f32.mrb[84].mxu0 }
0x3379   :  { %v3917_v3 = vadd.f32 %v3916_v0, %v7597_v57  ;;  %v6211_v4 = vpop.f32.mrb[85].mxu0 }
0x337b   :  { %3931 = vrot.lane.b32.xlu0 %v3917_v3, %s6959_s1 }
0x337c   :  { %v3921_v7 = vpop.f32.mrb[86].mxu0 }
0x337d   :  { %v3922_v55 = vadd.f32 %v3921_v7, %v7600_v53  ;;  %v6214_v9 = vpop.f32.mrb[87].mxu0 }
0x337f   :  { %3942 = vrot.lane.b32.xlu1 %v3922_v55, %s6959_s1 }
0x3380   :  { %v3926_v56 = vpop.f32.mrb[88].mxu0 }
0x3381   :  { %v3927_v16 = vadd.f32 %v3926_v56, %v7609_v52  ;;  %v6217_v40 = vpop.f32.mrb[89].mxu0 }
0x3383   :  { %3961 = vrot.lane.b32.xlu1 %v3845_v46, %s6947_s0  ;;  %3953 = vrot.lane.b32.xlu0 %v3927_v16, %s6959_s1 }
0x33ed   :  { %v3932_v17 = vpop.permute.xlu0 %3931 }
0x33ee   :  { %v3934_v57 = vadd.f32 %v3932_v17, %v7602_v2 }
0x33f0   :  { %v5585_v18 = vmul.f32 -1.442695, %v3934_v57 }
0x33f1   :  { %v3943_v19 = vpop.permute.xlu1 %3942 }
0x33f2   :  { %6834 = vpow2.f32 %v5585_v18  ;;  %v3945_v41 = vadd.f32 %v3943_v19, %v7606_v11 }
0x33f4   :  { %v5586_v53 = vmul.f32 -1.442695, %v3945_v41 }
0x33f5   :  { %v3954_v24 = vpop.permute.xlu0 %3953  ;;  %v3962_v30 = vpop.permute.xlu1 %3961 }
0x33f6   :  { %6836 = vpow2.f32 %v5586_v53 }
0x33fc   :  { %v6835_v20 = vpop.eup %6834 }
0x33fd   :  { %v3938_v21 = vadd.f32 1.0, %v6835_v20 }
0x33ff   :  { %6838 = vrcp.f32 %v3938_v21 }
0x3400   :  { %v6837_v23 = vpop.eup %6836 }
0x3401   :  { %v3949_v52 = vadd.f32 1.0, %v6837_v23 }
0x3403   :  { %6840 = vrcp.f32 %v3949_v52 }
0x3409   :  { %v6839_v25 = vpop.eup %6838 }
0x340a   :  { %v3956_v26 = vmul.f32 %v6839_v25, %v3954_v24 }
0x340c   :  { %v3957_v54 = vadd.f32 %v3956_v26, %v7612_v58 }
0x340d   :  { %v6841_v61 = vpop.eup %6840 }
0x340e   :  { %6842 = vtanh.f32 %v3957_v54  ;;  %v3959_v59 = vsub.f32 1.0, %v6841_v61  ;;  %v3964_v8 = vmul.f32 %v6841_v61, %v3962_v30 }
0x3418   :  { %v6843_v28 = vpop.eup %6842 }
0x3419   :  { %v3960_v33 = vmul.f32 %v6843_v28, %v3959_v59 }
0x341b   :  { %v3965_v1 = vadd.f32 %v3964_v8, %v3960_v33 }
0x341d   :  { %3967 = vrot.lane.b32.xlu0 %v3965_v1, %s6960_s29 }
0x348f   :  { %v3968_v14 = vpop.permute.xlu0 %3967 }
0x3490   :  { %6219 = vmatpush3.msra.mxu1 %v3968_v14 }
0x3491   :  { %6221 = vmatmul.mubr.msk.f32.vlgmr.msra.gmra.mrb[94].mxu1 %vm30_vm0, %v7831_v51  ;;  %6240 = vmatprep.subr.mxu1 %v6945_v34 }
0x3492   :  { %6223 = vmatprep.mubr.msk.f32.mxu1 %vm6944_vm3, %v6945_v34 }
0x3495   :  { %6224 = vmatmul.mubr.msk.f32.gmra.mrb[96].mxu1 %vm30_vm0, %v7838_v62 }
0x3496   :  { %6226 = vmatprep.mubr.msk.f32.mxu1 %vm6944_vm3, %v6945_v34 }
0x3499   :  { %6227 = vmatmul.mubr.msk.f32.gmra.mrb[98].mxu1 %vm30_vm0, %v7844_v63 }
0x349a   :  { %6242 = vmatprep.mubr.msk.f32.mxu1 %vm6944_vm3, %v6945_v34 }
0x3564   :  { %v4036_v35 = vpop.f32.mrb[94].mxu1 }
0x3565   :  { %v4037_v22 = vadd.f32 %v7874_v5, %v4036_v35  ;;  %v6222_v60 = vpop.f32.mrb[95].mxu1 }
0x3567   :  { %4051 = vrot.lane.b32.xlu1 %v4037_v22, %s6961_s30 }
0x3568   :  { %v4041_v32 = vpop.f32.mrb[96].mxu1 }
0x3569   :  { %v4042_v50 = vadd.f32 %v7878_v10, %v4041_v32  ;;  %v6225_v27 = vpop.f32.mrb[97].mxu1 }
0x356b   :  { %4062 = vrot.lane.b32.xlu0 %v4042_v50, %s6961_s30 }
0x356c   :  { %v4046_v36 = vpop.f32.mrb[98].mxu1 }
0x356d   :  { %v4047_v37 = vadd.f32 %v7882_v6, %v4046_v36  ;;  %v6228_v49 = vpop.f32.mrb[99].mxu1 }
0x356f   :  { %4081 = vrot.lane.b32.xlu0 %v3965_v1, %s6947_s0  ;;  %4073 = vrot.lane.b32.xlu1 %v4047_v37, %s6961_s30 }
0x35d9   :  { %v4052_v29 = vpop.permute.xlu1 %4051 }
0x35da   :  { %v4054_v13 = vadd.f32 %v4052_v29, %v7602_v2 }
0x35dc   :  { %v5590_v39 = vmul.f32 -1.442695, %v4054_v13 }
0x35dd   :  { %v4063_v44 = vpop.permute.xlu0 %4062 }
0x35de   :  { %6844 = vpow2.f32 %v5590_v39  ;;  %v4065_v48 = vadd.f32 %v4063_v44, %v7606_v11 }
0x35e0   :  { %v5591_v31 = vmul.f32 -1.442695, %v4065_v48 }
0x35e1   :  { %v4074_v47 = vpop.permute.xlu1 %4073  ;;  %v4082_v56 = vpop.permute.xlu0 %4081 }
0x35e2   :  { %6846 = vpow2.f32 %v5591_v31 }
0x35e8   :  { %v6845_v42 = vpop.eup %6844 }
0x35e9   :  { %v4058_v15 = vadd.f32 1.0, %v6845_v42 }
0x35eb   :  { %6848 = vrcp.f32 %v4058_v15 }
0x35ec   :  { %v6847_v45 = vpop.eup %6846 }
0x35ed   :  { %v4069_v46 = vadd.f32 1.0, %v6847_v45 }
0x35ef   :  { %6850 = vrcp.f32 %v4069_v46 }
0x35f5   :  { %v6849_v0 = vpop.eup %6848 }
0x35f6   :  { %v4076_v3 = vmul.f32 %v6849_v0, %v4074_v47 }
0x35f8   :  { %v4077_v4 = vadd.f32 %v4076_v3, %v7612_v58 }
0x35f9   :  { %v6851_v7 = vpop.eup %6850 }
0x35fa   :  { %6852 = vtanh.f32 %v4077_v4  ;;  %v4079_v55 = vsub.f32 1.0, %v6851_v7  ;;  %v4084_v16 = vmul.f32 %v6851_v7, %v4082_v56 }
0x3604   :  { %v6853_v9 = vpop.eup %6852 }
0x3605   :  { %v4080_v40 = vmul.f32 %v6853_v9, %v4079_v55 }
0x3607   :  { %v4085_v17 = vadd.f32 %v4084_v16, %v4080_v40 }
0x3609   :  { %4087 = vrot.lane.b32.xlu1 %v4085_v17, %s6962_s3 }
0x367b   :  { %v4088_v57 = vpop.permute.xlu1 %4087 }
0x367c   :  { %6230 = vmatpush3.msra.mxu0 %v4088_v57 }
0x367d   :  { %6232 = vmatmul.mubr.msk.f32.vlgmr.msra.gmra.mrb[90].mxu0 %vm30_vm0, %v7831_v51  ;;  %6251 = vmatprep.subr.mxu0 %v6945_v34 }
0x367e   :  { %6234 = vmatprep.mubr.msk.f32.mxu0 %vm6944_vm3, %v6945_v34 }
0x3681   :  { %6235 = vmatmul.mubr.msk.f32.gmra.mrb[92].mxu0 %vm30_vm0, %v7838_v62 }
0x3682   :  { %6237 = vmatprep.mubr.msk.f32.mxu0 %vm6944_vm3, %v6945_v34 }
0x3685   :  { %6238 = vmatmul.mubr.msk.f32.gmra.mrb[94].mxu0 %vm30_vm0, %v7844_v63 }
0x3686   :  { %6253 = vmatprep.mubr.msk.f32.mxu0 %vm6944_vm3, %v6945_v34 }
0x3750   :  { %v4156_v18 = vpop.f32.mrb[90].mxu0 }
0x3751   :  { %v4157_v19 = vadd.f32 %v7874_v5, %v4156_v18  ;;  %v6233_v41 = vpop.f32.mrb[91].mxu0 }
0x3753   :  { %4171 = vrot.lane.b32.xlu0 %v4157_v19, %s6963_s4 }
0x3754   :  { %v4161_v53 = vpop.f32.mrb[92].mxu0 }
0x3755   :  { %v4162_v20 = vadd.f32 %v7878_v10, %v4161_v53  ;;  %v6236_v21 = vpop.f32.mrb[93].mxu0 }
0x3757   :  { %4182 = vrot.lane.b32.xlu1 %v4162_v20, %s6963_s4 }
0x3758   :  { %v4166_v23 = vpop.f32.mrb[94].mxu0 }
0x3759   :  { %v4167_v52 = vadd.f32 %v7882_v6, %v4166_v23  ;;  %v6239_v24 = vpop.f32.mrb[95].mxu0 }
0x375b   :  { %4201 = vrot.lane.b32.xlu1 %v4085_v17, %s6947_s0  ;;  %4193 = vrot.lane.b32.xlu0 %v4167_v52, %s6963_s4 }
0x37c5   :  { %v4172_v25 = vpop.permute.xlu0 %4171 }
0x37c6   :  { %v4174_v26 = vadd.f32 %v4172_v25, %v7602_v2 }
0x37c8   :  { %v5595_v54 = vmul.f32 -1.442695, %v4174_v26 }
0x37c9   :  { %v4183_v61 = vpop.permute.xlu1 %4182 }
0x37ca   :  { %6854 = vpow2.f32 %v5595_v54  ;;  %v4185_v59 = vadd.f32 %v4183_v61, %v7606_v11 }
0x37cc   :  { %v5596_v28 = vmul.f32 -1.442695, %v4185_v59 }
0x37cd   :  { %v4194_v14 = vpop.permute.xlu0 %4193  ;;  %v4202_v36 = vpop.permute.xlu1 %4201 }
0x37ce   :  { %6856 = vpow2.f32 %v5596_v28 }
0x37d4   :  { %v6855_v30 = vpop.eup %6854 }
0x37d5   :  { %v4178_v8 = vadd.f32 1.0, %v6855_v30 }
0x37d7   :  { %6858 = vrcp.f32 %v4178_v8 }
0x37d8   :  { %v6857_v33 = vpop.eup %6856 }
0x37d9   :  { %v4189_v1 = vadd.f32 1.0, %v6857_v33 }
0x37db   :  { %6860 = vrcp.f32 %v4189_v1 }
0x37e1   :  { %v6859_v35 = vpop.eup %6858 }
0x37e2   :  { %v4196_v22 = vmul.f32 %v6859_v35, %v4194_v14 }
0x37e4   :  { %v4197_v60 = vadd.f32 %v4196_v22, %v7612_v58 }
0x37e5   :  { %v6861_v32 = vpop.eup %6860 }
0x37e6   :  { %6862 = vtanh.f32 %v4197_v60  ;;  %v4199_v50 = vsub.f32 1.0, %v6861_v32  ;;  %v4204_v37 = vmul.f32 %v6861_v32, %v4202_v36 }
0x37f0   :  { %v6863_v27 = vpop.eup %6862 }
0x37f1   :  { %v4200_v49 = vmul.f32 %v6863_v27, %v4199_v50 }
0x37f3   :  { %v4205_v29 = vadd.f32 %v4204_v37, %v4200_v49 }
0x37f5   :  { %4207 = vrot.lane.b32.xlu0 %v4205_v29, %s6964_s5 }
0x3867   :  { %v4208_v13 = vpop.permute.xlu0 %4207 }
0x3868   :  { %6241 = vmatpush3.msra.mxu1 %v4208_v13 }
0x3869   :  { %6243 = vmatmul.mubr.msk.f32.vlgmr.msra.gmra.mrb[100].mxu1 %vm30_vm0, %v7831_v51  ;;  %6262 = vmatprep.subr.mxu1 %v6945_v34 }
0x386a   :  { %6245 = vmatprep.mubr.msk.f32.mxu1 %vm6944_vm3, %v6945_v34 }
0x386d   :  { %6246 = vmatmul.mubr.msk.f32.gmra.mrb[102].mxu1 %vm30_vm0, %v7838_v62 }
0x386e   :  { %6248 = vmatprep.mubr.msk.f32.mxu1 %vm6944_vm3, %v6945_v34 }
0x3871   :  { %6249 = vmatmul.mubr.msk.f32.gmra.mrb[104].mxu1 %vm30_vm0, %v7844_v63 }
0x3872   :  { %6264 = vmatprep.mubr.msk.f32.mxu1 %vm6944_vm3, %v6945_v34 }
0x393c   :  { %v4276_v39 = vpop.f32.mrb[100].mxu1 }
0x393d   :  { %v4277_v44 = vadd.f32 %v7874_v5, %v4276_v39  ;;  %v6244_v48 = vpop.f32.mrb[101].mxu1 }
0x393f   :  { %4291 = vrot.lane.b32.xlu1 %v4277_v44, %s6965_s6 }
0x3940   :  { %v4281_v31 = vpop.f32.mrb[102].mxu1 }
0x3941   :  { %v4282_v42 = vadd.f32 %v7878_v10, %v4281_v31  ;;  %v6247_v15 = vpop.f32.mrb[103].mxu1 }
0x3943   :  { %4302 = vrot.lane.b32.xlu0 %v4282_v42, %s6965_s6 }
0x3944   :  { %v4286_v45 = vpop.f32.mrb[104].mxu1 }
0x3945   :  { %v4287_v46 = vadd.f32 %v7882_v6, %v4286_v45  ;;  %v6250_v47 = vpop.f32.mrb[105].mxu1 }
0x3947   :  { %4321 = vrot.lane.b32.xlu0 %v4205_v29, %s6947_s0  ;;  %4313 = vrot.lane.b32.xlu1 %v4287_v46, %s6965_s6 }
0x39b1   :  { %v4292_v0 = vpop.permute.xlu1 %4291 }
0x39b2   :  { %v4294_v3 = vadd.f32 %v4292_v0, %v7602_v2 }
0x39b4   :  { %v5600_v4 = vmul.f32 -1.442695, %v4294_v3 }
0x39b5   :  { %v4303_v7 = vpop.permute.xlu0 %4302 }
0x39b6   :  { %6864 = vpow2.f32 %v5600_v4  ;;  %v4305_v55 = vadd.f32 %v4303_v7, %v7606_v11 }
0x39b8   :  { %v5601_v9 = vmul.f32 -1.442695, %v4305_v55 }
0x39b9   :  { %v4314_v57 = vpop.permute.xlu1 %4313  ;;  %v4322_v23 = vpop.permute.xlu0 %4321 }
0x39ba   :  { %6866 = vpow2.f32 %v5601_v9 }
0x39c0   :  { %v6865_v56 = vpop.eup %6864 }
0x39c1   :  { %v4298_v16 = vadd.f32 1.0, %v6865_v56 }
0x39c3   :  { %6868 = vrcp.f32 %v4298_v16 }
0x39c4   :  { %v6867_v40 = vpop.eup %6866 }
0x39c5   :  { %v4309_v17 = vadd.f32 1.0, %v6867_v40 }
0x39c7   :  { %6870 = vrcp.f32 %v4309_v17 }
0x39cd   :  { %v6869_v18 = vpop.eup %6868 }
0x39ce   :  { %v4316_v19 = vmul.f32 %v6869_v18, %v4314_v57 }
0x39d0   :  { %v4317_v41 = vadd.f32 %v4316_v19, %v7612_v58 }
0x39d1   :  { %v6871_v53 = vpop.eup %6870 }
0x39d2   :  { %6872 = vtanh.f32 %v4317_v41  ;;  %v4319_v20 = vsub.f32 1.0, %v6871_v53  ;;  %v4324_v52 = vmul.f32 %v6871_v53, %v4322_v23 }
0x39dc   :  { %v6873_v21 = vpop.eup %6872 }
0x39dd   :  { %v4320_v24 = vmul.f32 %v6873_v21, %v4319_v20 }
0x39df   :  { %v4325_v25 = vadd.f32 %v4324_v52, %v4320_v24  ;;  %v4587_v52 = vld [vmem:[#allocation2 + $0x270] sm:$0x3] }
0x39e1   :  { %4327 = vrot.lane.b32.xlu1 %v4325_v25, %s6966_s7 }
0x3a53   :  { %v4328_v26 = vpop.permute.xlu1 %4327 }
0x3a54   :  { %6252 = vmatpush3.msra.mxu0 %v4328_v26 }
0x3a55   :  { %6254 = vmatmul.mubr.msk.f32.vlgmr.msra.gmra.mrb[96].mxu0 %vm30_vm0, %v7831_v51  ;;  %6273 = vmatprep.subr.mxu0 %v6945_v34 }
0x3a56   :  { %6256 = vmatprep.mubr.msk.f32.mxu0 %vm6944_vm3, %v6945_v34  ;;  %6274 = vmatpush3.msk.msra.mxu0 %vm4592_vm7, %v4587_v52 }
0x3a57   :  { %6285 = vmatprep.subr.mxu0 %v6945_v34 }
0x3a59   :  { %6257 = vmatmul.mubr.msk.f32.gmra.mrb[98].mxu0 %vm30_vm0, %v7838_v62 }
0x3a5a   :  { %6259 = vmatprep.mubr.msk.f32.mxu0 %vm6944_vm3, %v6945_v34 }
0x3a5d   :  { %6260 = vmatmul.mubr.msk.f32.gmra.mrb[100].mxu0 %vm30_vm0, %v7844_v63 }
0x3a5e   :  { %6275 = vmatprep.mubr.msk.f32.mxu0 %vm6944_vm3, %v6945_v34 }
0x3b28   :  { %v4396_v54 = vpop.f32.mrb[96].mxu0 }
0x3b29   :  { %v4397_v61 = vadd.f32 %v7874_v5, %v4396_v54  ;;  %v6255_v59 = vpop.f32.mrb[97].mxu0 }
0x3b2b   :  { %4411 = vrot.lane.b32.xlu0 %v4397_v61, %s6967_s11 }
0x3b2c   :  { %v4401_v28 = vpop.f32.mrb[98].mxu0 }
0x3b2d   :  { %v4402_v30 = vadd.f32 %v7878_v10, %v4401_v28  ;;  %v6258_v8 = vpop.f32.mrb[99].mxu0 }
0x3b2f   :  { %4422 = vrot.lane.b32.xlu1 %v4402_v30, %s6967_s11 }
0x3b30   :  { %v4406_v33 = vpop.f32.mrb[100].mxu0 }
0x3b31   :  { %v4407_v1 = vadd.f32 %v7882_v6, %v4406_v33  ;;  %v6261_v14 = vpop.f32.mrb[101].mxu0 }
0x3b33   :  { %4441 = vrot.lane.b32.xlu1 %v4325_v25, %s6947_s0  ;;  %4433 = vrot.lane.b32.xlu0 %v4407_v1, %s6967_s11 }
0x3b9d   :  { %v4412_v35 = vpop.permute.xlu0 %4411 }
0x3b9e   :  { %v4414_v22 = vadd.f32 %v4412_v35, %v7602_v2  ;;  %v4671_v35 = vld [vmem:[#allocation2 + $0x290] sm:$0xff] }
0x3ba0   :  { %v5605_v60 = vmul.f32 -1.442695, %v4414_v22  ;;  %v4672_v22 = vld [vmem:[#allocation2 + $0x2a0] sm:$0xff] }
0x3ba1   :  { %v4423_v32 = vpop.permute.xlu1 %4422 }
0x3ba2   :  { %6874 = vpow2.f32 %v5605_v60  ;;  %v4425_v50 = vadd.f32 %v4423_v32, %v7606_v11  ;;  %v6430_v60 = vpack.c.bf16 %v4672_v22, %v4671_v35  ;;  %v4588_v32 = vld [vmem:[#allocation2 + $0x280] sm:$0xff]  ;;  %v4957_v35 = vld [vmem:[#allocation2 + $0x370] sm:$0xff] }
0x3ba3   :  { %v4956_v22 = vld [vmem:[#allocation2 + $0x360] sm:$0xff] }
0x3ba4   :  { %v5606_v27 = vmul.f32 -1.442695, %v4425_v50 }
0x3ba5   :  { %v4434_v13 = vpop.permute.xlu0 %4433  ;;  %v4442_v45 = vpop.permute.xlu1 %4441 }
0x3ba6   :  { %6876 = vpow2.f32 %v5606_v27 }
0x3bac   :  { %v6875_v36 = vpop.eup %6874 }
0x3bad   :  { %v4418_v37 = vadd.f32 1.0, %v6875_v36 }
0x3baf   :  { %6878 = vrcp.f32 %v4418_v37  ;;  %v444_v37 = vld [vmem:[#allocation2 + $0x260] sm:$0xff] }
0x3bb0   :  { %v6877_v49 = vpop.eup %6876 }
0x3bb1   :  { %v4429_v29 = vadd.f32 1.0, %v6877_v49  ;;  %v515_v49 = vadd.f32 %v7093_v43, %v444_v37  ;;  %v5040_v37 = vld [vmem:[#allocation2 + $0x390] sm:$0xff] }
0x3bb3   :  { %6880 = vrcp.f32 %v4429_v29 }
0x3bb9   :  { %v6879_v39 = vpop.eup %6878 }
0x3bba   :  { %v4436_v44 = vmul.f32 %v6879_v39, %v4434_v13  ;;  %v4673_v39 = vld [vmem:[#allocation2 + $0x2b0] sm:$0xff] }
0x3bbc   :  { %v4437_v48 = vadd.f32 %v4436_v44, %v7612_v58 }
0x3bbd   :  { %v6881_v31 = vpop.eup %6880 }
0x3bbe   :  { %6882 = vtanh.f32 %v4437_v48  ;;  %v4439_v42 = vsub.f32 1.0, %v6881_v31  ;;  %v4444_v46 = vmul.f32 %v6881_v31, %v4442_v45 }
0x3bc8   :  { %v6883_v15 = vpop.eup %6882 }
0x3bc9   :  { %v4440_v47 = vmul.f32 %v6883_v15, %v4439_v42 }
0x3bcb   :  { %v4445_v0 = vadd.f32 %v4444_v46, %v4440_v47  ;;  %v6973_v46 = vmov 0  }
0x3bcc   :  { %6572 = vset.pattern.permute.xlu0 %v6973_v46  ;;  %6573 = vset.pattern.permute.xlu1 %v6973_v46  ;;  %v5051_v46 = vld [vmem:[#allocation2 + $0x440] sm:$0xff] }
0x3bcd   :  { %4447 = vrot.lane.b32.xlu0 %v4445_v0, %s6968_s13 }
0x3c3f   :  { %v4448_v3 = vpop.permute.xlu0 %4447 }
0x3c40   :  { %6263 = vmatpush3.msra.mxu1 %v4448_v3 }
0x3c41   :  { %6265 = vmatmul.mubr.msk.f32.vlgmr.msra.gmra.mrb[106].mxu1 %vm30_vm0, %v7831_v51  ;;  %6429 = vmatprep.subr.bf16.mxu1 %v6935_v12 }
0x3c42   :  { %6267 = vmatprep.mubr.msk.f32.mxu1 %vm6944_vm3, %v6945_v34  ;;  %6431 = vmatpush3.bf16.msra.mxu1 %v6430_v60 }
0x3c45   :  { %6268 = vmatmul.mubr.msk.f32.gmra.mrb[108].mxu1 %vm30_vm0, %v7838_v62 }
0x3c46   :  { %6270 = vmatprep.mubr.msk.f32.mxu1 %vm6944_vm3, %v6945_v34 }
0x3c49   :  { %6271 = vmatmul.mubr.msk.f32.gmra.mrb[110].mxu1 %vm30_vm0, %v7844_v63 }
0x3c4a   :  { %6282 = vmatprep.mubr.msk.f32.mxu1 %vm6944_vm3, %v6945_v34 }
0x3d14   :  { %v4516_v4 = vpop.f32.mrb[106].mxu1 }
0x3d15   :  { %v4517_v51 = vadd.f32 %v7874_v5, %v4516_v4  ;;  %v6266_v7 = vpop.f32.mrb[107].mxu1 }
0x3d17   :  { %4531 = vrot.lane.b32.xlu1 %v4517_v51, %s6969_s15 }
0x3d18   :  { %v4521_v55 = vpop.f32.mrb[108].mxu1 }
0x3d19   :  { %v4522_v9 = vadd.f32 %v7878_v10, %v4521_v55  ;;  %v6269_v56 = vpop.f32.mrb[109].mxu1 }
0x3d1b   :  { %4542 = vrot.lane.b32.xlu0 %v4522_v9, %s6969_s15 }
0x3d1c   :  { %v4526_v62 = vpop.f32.mrb[110].mxu1 }
0x3d1d   :  { %v4527_v16 = vadd.f32 %v7882_v6, %v4526_v62  ;;  %v6272_v40 = vpop.f32.mrb[111].mxu1 }
0x3d1f   :  { %4561 = vrot.lane.b32.xlu0 %v4445_v0, %s6947_s0  ;;  %4553 = vrot.lane.b32.xlu1 %v4527_v16, %s6969_s15  ;;  %v4768_v16 = vld [vmem:[#allocation2 + $0x2c0] sm:$0xf] }
0x3d23   :  { %4576 = vrot.lane.b32.xlu1 %v7582_v38, %s6970_s20 }
0x3d27   :  { %4567 = vrot.lane.b32.xlu1 %v7582_v38, %s6971_s8 }
0x3d89   :  { %v4532_v63 = vpop.permute.xlu1 %4531 }
0x3d8a   :  { %v4534_v5 = vadd.f32 %v4532_v63, %v7602_v2 }
0x3d8c   :  { %v5610_v10 = vmul.f32 -1.442695, %v4534_v5  ;;  %v4770_v5 = vld [vmem:[#allocation2 + $0x2d0] sm:$0xf] }
0x3d8d   :  { %v4543_v17 = vpop.permute.xlu0 %4542 }
0x3d8e   :  { %6884 = vpow2.f32 %v5610_v10  ;;  %v4545_v6 = vadd.f32 %v4543_v17, %v7606_v11 }
0x3d90   :  { %v5611_v57 = vmul.f32 -1.442695, %v4545_v6 }
0x3d91   :  { %v4554_v21 = vpop.permute.xlu1 %4553  ;;  %v4562_v25 = vpop.permute.xlu0 %4561 }
0x3d92   :  { %6886 = vpow2.f32 %v5611_v57 }
0x3d95   :  { %v4577_v59 = vpop.permute.xlu1 %4576 }
0x3d98   :  { %v6885_v18 = vpop.eup %6884 }
0x3d99   :  { %v4538_v19 = vadd.f32 1.0, %v6885_v18  ;;  %v4568_v30 = vpop.permute.xlu1 %4567 }
0x3d9b   :  { %6888 = vrcp.f32 %v4538_v19 }
0x3d9c   :  { %v6887_v41 = vpop.eup %6886 }
0x3d9d   :  { %v4549_v53 = vadd.f32 1.0, %v6887_v41  ;;  %v4793_v41 = vld [vmem:[#allocation2 + $0x2e0] sm:$0xff] }
0x3d9f   :  { %6890 = vrcp.f32 %v4549_v53 }
0x3da5   :  { %v6889_v20 = vpop.eup %6888 }
0x3da6   :  { %v4556_v23 = vmul.f32 %v6889_v20, %v4554_v21 }
0x3da8   :  { %v4557_v38 = vadd.f32 %v4556_v23, %v7612_v58 }
0x3da9   :  { %v6891_v2 = vpop.eup %6890 }
0x3daa   :  { %6892 = vtanh.f32 %v4557_v38  ;;  %v4559_v24 = vsub.f32 1.0, %v6891_v2  ;;  %v4564_v26 = vmul.f32 %v6891_v2, %v4562_v25  ;;  %v4869_v38 = vld [vmem:[#allocation2 + $0x300] sm:$0xff]  ;;  %v4794_v2 = vld [vmem:[#allocation2 + $0x2f0] sm:$0xff] }
0x3db4   :  { %v6893_v11 = vpop.eup %6892 }
0x3db5   :  { %v4560_v54 = vmul.f32 %v6893_v11, %v4559_v24 }
0x3db7   :  { %v4565_v61 = vadd.f32 %v4564_v26, %v4560_v54  ;;  %v4870_v26 = vld [vmem:[#allocation2 + $0x310] sm:$0xff]  ;;  %v4954_v54 = vld [vmem:[#allocation2 + $0x340] sm:$0xff] }
0x3db9   :  { %4579 = vrot.lane.b32.xlu0 %v4565_v61, %s6971_s8 }
0x3dbd   :  { %4571 = vrot.lane.b32.xlu0 %v4565_v61, %s6972_s9  ;;  %v4955_v61 = vld [vmem:[#allocation2 + $0x350] sm:$0xff] }
0x3e2b   :  { %v4580_v58 = vpop.permute.xlu0 %4579 }
0x3e2c   :  { %v4582_v28 = vsel %vm4574_vm9, %v4577_v59, %v4580_v58  ;;  %v6432_v59 = vpack.c.bf16 %v4955_v61, %v4954_v54  ;;  %v4871_v58 = vld [vmem:[#allocation2 + $0x320] sm:$0xff] }
0x3e2d   :  { %v4584_v8 = vrot.slane %v4582_v28, 4  ;;  %v4872_v28 = vld [vmem:[#allocation2 + $0x330] sm:$0xff]  ;;  %v5061_v61 = vld [vmem:[#allocation2 + $0x4e0] sm:$0xff] }
0x3e2f   :  { %v4572_v33 = vpop.permute.xlu0 %4571 }
0x3e30   :  { %v4575_v1 = vsel %vm4574_vm9, %v4568_v30, %v4572_v33 }
0x3e31   :  { %v4586_v14 = vsel %vm535_vm6, %v4575_v1, %v4584_v8 }
0x3e32   :  { %6276 = vmatmul.mubr.msk.f32.vlgmr.msra.gmra.mrb[102].mxu0 %vm2532_vm8, %v4586_v14  ;;  %v5039_v14 = vld [vmem:[#allocation2 + $0x380] sm:$0xff] }
0x3e33   :  { %6287 = vmatprep.mubr.msk.f32.mxu0 %vm6944_vm3, %v6945_v34  ;;  %6286 = vmatpush3.msra.mxu0 %v4793_v41 }
0x3e34   :  { %6433 = vmatprep.subr.bf16.mxu0 %v6432_v59 }
0x3f05   :  { %v4662_v50 = vpop.f32.mrb[102].mxu0 }
0x3f06   :  { %v4663_v27 = vadd.f32 %v4662_v50, %v4588_v32  ;;  %v6277_v36 = vpop.f32.mrb[103].mxu0 }
0x3f08   :  { %4667 = vrot.lane.b32.xlu1 %v4663_v27, %s6950_s19 }
0x3f7a   :  { %v4668_v29 = vpop.permute.xlu1 %4667 }
0x3f7b   :  { %v4670_v13 = vsel %vm30_vm0, %v515_v49, %v4668_v29  ;;  %v5041_v49 = vld [vmem:[#allocation2 + $0x3a0] sm:$0xff]  ;;  %v5042_v29 = vld [vmem:[#allocation2 + $0x3b0] sm:$0xff] }
0x3f7c   :  { %6283 = vmatmul.mubr.msk.f32.vlgmr.msra.gmra.mrb[112].mxu1 %vm362_vm2, %v4670_v13  ;;  %v5043_v13 = vld [vmem:[#allocation2 + $0x3c0] sm:$0xff] }
0x3f7d   :  { %6292 = vmatprep.mubr.msk.f32.mxu1 %vm30_vm0, %v4869_v38 }
0x404f   :  { %v4743_v44 = vpop.f32.mrb[112].mxu1 }
0x4050   :  { %v4744_v48 = vadd.f32 %v4743_v44, %v4673_v39  ;;  %v6284_v31 = vpop.f32.mrb[113].mxu1  ;;  %v5044_v39 = vld [vmem:[#allocation2 + $0x3d0] sm:$0xff]  ;;  %v5045_v44 = vld [vmem:[#allocation2 + $0x3e0] sm:$0xff] }
0x4051   :  { %v5047_v31 = vld [vmem:[#allocation2 + $0x400] sm:$0xff] }
0x4052   :  { %v4747_v42 = vsel %vm30_vm0, %v4744_v48, 0.0  ;;  %v4750_v15 = vmul.f32 %v4744_v48, %v4744_v48 }
0x4053   :  { %4748 = vadd.xlane.f32.xlu0 %v4747_v42  ;;  %v5048_v42 = vld [vmem:[#allocation2 + $0x410] sm:$0xff] }
0x4054   :  { %v4751_v45 = vsel %vm30_vm0, %v4750_v15, 0.0  ;;  %v5049_v15 = vld [vmem:[#allocation2 + $0x420] sm:$0xff] }
0x4055   :  { %4752 = vadd.xlane.f32.xlu1 %v4751_v45  ;;  %v5050_v45 = vld [vmem:[#allocation2 + $0x430] sm:$0xff] }
0x40e0   :  { %v4749_v43 = vpop.xlane.xlu0 %4748 }
0x40e1   :  { %v4755_v47 = vrot.slane %v4749_v43, 4 }
0x40e2   :  { %v4753_v0 = vpop.xlane.xlu1 %4752 }
0x40e3   :  { %v4757_v3 = vadd.f32 %v4755_v47, %v4749_v43  ;;  %v4759_v4 = vrot.slane %v4753_v0, 4  ;;  %v5052_v43 = vld [vmem:[#allocation2 + $0x450] sm:$0xff]  ;;  %v5053_v47 = vld [vmem:[#allocation2 + $0x460] sm:$0xff] }
0x40e5   :  { %v4762_v51 = vmul.f32 0.0625, %v4757_v3  ;;  %v4761_v7 = vadd.f32 %v4759_v4, %v4753_v0  ;;  %v5054_v0 = vld [vmem:[#allocation2 + $0x470] sm:$0xff]  ;;  %v5352_v3 = vld [vmem:[#allocation2 + $0x5a0] sm:$0xff] }
0x40e6   :  { %v5353_v4 = vld [vmem:[#allocation2 + $0x5b0] sm:$0xff] }
0x40e7   :  { %v4764_v55 = vmul.f32 %v4762_v51, %v4762_v51  ;;  %v4763_v9 = vmul.f32 0.0625, %v4761_v7  ;;  %v6465_v7 = vpack.c.bf16 %v5353_v4, %v5352_v3 }
0x40e9   :  { %v4765_v56 = vsub.f32 %v4763_v9, %v4764_v55  ;;  %v5355_v55 = vld [vmem:[#allocation2 + $0x5d0] sm:$0xff] }
0x40eb   :  { %v4766_v62 = vadd.f32 1e-05, %v4765_v56  ;;  %v5056_v56 = vld [vmem:[#allocation2 + $0x490] sm:$0xff] }
0x40ed   :  { %6894 = vrsqrt.f32 %v4766_v62  ;;  %v5055_v62 = vld [vmem:[#allocation2 + $0x480] sm:$0xff] }
0x40f7   :  { %v6895_v40 = vpop.eup %6894 }
0x40f8   :  { %v4769_v63 = vmul.f32 %v6895_v40, %v4768_v16 }
0x40fa   :  { %v4774_v10 = vrot.slane %v4769_v63, 4  ;;  %v4771_v17 = vmul.f32 %v4769_v63, %v4762_v51  ;;  %v5354_v51 = vld [vmem:[#allocation2 + $0x5c0] sm:$0xff] }
0x40fb   :  { %v6468_v9 = vpack.c.bf16 %v5355_v55, %v5354_v51 }
0x40fc   :  { %v4776_v6 = vsel %vm535_vm6, %v4769_v63, %v4774_v10  ;;  %v4772_v57 = vsub.f32 %v4770_v5, %v4771_v17  ;;  %v5058_v10 = vld [vmem:[#allocation2 + $0x4b0] sm:$0xff] }
0x40fd   :  { %4783 = vperm.xlu0 %6572, %v4776_v6   ;;  %v5057_v6 = vld [vmem:[#allocation2 + $0x4a0] sm:$0xff] }
0x40fe   :  { %v4778_v18 = vrot.slane %v4772_v57, 4 }
0x4100   :  { %v4780_v19 = vsel %vm535_vm6, %v4772_v57, %v4778_v18 }
0x4101   :  { %4789 = vperm.xlu1 %6573, %v4780_v19  }
0x417c   :  { %v4784_v53 = vpop.permute.xlu0 %4783 }
0x417d   :  { %v4786_v20 = vmul.f32 %v4784_v53, %v4744_v48  ;;  %v5046_v48 = vld [vmem:[#allocation2 + $0x3f0] sm:$0xff] }
0x4180   :  { %v4790_v21 = vpop.permute.xlu1 %4789 }
0x4181   :  { %v4792_v23 = vadd.f32 %v4790_v21, %v4786_v20  ;;  %v5060_v20 = vld [vmem:[#allocation2 + $0x4d0] sm:$0xff] }
0x4183   :  { %6288 = vmatmul.mubr.msk.f32.vlgmr.msra.gmra.mrb[104].mxu0 %vm30_vm0, %v4792_v23  ;;  %v5059_v23 = vld [vmem:[#allocation2 + $0x4c0] sm:$0xff] }
0x4184   :  { %6435 = vmatpush3.bf16.msra.mxu0 %v6432_v59 }
0x4185   :  { %6440 = vmatprep.subr.bf16.mxu0 %v6935_v12 }
0x4256   :  { %v4864_v52 = vpop.f32.mrb[104].mxu0 }
0x4257   :  { %v4865_v24 = vadd.f32 %v4864_v52, %v4794_v2  ;;  %v6289_v11 = vpop.f32.mrb[105].mxu0 }
0x4259   :  { %v4868_v25 = vmax.f32 %v4865_v24, 0.0 }
0x425b   :  { %6290 = vmatprep.subr.mxu1 %v4868_v25 }
0x425c   :  { %6291 = vmatpush3.msra.mxu1 %v4868_v25 }
0x425d   :  { %6293 = vmatmul.mubr.msk.f32.vlgmr.msra.gmra.mrb[114].mxu1 %vm30_vm0, %v4870_v26  ;;  %v5062_v26 = vld [vmem:[#allocation2 + $0x4f0] sm:$0xff]  ;;  %vm5357_vm0 = vcmask 261120  }
0x425e   :  { %6306 = vmatprep.mubr.msk.f32.mxu1 %vm362_vm2, %v5039_v14 }
0x4330   :  { %v6294_v30 = vpop.f32.mrb[114].mxu1 }
0x4331   :  { %v4945_v8 = vpop.f32.mrb[115].mxu1  ;;  %v4951_v1 = vadd.f32 %v6294_v30, %v4872_v28 }
0x4332   :  { %v4946_v33 = vadd.f32 %v4945_v8, %v4871_v58 }
0x4334   :  { %6299 = vmatprep.mubr.msk.f32.mxu0 %vm362_vm2, %v4946_v33 }
0x4335   :  { %6300 = vmatmul.mubr.msk.f32.vlgmr.msra.gmra.mrb[106].mxu0 %vm362_vm2, %v4951_v1  ;;  %v5064_v1 = vld [vmem:[#allocation2 + $0x510] sm:$0xff] }
0x4336   :  { %6362 = vmatprep.mubr.msk.f32.mxu0 %vm6944_vm3, %v6945_v34 }
0x4408   :  { %v6301_v60 = vpop.f32.mrb[106].mxu0 }
0x4409   :  { %v5036_v32 = vadd.f32 %v6301_v60, %v4957_v35  ;;  %v5030_v50 = vpop.f32.mrb[107].mxu0  ;;  %v5063_v35 = vld [vmem:[#allocation2 + $0x500] sm:$0xff] }
0x440a   :  { %v5031_v27 = vadd.f32 %v5030_v50, %v4956_v22 }
0x440c   :  { %v6436_v36 = vpack.c.bf16 %v5036_v32, %v5031_v27 }
0x440e   :  { %6437 = vmatprep.subr.bf16.mxu1 %v6436_v36 }
0x440f   :  { %6439 = vmatpush3.bf16.msra.mxu1 %v6436_v36 }
0x4410   :  { %6464 = vmatprep.subr.bf16.mxu1 %v6935_v12 }
0x4412   :  { %6307 = vmatmul.mubr.msk.f32.vlgmr.msra.gmra.mrb[116].mxu1 %vm362_vm2, %v5040_v37  ;;  %v5066_v37 = vld [vmem:[#allocation2 + $0x530] sm:$0xff] }
0x4413   :  { %6309 = vmatprep.mubr.msk.f32.mxu1 %vm362_vm2, %v5041_v49  ;;  %6466 = vmatpush3.bf16.msra.mxu1 %v6465_v7  ;;  %v5070_v7 = vld [vmem:[#allocation2 + $0x570] sm:$0xff] }
0x4414   :  { %6467 = vmatprep.subr.bf16.mxu1 %v6935_v12 }
0x4416   :  { %6310 = vmatmul.mubr.msk.f32.gmra.mrb[118].mxu1 %vm362_vm2, %v5042_v29  ;;  %v5065_v29 = vld [vmem:[#allocation2 + $0x520] sm:$0xff] }
0x4417   :  { %6312 = vmatprep.mubr.msk.f32.mxu1 %vm362_vm2, %v5043_v13  ;;  %6469 = vmatpush3.bf16.msra.mxu1 %v6468_v9  ;;  %v5069_v9 = vld [vmem:[#allocation2 + $0x560] sm:$0xff] }
0x441a   :  { %6313 = vmatmul.mubr.msk.f32.gmra.mrb[120].mxu1 %vm362_vm2, %v5044_v39 }
0x441b   :  { %6315 = vmatprep.mubr.msk.f32.mxu1 %vm362_vm2, %v5045_v44 }
0x441e   :  { %6316 = vmatmul.mubr.msk.f32.gmra.mrb[122].mxu1 %vm362_vm2, %v5046_v48 }
0x441f   :  { %6318 = vmatprep.mubr.msk.f32.mxu1 %vm362_vm2, %v5047_v31 }
0x4422   :  { %6319 = vmatmul.mubr.msk.f32.gmra.mrb[124].mxu1 %vm362_vm2, %v5048_v42 }
0x4423   :  { %6321 = vmatprep.mubr.msk.f32.mxu1 %vm362_vm2, %v5049_v15  ;;  %v5068_v15 = vld [vmem:[#allocation2 + $0x550] sm:$0xff] }
0x4426   :  { %6322 = vmatmul.mubr.msk.f32.gmra.mrb[126].mxu1 %vm362_vm2, %v5050_v45 }
0x4427   :  { %6324 = vmatprep.mubr.msk.f32.mxu1 %vm362_vm2, %v5051_v46  ;;  %v5067_v46 = vld [vmem:[#allocation2 + $0x540] sm:$0xff] }
0x442a   :  { %6325 = vmatmul.mubr.msk.f32.gmra.mrb[128].mxu1 %vm362_vm2, %v5052_v43 }
0x442b   :  { %6327 = vmatprep.mubr.msk.f32.mxu1 %vm362_vm2, %v5053_v47 }
0x442e   :  { %6328 = vmatmul.mubr.msk.f32.gmra.mrb[130].mxu1 %vm362_vm2, %v5054_v0  ;;  %vm5431_vm2 = vcmask 128000  }
0x442f   :  { %6373 = vmatprep.mubr.msk.f32.mxu1 %vm6944_vm3, %v6945_v34 }
0x44e5   :  { %v6308_v16 = vpop.f32.mrb[116].mxu1 }
0x44e6   :  { %v5191_v40 = vadd.f32 %v6308_v16, %v5056_v56  ;;  %v5185_v63 = vpop.f32.mrb[117].mxu1 }
0x44e7   :  { %v5186_v5 = vadd.f32 %v5185_v63, %v5055_v62 }
0x44e8   :  { %v5265_v17 = vmax.f32 %v5191_v40, 0.0 }
0x44e9   :  { %v5264_v34 = vmax.f32 %v5186_v5, 0.0  ;;  %v6311_v57 = vpop.f32.mrb[118].mxu1 }
0x44ea   :  { %v5201_v18 = vadd.f32 %v6311_v57, %v5058_v10  ;;  %v5195_v19 = vpop.f32.mrb[119].mxu1  ;;  %v5281_v57 = vld [vmem:[#allocation2 + $0x590] sm:$0x3f] }
0x44eb   :  { %v6441_v41 = vpack.c.bf16 %v5265_v17, %v5264_v34  ;;  %v5196_v53 = vadd.f32 %v5195_v19, %v5057_v6  ;;  %v5280_v34 = vld [vmem:[#allocation2 + $0x580] sm:$0x3f] }
0x44ec   :  { %v5267_v21 = vmax.f32 %v5201_v18, 0.0 }
0x44ed   :  { %v5266_v38 = vmax.f32 %v5196_v53, 0.0  ;;  %v6314_v2 = vpop.f32.mrb[120].mxu1  ;;  %6442 = vmatpush3.bf16.msra.mxu0 %v6441_v41  ;;  %v5356_v53 = vld [vmem:[#allocation2 + $0x5e0] sm:$0x3f] }
0x44ee   :  { %v5211_v52 = vadd.f32 %v6314_v2, %v5060_v20  ;;  %v5205_v24 = vpop.f32.mrb[121].mxu1  ;;  %6443 = vmatprep.subr.bf16.mxu0 %v6935_v12 }
0x44ef   :  { %v6444_v11 = vpack.c.bf16 %v5267_v21, %v5266_v38  ;;  %v5206_v25 = vadd.f32 %v5205_v24, %v5059_v23 }
0x44f0   :  { %v5269_v54 = vmax.f32 %v5211_v52, 0.0 }
0x44f1   :  { %v5268_v59 = vmax.f32 %v5206_v25, 0.0  ;;  %v6317_v58 = vpop.f32.mrb[122].mxu1  ;;  %6445 = vmatpush3.bf16.msra.mxu0 %v6444_v11 }
0x44f2   :  { %v5221_v28 = vadd.f32 %v6317_v58, %v5062_v26  ;;  %v5215_v30 = vpop.f32.mrb[123].mxu1  ;;  %6446 = vmatprep.subr.bf16.mxu0 %v6935_v12 }
0x44f3   :  { %v6447_v8 = vpack.c.bf16 %v5269_v54, %v5268_v59  ;;  %v5216_v33 = vadd.f32 %v5215_v30, %v5061_v61 }
0x44f4   :  { %v5271_v14 = vmax.f32 %v5221_v28, 0.0 }
0x44f5   :  { %v5270_v22 = vmax.f32 %v5216_v33, 0.0  ;;  %v6320_v60 = vpop.f32.mrb[124].mxu1  ;;  %6448 = vmatpush3.bf16.msra.mxu0 %v6447_v8 }
0x44f6   :  { %v5231_v32 = vadd.f32 %v6320_v60, %v5064_v1  ;;  %v5225_v50 = vpop.f32.mrb[125].mxu1  ;;  %6449 = vmatprep.subr.bf16.mxu0 %v6935_v12 }
0x44f7   :  { %v6450_v27 = vpack.c.bf16 %v5271_v14, %v5270_v22  ;;  %v5226_v36 = vadd.f32 %v5225_v50, %v5063_v35 }
0x44f8   :  { %v5273_v49 = vmax.f32 %v5231_v32, 0.0 }
0x44f9   :  { %v5272_v13 = vmax.f32 %v5226_v36, 0.0  ;;  %v6323_v39 = vpop.f32.mrb[126].mxu1  ;;  %6451 = vmatpush3.bf16.msra.mxu0 %v6450_v27 }
0x44fa   :  { %v5241_v44 = vadd.f32 %v6323_v39, %v5066_v37  ;;  %v5235_v48 = vpop.f32.mrb[127].mxu1  ;;  %6452 = vmatprep.subr.bf16.mxu0 %v6935_v12 }
0x44fb   :  { %v6453_v31 = vpack.c.bf16 %v5273_v49, %v5272_v13  ;;  %v5236_v42 = vadd.f32 %v5235_v48, %v5065_v29 }
0x44fc   :  { %v5275_v45 = vmax.f32 %v5241_v44, 0.0 }
0x44fd   :  { %v5274_v43 = vmax.f32 %v5236_v42, 0.0  ;;  %v6326_v47 = vpop.f32.mrb[128].mxu1  ;;  %6454 = vmatpush3.bf16.msra.mxu0 %v6453_v31 }
0x44fe   :  { %v5251_v0 = vadd.f32 %v6326_v47, %v5068_v15  ;;  %v5245_v3 = vpop.f32.mrb[129].mxu1  ;;  %6455 = vmatprep.subr.bf16.mxu0 %v6935_v12 }
0x44ff   :  { %v6456_v4 = vpack.c.bf16 %v5275_v45, %v5274_v43  ;;  %v5246_v51 = vadd.f32 %v5245_v3, %v5067_v46 }
0x4500   :  { %v5277_v55 = vmax.f32 %v5251_v0, 0.0 }
0x4501   :  { %v5276_v56 = vmax.f32 %v5246_v51, 0.0  ;;  %v6329_v62 = vpop.f32.mrb[130].mxu1  ;;  %6457 = vmatpush3.bf16.msra.mxu0 %v6456_v4 }
0x4502   :  { %v5261_v16 = vadd.f32 %v6329_v62, %v5070_v7  ;;  %v5255_v40 = vpop.f32.mrb[131].mxu1  ;;  %6458 = vmatprep.subr.bf16.mxu0 %v6935_v12 }
0x4503   :  { %v6459_v63 = vpack.c.bf16 %v5277_v55, %v5276_v56  ;;  %v5256_v5 = vadd.f32 %v5255_v40, %v5069_v9 }
0x4504   :  { %v5279_v10 = vmax.f32 %v5261_v16, 0.0 }
0x4505   :  { %v5278_v17 = vmax.f32 %v5256_v5, 0.0  ;;  %6460 = vmatpush3.bf16.msra.mxu0 %v6459_v63 }
0x4506   :  { %6461 = vmatprep.subr.bf16.mxu0 %v6935_v12 }
0x4507   :  { %v6462_v6 = vpack.c.bf16 %v5279_v10, %v5278_v17 }
0x4509   :  { %6463 = vmatpush3.bf16.msra.mxu0 %v6462_v6 }
0x450c   :  { %6363 = vmatmul.mubr.f32.vlgmr.msra.gmra.mrb[108].mxu0 %v5280_v34 }
0x45df   :  { %v5348_v18 = vpop.f32.mrb[108].mxu0 }
0x45e0   :  { %v5349_v19 = vadd.f32 %v5348_v18, %v5281_v57  ;;  %v6364_v41 = vpop.f32.mrb[109].mxu0 }
0x45e2   :  { %6374 = vmatmul.mubr.msk.f32.vlgmr.msra.gmra.mrb[132].mxu1 %vm5357_vm0, %v5349_v19 }
0x46b5   :  { %v5427_v20 = vpop.f32.mrb[132].mxu1 }
0x46b6   :  { %v5428_v21 = vadd.f32 %v5427_v20, %v5356_v53  ;;  %v6375_v23 = vpop.f32.mrb[133].mxu1 }
0x46b8   :  { %5432 = vst.msk [vmem:[%s8043_s2] sm:$0x3f] %vm5431_vm2, %v5428_v21 }
0x46b9   :  { %5437 = vsyncpa [#allocation3], 1 }

</bundles_post_ra>
